<compile_context>
chip_gen: v7x
topology: tpu7x:2x2x1
jax: 0.10.0
libtpu: 0.0.40
codegen_flags: <defaults>
</compile_context>

<pallas_src>
import math

import jax
import jax.numpy as jnp
from jax.experimental import pallas as pl
from jax.experimental.pallas import tpu as pltpu

_BN_EPS = 1e-5


# ---------------------------------------------------------------------------
# In-kernel helpers (pure values: everything stays in VMEM / vregs)
# ---------------------------------------------------------------------------
def _conv3x3_taps(x, H, W, C):
    """x: (H, W*C) f32 -> (H, 9*W*C) bf16, taps concatenated (kh-major, kw-minor).

    Zero padding is built as a value, the padded slab is cast to bf16 ONCE, and
    the 9 overlapping taps are concatenated along lanes so the whole 3x3/s1/p1
    conv becomes a single long-K MXU matmul.
    """
    WC = W * C
    zc = jnp.zeros((H, C), jnp.float32)
    xr = jnp.concatenate([zc, x, zc], axis=1)                       # (H, (W+2)*C)
    zr = jnp.zeros((1, (W + 2) * C), jnp.float32)
    xp = jnp.concatenate([zr, xr, zr], axis=0).astype(jnp.bfloat16)  # (H+2,(W+2)*C)
    taps = [xp[kh:kh + H, kw * C:kw * C + WC]
            for kh in range(3) for kw in range(3)]
    return jnp.concatenate(taps, axis=1)                             # (H, 9*W*C)


def _resblock(x, w1, w2, s1, b1, s2, b2, H, W, C):
    """ResidualIntermediateBlock: relu(bn2(conv2(relu(bn1(conv1(x))))) + x)."""
    t1 = _conv3x3_taps(x, H, W, C)
    h1 = jnp.maximum(
        jnp.dot(t1, w1, preferred_element_type=jnp.float32) * s1 + b1, 0.0)
    t2 = _conv3x3_taps(h1, H, W, C)
    h2 = jnp.dot(t2, w2, preferred_element_type=jnp.float32) * s2 + b2
    return jnp.maximum(h2 + x, 0.0)


def _row_take(x, h, kh):
    """Rows kh, kh+3, ..., kh+3*(h-1) of x (H, Wc) via an exact selection matmul."""
    H = x.shape[0]
    oi = jax.lax.broadcasted_iota(jnp.int32, (h, H), 0)
    ii = jax.lax.broadcasted_iota(jnp.int32, (h, H), 1)
    sel = (ii == 3 * oi + kh).astype(jnp.float32)
    return jnp.dot(sel, x, preferred_element_type=jnp.float32)


def _row_put(d, H, kh):
    """Scatter rows of d (h, Wc) into rows kh, kh+3, ... of an (H, Wc) result."""
    h = d.shape[0]
    oi = jax.lax.broadcasted_iota(jnp.int32, (H, h), 0)
    ii = jax.lax.broadcasted_iota(jnp.int32, (H, h), 1)
    sel = (oi == 3 * ii + kh).astype(jnp.float32)
    return jnp.dot(sel, d, preferred_element_type=jnp.float32)


# ---------------------------------------------------------------------------
# Kernel factories
# ---------------------------------------------------------------------------
def _make_encode_kernel(H, W, Cin, hid, D, n_pre, n_enc):
    h, w = H // 3, W // 3

    def kernel(*refs):
        it = iter(refs)
        x_ref = next(it)
        pre = [tuple(next(it) for _ in range(6)) for _ in range(n_pre)]
        embw, embs, embb = next(it), next(it), next(it)
        enc = [tuple(next(it) for _ in range(6)) for _ in range(n_enc)]
        pvw, pvb = next(it), next(it)
        z_ref = next(it)

        x = x_ref[0]                                            # (H, W*Cin) f32
        r = x
        for (w1, w2, s1, b1, s2, b2) in pre:
            r = _resblock(r, w1[...], w2[...], s1[...], b1[...], s2[...], b2[...],
                          H, W, Cin)
        if n_pre:
            r = r + x                                           # outer skip (torch)

        # embedding layer: Conv2d(Cin, hid, k=3, s=3) + BN as one long-K matmul
        xg = jnp.concatenate([_row_take(r, h, kh) for kh in range(3)],
                             axis=1).astype(jnp.bfloat16)       # (h, 3*W*Cin)
        e = (jnp.dot(xg, embw[...], preferred_element_type=jnp.float32)
             * embs[...] + embb[...])                           # (h, w*hid)

        t = e
        for (w1, w2, s1, b1, s2, b2) in enc:
            t = _resblock(t, w1[...], w2[...], s1[...], b1[...], s2[...], b2[...],
                          h, w, hid)
        if n_enc:
            t = t + e                                           # outer skip (torch)

        # pre-VQ conv (3x3 / s1 / p1, bias only)
        taps = _conv3x3_taps(t, h, w, hid)
        z_ref[0] = (jnp.dot(taps, pvw[...], preferred_element_type=jnp.float32)
                    + pvb[...])
    return kernel


def _make_decode_kernel(H, W, Cin, hid, n_dec, n_post):
    h, w = H // 3, W // 3
    WCi = W * Cin

    def kernel(*refs):
        it = iter(refs)
        r_ref = next(it)
        dec = [tuple(next(it) for _ in range(6)) for _ in range(n_dec)]
        dtw, dts, dtb = next(it), next(it), next(it)
        post = [tuple(next(it) for _ in range(6)) for _ in range(n_post)]
        fw, fs, fb = next(it), next(it), next(it)
        o_ref = next(it)

        r = r_ref[0]                                            # (h, w*hid) f32
        t = r
        for (w1, w2, s1, b1, s2, b2) in dec:
            t = _resblock(t, w1[...], w2[...], s1[...], b1[...], s2[...], b2[...],
                          h, w, hid)
        if n_dec:
            t = t + r                                           # outer skip (torch)

        # ConvTranspose2d(hid, Cin, k=3, s=3) + BN: matmul + interleaved row scatter
        d_all = jnp.dot(t.astype(jnp.bfloat16), dtw[...],
                        preferred_element_type=jnp.float32)     # (h, 3*W*Cin)
        big = _row_put(d_all[:, 0:WCi], H, 0)
        big = big + _row_put(d_all[:, WCi:2 * WCi], H, 1)
        big = big + _row_put(d_all[:, 2 * WCi:3 * WCi], H, 2)
        big = big * dts[...] + dtb[...]                         # (H, W*Cin)

        u = big
        for (w1, w2, s1, b1, s2, b2) in post:
            u = _resblock(u, w1[...], w2[...], s1[...], b1[...], s2[...], b2[...],
                          H, W, Cin)
        if n_post:
            u = u + big                                         # outer skip (torch)

        # final layer: conv + BN + tanh
        taps = _conv3x3_taps(u, H, W, Cin)
        o_ref[0] = jnp.tanh(
            jnp.dot(taps, fw[...], preferred_element_type=jnp.float32)
            * fs[...] + fb[...])
    return kernel


def _make_vq_kernel(commitment_cost, M, D, K):
    inv_md = 1.0 / float(M * D)
    inv_m = 1.0 / float(M)

    def kernel(z_ref, e_ref, esq_ref, pw_ref, pb_ref, r_ref, loss_ref, perp_ref):
        x = z_ref[...]                                          # (M, D) f32
        e = e_ref[...]                                          # (K, D) f32
        xe = jax.lax.dot_general(x, e, (((1,), (1,)), ((), ())),
                                 preferred_element_type=jnp.float32)   # (M, K)
        # ||x||^2 omitted: constant per row -> argmin-invariant.
        score = esq_ref[...] - 2.0 * xe
        lane = jax.lax.broadcasted_iota(jnp.int32, (M, K), 1)
        smin = jnp.min(score, axis=1, keepdims=True)
        idx = jnp.min(jnp.where(score <= smin, lane, K), axis=1, keepdims=True)
        onehot = (lane == idx).astype(jnp.float32)              # (M, K)
        q = jnp.dot(onehot, e, preferred_element_type=jnp.float32)      # (M, D)

        diff = q - x
        sse = jnp.sum(jnp.sum(diff * diff, axis=1, keepdims=True),
                      axis=0, keepdims=True)                    # (1, 1)
        loss_ref[...] = (1.0 + commitment_cost) * sse * inv_md
        avg = jnp.sum(onehot, axis=0, keepdims=True) * inv_m    # (1, K)
        ent = -jnp.sum(avg * jnp.log(avg + 1e-10), axis=1, keepdims=True)
        perp_ref[...] = jnp.exp(ent)

        # fused post-VQ 1x1 conv (straight-through forward value == q)
        r_ref[...] = (jnp.dot(q, pw_ref[...], preferred_element_type=jnp.float32)
                      + pb_ref[...])
    return kernel


# ---------------------------------------------------------------------------
# Parameter construction (host side)
# ---------------------------------------------------------------------------
def _fold_bn(gamma, beta, mean, var, conv_bias=None):
    scale = gamma / jnp.sqrt(var + _BN_EPS)
    bias = beta - mean * scale
    if conv_bias is not None:
        bias = bias + conv_bias * scale
    return scale, bias


def _conv_w(key, cout, cin, kh, kw):
    bound = 1.0 / math.sqrt(cin * kh * kw)
    return jax.random.uniform(key, (cout, cin, kh, kw), jnp.float32, -bound, bound)


def _vec(key, n, bound):
    return jax.random.uniform(key, (n,), jnp.float32, -bound, bound)


def _bn_params(key, c):
    k1, k2, k3, k4 = jax.random.split(key, 4)
    gamma = jax.random.uniform(k1, (c,), jnp.float32, 0.5, 1.5)
    beta = jax.random.uniform(k2, (c,), jnp.float32, -0.1, 0.1)
    mean = jax.random.uniform(k3, (c,), jnp.float32, -0.1, 0.1)
    var = jax.random.uniform(k4, (c,), jnp.float32, 0.5, 1.5)
    return gamma, beta, mean, var


def _tile_w(v, Wsp):
    return jnp.tile(v, Wsp).reshape(1, -1).astype(jnp.float32)


def _conv3x3_catweight(w, Wsp):
    """(cout, cin, 3, 3) -> (9*Wsp*cin, Wsp*cout) bf16, rows tap-major (kh, kw)."""
    eye = jnp.eye(Wsp, dtype=jnp.float32)
    taps = [jnp.kron(eye, w[:, :, kh, kw].T) for kh in range(3) for kw in range(3)]
    return jnp.concatenate(taps, axis=0).astype(jnp.bfloat16)


def _conv_s3_catweight(w, w_small):
    """Conv2d(k=3, s=3) weight (cout, cin, 3, 3) -> (3*W*cin, w_small*cout) bf16."""
    cout, cin = w.shape[0], w.shape[1]
    eye = jnp.eye(w_small, dtype=jnp.float32)
    blocks = []
    for kh in range(3):
        blk = w[:, :, kh, :].transpose(2, 1, 0).reshape(3 * cin, cout)   # (3*cin, cout)
        blocks.append(jnp.kron(eye, blk))                                # (W*cin, w*cout)
    return jnp.concatenate(blocks, axis=0).astype(jnp.bfloat16)


def _convT_s3_catweight(wt, w_small):
    """ConvTranspose2d(k=3, s=3) weight (cin, cout, 3, 3) -> (w_small*cin, 3*W*cout)."""
    cin, cout = wt.shape[0], wt.shape[1]
    eye = jnp.eye(w_small, dtype=jnp.float32)
    blocks = []
    for kh in range(3):
        blk = wt[:, :, kh, :].transpose(0, 2, 1).reshape(cin, 3 * cout)  # (cin, 3*cout)
        blocks.append(jnp.kron(eye, blk))                                # (w*cin, W*cout)
    return jnp.concatenate(blocks, axis=1).astype(jnp.bfloat16)


def _make_res_block(key, channels, Wsp):
    k = jax.random.split(key, 4)
    w1 = _conv_w(k[0], channels, channels, 3, 3)
    s1, b1 = _fold_bn(*_bn_params(k[1], channels))
    w2 = _conv_w(k[2], channels, channels, 3, 3)
    s2, b2 = _fold_bn(*_bn_params(k[3], channels))
    return dict(w1=_conv3x3_catweight(w1, Wsp), w2=_conv3x3_catweight(w2, Wsp),
                s1=_tile_w(s1, Wsp), b1=_tile_w(b1, Wsp),
                s2=_tile_w(s2, Wsp), b2=_tile_w(b2, Wsp))


# ---------------------------------------------------------------------------
# Model
# ---------------------------------------------------------------------------
class LayerVQVAEresC10Pallas:
    def __init__(self, in_channels, embedding_dim, num_embeddings, commitment_cost,
                 decay=0.0, hidden_dims=None, pre_interm_layers=1, interm_layers=1,
                 input_size=12, key=None):
        # TODO(synk): VectorQuantizerEMA (decay>0) codebook updates and training-mode
        #             BatchNorm are training-only behaviour; eval-mode forward only.
        assert decay == 0.0
        assert input_size % 3 == 0
        if hidden_dims is None:
            hidden_dims = [256]
        hid = hidden_dims[0]
        self.in_channels = in_channels
        self.embedding_dim = embedding_dim
        self.num_embeddings = num_embeddings
        self.commitment_cost = commitment_cost
        self.hidden = hid
        self.input_size = input_size

        W_full = input_size
        W_small = input_size // 3
        keys = iter(jax.random.split(key, 64))

        # residual blocks (weights stored bf16, BN folded into scale/bias rows)
        self.pre_blocks = [_make_res_block(next(keys), in_channels, W_full)
                           for _ in range(pre_interm_layers)]
        self.post_blocks = [_make_res_block(next(keys), in_channels, W_full)
                            for _ in range(pre_interm_layers)]
        self.enc_blocks = [_make_res_block(next(keys), hid, W_small)
                           for _ in range(interm_layers)]
        self.dec_blocks = [_make_res_block(next(keys), hid, W_small)
                           for _ in range(interm_layers)]

        # embedding layer: Conv2d(in, hid, k=3, s=3) + BN
        w = _conv_w(next(keys), hid, in_channels, 3, 3)
        b = _vec(next(keys), hid, 1.0 / math.sqrt(in_channels * 9))
        s, bb = _fold_bn(*_bn_params(next(keys), hid), conv_bias=b)
        self.emb_w = _conv_s3_catweight(w, W_small)          # (3*W*Cin, w*hid) bf16
        self.emb_s = _tile_w(s, W_small)
        self.emb_b = _tile_w(bb, W_small)

        # pre-VQ conv: Conv2d(hid, D, 3, s=1, p=1) with bias, no BN
        w = _conv_w(next(keys), embedding_dim, hid, 3, 3)
        b = _vec(next(keys), embedding_dim, 1.0 / math.sqrt(hid * 9))
        self.prevq_w = _conv3x3_catweight(w, W_small)        # (9*w*hid, w*D) bf16
        self.prevq_b = _tile_w(b, W_small)

        # codebook (nn.Embedding init uniform(-1/K, 1/K)) + precomputed row norms
        self.codebook = jax.random.uniform(
            next(keys), (num_embeddings, embedding_dim), jnp.float32,
            -1.0 / num_embeddings, 1.0 / num_embeddings)
        self.esq = jnp.sum(self.codebook * self.codebook, axis=1).reshape(
            1, num_embeddings)

        # post-VQ conv: Conv2d(D, hid, 1) with bias
        w = _conv_w(next(keys), hid, embedding_dim, 1, 1)
        self.postvq_w = w.reshape(hid, embedding_dim).T      # (D, hid) f32
        self.postvq_b = _vec(next(keys), hid,
                             1.0 / math.sqrt(embedding_dim)).reshape(1, hid)

        # decoder embedding: ConvTranspose2d(hid, in, k=3, s=3) + BN
        bound = 1.0 / math.sqrt(in_channels * 9)
        wt = jax.random.uniform(next(keys), (hid, in_channels, 3, 3), jnp.float32,
                                -bound, bound)
        bt = _vec(next(keys), in_channels, bound)
        s, bb = _fold_bn(*_bn_params(next(keys), in_channels), conv_bias=bt)
        self.dect_w = _convT_s3_catweight(wt, W_small)       # (w*hid, 3*W*Cin) bf16
        self.dect_s = _tile_w(s, W_full)
        self.dect_b = _tile_w(bb, W_full)

        # final layer: Conv2d(in, in, 3, s=1, p=1) + BN + tanh
        w = _conv_w(next(keys), in_channels, in_channels, 3, 3)
        b = _vec(next(keys), in_channels, 1.0 / math.sqrt(in_channels * 9))
        s, bb = _fold_bn(*_bn_params(next(keys), in_channels), conv_bias=b)
        self.final_w = _conv3x3_catweight(w, W_full)
        self.final_s = _tile_w(s, W_full)
        self.final_b = _tile_w(bb, W_full)

    # -------------------- fused encode kernel --------------------
    def _encode(self, x3d):
        N = x3d.shape[0]
        H = W = self.input_size
        Cin, hid, D = self.in_channels, self.hidden, self.embedding_dim
        h, w = H // 3, W // 3

        operands = [x3d]
        in_specs = [pl.BlockSpec((1, H, W * Cin), lambda n: (n, 0, 0))]

        def full(a):
            operands.append(a)
            in_specs.append(pl.BlockSpec(a.shape, lambda n: (0, 0)))

        for blk in self.pre_blocks:
            for nm in ("w1", "w2", "s1", "b1", "s2", "b2"):
                full(blk[nm])
        full(self.emb_w); full(self.emb_s); full(self.emb_b)
        for blk in self.enc_blocks:
            for nm in ("w1", "w2", "s1", "b1", "s2", "b2"):
                full(blk[nm])
        full(self.prevq_w); full(self.prevq_b)

        return pl.pallas_call(
            _make_encode_kernel(H, W, Cin, hid, D,
                                len(self.pre_blocks), len(self.enc_blocks)),
            out_shape=jax.ShapeDtypeStruct((N, h, w * D), jnp.float32),
            grid=(N,),
            in_specs=in_specs,
            out_specs=pl.BlockSpec((1, h, w * D), lambda n: (n, 0, 0)),
            compiler_params=pltpu.CompilerParams(
                dimension_semantics=("parallel",)),
        )(*operands)

    # -------------------- fused VQ + post-VQ 1x1 conv --------------------
    def _vq_postvq(self, z_flat):
        M, D = z_flat.shape
        K, hid = self.num_embeddings, self.hidden
        return pl.pallas_call(
            _make_vq_kernel(self.commitment_cost, M, D, K),
            out_shape=(jax.ShapeDtypeStruct((M, hid), jnp.float32),
                       jax.ShapeDtypeStruct((1, 1), jnp.float32),
                       jax.ShapeDtypeStruct((1, 1), jnp.float32)),
            grid=(1,),
            in_specs=[pl.BlockSpec((M, D), lambda i: (0, 0)),
                      pl.BlockSpec((K, D), lambda i: (0, 0)),
                      pl.BlockSpec((1, K), lambda i: (0, 0)),
                      pl.BlockSpec((D, hid), lambda i: (0, 0)),
                      pl.BlockSpec((1, hid), lambda i: (0, 0))],
            out_specs=(pl.BlockSpec((M, hid), lambda i: (0, 0)),
                       pl.BlockSpec((1, 1), lambda i: (0, 0)),
                       pl.BlockSpec((1, 1), lambda i: (0, 0))),
            compiler_params=pltpu.CompilerParams(
                dimension_semantics=("arbitrary",)),
        )(z_flat, self.codebook, self.esq, self.postvq_w, self.postvq_b)

    # -------------------- fused decode kernel --------------------
    def _decode(self, r3d):
        N = r3d.shape[0]
        H = W = self.input_size
        Cin, hid = self.in_channels, self.hidden
        h, w = H // 3, W // 3

        operands = [r3d]
        in_specs = [pl.BlockSpec((1, h, w * hid), lambda n: (n, 0, 0))]

        def full(a):
            operands.append(a)
            in_specs.append(pl.BlockSpec(a.shape, lambda n: (0, 0)))

        for blk in self.dec_blocks:
            for nm in ("w1", "w2", "s1", "b1", "s2", "b2"):
                full(blk[nm])
        full(self.dect_w); full(self.dect_s); full(self.dect_b)
        for blk in self.post_blocks:
            for nm in ("w1", "w2", "s1", "b1", "s2", "b2"):
                full(blk[nm])
        full(self.final_w); full(self.final_s); full(self.final_b)

        return pl.pallas_call(
            _make_decode_kernel(H, W, Cin, hid,
                                len(self.dec_blocks), len(self.post_blocks)),
            out_shape=jax.ShapeDtypeStruct((N, H, W * Cin), jnp.float32),
            grid=(N,),
            in_specs=in_specs,
            out_specs=pl.BlockSpec((1, H, W * Cin), lambda n: (n, 0, 0)),
            compiler_params=pltpu.CompilerParams(
                dimension_semantics=("parallel",)),
        )(*operands)

    # -------------------- forward --------------------
    def __call__(self, x_nchw):
        N, C, H, W = x_nchw.shape
        assert H == self.input_size and W == self.input_size
        x_nhwc = jnp.transpose(x_nchw, (0, 2, 3, 1)).astype(jnp.float32)
        x3d = x_nhwc.reshape(N, H, W * C)

        z = self._encode(x3d)                                   # (N, h, w*D)
        h, w = H // 3, W // 3
        z_flat = z.reshape(N * h * w, self.embedding_dim)
        r_flat, loss, perp = self._vq_postvq(z_flat)            # (N*h*w, hid), (1,1), (1,1)
        r3d = r_flat.reshape(N, h, w * self.hidden)
        recon3d = self._decode(r3d)                             # (N, H, W*C)

        recon = recon3d.reshape(N, H, W, C).transpose(0, 3, 1, 2)
        return loss[0, 0], recon, perp[0, 0]


# ---------------------------------------------------------------------------
if __name__ == "__main__":
    key = jax.random.PRNGKey(0)
    k_model, k_x = jax.random.split(key)

    model = LayerVQVAEresC10Pallas(
        in_channels=4, embedding_dim=8, num_embeddings=16, commitment_cost=0.25,
        decay=0.0, hidden_dims=[32], pre_interm_layers=1, interm_layers=1,
        input_size=12, key=k_model)

    # PyTorch-style NCHW input; spatial size must equal input_size (divisible by 3)
    x = jax.random.normal(k_x, (2, 4, 12, 12), jnp.float32)

    fwd = jax.jit(model.__call__)
    vq_loss, recon, perplexity = fwd(x)
    jax.block_until_ready((vq_loss, recon, perplexity))

    assert recon.shape == x.shape
    assert vq_loss.shape == () and perplexity.shape == ()
    assert bool(jnp.all(jnp.isfinite(recon)))
    assert bool(jnp.isfinite(vq_loss)) and bool(jnp.isfinite(perplexity))
    print("KERNEL_OK")
</pallas_src>

<mosaic_0001>
module attributes {stable_mosaic.version = 11 : i64} {
  func.func @kernel(%arg0: i32, %arg1: memref<1x12x48xf32, #tpu.memory_space<vmem>>, %arg2: memref<432x48xbf16, #tpu.memory_space<vmem>>, %arg3: memref<432x48xbf16, #tpu.memory_space<vmem>>, %arg4: memref<1x48xf32, #tpu.memory_space<vmem>>, %arg5: memref<1x48xf32, #tpu.memory_space<vmem>>, %arg6: memref<1x48xf32, #tpu.memory_space<vmem>>, %arg7: memref<1x48xf32, #tpu.memory_space<vmem>>, %arg8: memref<144x128xbf16, #tpu.memory_space<vmem>>, %arg9: memref<1x128xf32, #tpu.memory_space<vmem>>, %arg10: memref<1x128xf32, #tpu.memory_space<vmem>>, %arg11: memref<1152x128xbf16, #tpu.memory_space<vmem>>, %arg12: memref<1152x128xbf16, #tpu.memory_space<vmem>>, %arg13: memref<1x128xf32, #tpu.memory_space<vmem>>, %arg14: memref<1x128xf32, #tpu.memory_space<vmem>>, %arg15: memref<1x128xf32, #tpu.memory_space<vmem>>, %arg16: memref<1x128xf32, #tpu.memory_space<vmem>>, %arg17: memref<1152x32xbf16, #tpu.memory_space<vmem>>, %arg18: memref<1x32xf32, #tpu.memory_space<vmem>>, %arg19: memref<1x4x32xf32, #tpu.memory_space<vmem>>) attributes {dimension_semantics = [#tpu.dimension_semantics<parallel>], iteration_bounds = array<i64: 2>, scalar_prefetch = 0 : i64, scratch_operands = 0 : i64, tpu.core_type = #tpu.core_type<tc>, window_params = [{transform_indices = @transform_0, window_bounds = array<i64: 1, 12, 48>}, {pipeline_mode = #tpu.pipeline_mode<synchronous>, transform_indices = @transform_1, window_bounds = array<i64: 432, 48>}, {pipeline_mode = #tpu.pipeline_mode<synchronous>, transform_indices = @transform_2, window_bounds = array<i64: 432, 48>}, {pipeline_mode = #tpu.pipeline_mode<synchronous>, transform_indices = @transform_3, window_bounds = array<i64: 1, 48>}, {pipeline_mode = #tpu.pipeline_mode<synchronous>, transform_indices = @transform_4, window_bounds = array<i64: 1, 48>}, {pipeline_mode = #tpu.pipeline_mode<synchronous>, transform_indices = @transform_5, window_bounds = array<i64: 1, 48>}, {pipeline_mode = #tpu.pipeline_mode<synchronous>, transform_indices = @transform_6, window_bounds = array<i64: 1, 48>}, {pipeline_mode = #tpu.pipeline_mode<synchronous>, transform_indices = @transform_7, window_bounds = array<i64: 144, 128>}, {pipeline_mode = #tpu.pipeline_mode<synchronous>, transform_indices = @transform_8, window_bounds = array<i64: 1, 128>}, {pipeline_mode = #tpu.pipeline_mode<synchronous>, transform_indices = @transform_9, window_bounds = array<i64: 1, 128>}, {pipeline_mode = #tpu.pipeline_mode<synchronous>, transform_indices = @transform_10, window_bounds = array<i64: 1152, 128>}, {pipeline_mode = #tpu.pipeline_mode<synchronous>, transform_indices = @transform_11, window_bounds = array<i64: 1152, 128>}, {pipeline_mode = #tpu.pipeline_mode<synchronous>, transform_indices = @transform_12, window_bounds = array<i64: 1, 128>}, {pipeline_mode = #tpu.pipeline_mode<synchronous>, transform_indices = @transform_13, window_bounds = array<i64: 1, 128>}, {pipeline_mode = #tpu.pipeline_mode<synchronous>, transform_indices = @transform_14, window_bounds = array<i64: 1, 128>}, {pipeline_mode = #tpu.pipeline_mode<synchronous>, transform_indices = @transform_15, window_bounds = array<i64: 1, 128>}, {pipeline_mode = #tpu.pipeline_mode<synchronous>, transform_indices = @transform_16, window_bounds = array<i64: 1152, 32>}, {pipeline_mode = #tpu.pipeline_mode<synchronous>, transform_indices = @transform_17, window_bounds = array<i64: 1, 32>}, {transform_indices = @transform_18, window_bounds = array<i64: 1, 4, 32>}]} {
    %c0 = arith.constant 0 : index
    %c0_0 = arith.constant 0 : index
    %c0_1 = arith.constant 0 : index
    %0 = vector.load %arg1[%c0, %c0_0, %c0_1] : memref<1x12x48xf32, #tpu.memory_space<vmem>>, vector<1x12x48xf32>
    %1 = vector.shape_cast %0 : vector<1x12x48xf32> to vector<12x48xf32>
    %c0_2 = arith.constant 0 : index
    %c0_3 = arith.constant 0 : index
    %2 = vector.load %arg2[%c0_2, %c0_3] : memref<432x48xbf16, #tpu.memory_space<vmem>>, vector<432x48xbf16>
    %c0_4 = arith.constant 0 : index
    %c0_5 = arith.constant 0 : index
    %3 = vector.load %arg3[%c0_4, %c0_5] : memref<432x48xbf16, #tpu.memory_space<vmem>>, vector<432x48xbf16>
    %c0_6 = arith.constant 0 : index
    %c0_7 = arith.constant 0 : index
    %4 = vector.load %arg4[%c0_6, %c0_7] : memref<1x48xf32, #tpu.memory_space<vmem>>, vector<1x48xf32>
    %c0_8 = arith.constant 0 : index
    %c0_9 = arith.constant 0 : index
    %5 = vector.load %arg5[%c0_8, %c0_9] : memref<1x48xf32, #tpu.memory_space<vmem>>, vector<1x48xf32>
    %c0_10 = arith.constant 0 : index
    %c0_11 = arith.constant 0 : index
    %6 = vector.load %arg6[%c0_10, %c0_11] : memref<1x48xf32, #tpu.memory_space<vmem>>, vector<1x48xf32>
    %c0_12 = arith.constant 0 : index
    %c0_13 = arith.constant 0 : index
    %7 = vector.load %arg7[%c0_12, %c0_13] : memref<1x48xf32, #tpu.memory_space<vmem>>, vector<1x48xf32>
    %cst = arith.constant 0.000000e+00 : f32
    %8 = vector.broadcast %cst : f32 to vector<12x4xf32>
    %9 = tpu.concatenate %8, %1, %8 in 1 : vector<12x4xf32>, vector<12x48xf32>, vector<12x4xf32> -> vector<12x56xf32>
    %cst_14 = arith.constant 0.000000e+00 : f32
    %10 = vector.broadcast %cst_14 : f32 to vector<1x56xf32>
    %11 = tpu.concatenate %10, %9, %10 in 0 : vector<1x56xf32>, vector<12x56xf32>, vector<1x56xf32> -> vector<14x56xf32>
    %12 = arith.truncf %11 : vector<14x56xf32> to vector<14x56xbf16>
    %13 = vector.extract_strided_slice %12 {offsets = [0, 0], sizes = [12, 48], strides = [1, 1]} : vector<14x56xbf16> to vector<12x48xbf16>
    %14 = vector.extract_strided_slice %12 {offsets = [0, 4], sizes = [12, 48], strides = [1, 1]} : vector<14x56xbf16> to vector<12x48xbf16>
    %15 = vector.extract_strided_slice %12 {offsets = [0, 8], sizes = [12, 48], strides = [1, 1]} : vector<14x56xbf16> to vector<12x48xbf16>
    %16 = vector.extract_strided_slice %12 {offsets = [1, 0], sizes = [12, 48], strides = [1, 1]} : vector<14x56xbf16> to vector<12x48xbf16>
    %17 = vector.extract_strided_slice %12 {offsets = [1, 4], sizes = [12, 48], strides = [1, 1]} : vector<14x56xbf16> to vector<12x48xbf16>
    %18 = vector.extract_strided_slice %12 {offsets = [1, 8], sizes = [12, 48], strides = [1, 1]} : vector<14x56xbf16> to vector<12x48xbf16>
    %19 = vector.extract_strided_slice %12 {offsets = [2, 0], sizes = [12, 48], strides = [1, 1]} : vector<14x56xbf16> to vector<12x48xbf16>
    %20 = vector.extract_strided_slice %12 {offsets = [2, 4], sizes = [12, 48], strides = [1, 1]} : vector<14x56xbf16> to vector<12x48xbf16>
    %21 = vector.extract_strided_slice %12 {offsets = [2, 8], sizes = [12, 48], strides = [1, 1]} : vector<14x56xbf16> to vector<12x48xbf16>
    %22 = tpu.concatenate %13, %14, %15, %16, %17, %18, %19, %20, %21 in 1 : vector<12x48xbf16>, vector<12x48xbf16>, vector<12x48xbf16>, vector<12x48xbf16>, vector<12x48xbf16>, vector<12x48xbf16>, vector<12x48xbf16>, vector<12x48xbf16>, vector<12x48xbf16> -> vector<12x432xbf16>
    %cst_15 = arith.constant dense<0.000000e+00> : vector<12x48xf32>
    %23 = tpu.matmul %22, %2, %cst_15 {dimension_numbers = #tpu.dot_dimension_numbers<[1], [0], [0], [1], [0, 0, 1, 1], [], []>} : vector<12x432xbf16>, vector<432x48xbf16>, vector<12x48xf32> -> vector<12x48xf32>
    %24 = vector.broadcast %4 : vector<1x48xf32> to vector<12x48xf32>
    %25 = arith.mulf %23, %24 : vector<12x48xf32>
    %26 = vector.broadcast %5 : vector<1x48xf32> to vector<12x48xf32>
    %27 = arith.addf %25, %26 : vector<12x48xf32>
    %cst_16 = arith.constant 0.000000e+00 : f32
    %28 = vector.broadcast %cst_16 : f32 to vector<12x48xf32>
    %29 = arith.maximumf %27, %28 : vector<12x48xf32>
    %cst_17 = arith.constant 0.000000e+00 : f32
    %30 = vector.broadcast %cst_17 : f32 to vector<12x4xf32>
    %31 = tpu.concatenate %30, %29, %30 in 1 : vector<12x4xf32>, vector<12x48xf32>, vector<12x4xf32> -> vector<12x56xf32>
    %cst_18 = arith.constant 0.000000e+00 : f32
    %32 = vector.broadcast %cst_18 : f32 to vector<1x56xf32>
    %33 = tpu.concatenate %32, %31, %32 in 0 : vector<1x56xf32>, vector<12x56xf32>, vector<1x56xf32> -> vector<14x56xf32>
    %34 = arith.truncf %33 : vector<14x56xf32> to vector<14x56xbf16>
    %35 = vector.extract_strided_slice %34 {offsets = [0, 0], sizes = [12, 48], strides = [1, 1]} : vector<14x56xbf16> to vector<12x48xbf16>
    %36 = vector.extract_strided_slice %34 {offsets = [0, 4], sizes = [12, 48], strides = [1, 1]} : vector<14x56xbf16> to vector<12x48xbf16>
    %37 = vector.extract_strided_slice %34 {offsets = [0, 8], sizes = [12, 48], strides = [1, 1]} : vector<14x56xbf16> to vector<12x48xbf16>
    %38 = vector.extract_strided_slice %34 {offsets = [1, 0], sizes = [12, 48], strides = [1, 1]} : vector<14x56xbf16> to vector<12x48xbf16>
    %39 = vector.extract_strided_slice %34 {offsets = [1, 4], sizes = [12, 48], strides = [1, 1]} : vector<14x56xbf16> to vector<12x48xbf16>
    %40 = vector.extract_strided_slice %34 {offsets = [1, 8], sizes = [12, 48], strides = [1, 1]} : vector<14x56xbf16> to vector<12x48xbf16>
    %41 = vector.extract_strided_slice %34 {offsets = [2, 0], sizes = [12, 48], strides = [1, 1]} : vector<14x56xbf16> to vector<12x48xbf16>
    %42 = vector.extract_strided_slice %34 {offsets = [2, 4], sizes = [12, 48], strides = [1, 1]} : vector<14x56xbf16> to vector<12x48xbf16>
    %43 = vector.extract_strided_slice %34 {offsets = [2, 8], sizes = [12, 48], strides = [1, 1]} : vector<14x56xbf16> to vector<12x48xbf16>
    %44 = tpu.concatenate %35, %36, %37, %38, %39, %40, %41, %42, %43 in 1 : vector<12x48xbf16>, vector<12x48xbf16>, vector<12x48xbf16>, vector<12x48xbf16>, vector<12x48xbf16>, vector<12x48xbf16>, vector<12x48xbf16>, vector<12x48xbf16>, vector<12x48xbf16> -> vector<12x432xbf16>
    %cst_19 = arith.constant dense<0.000000e+00> : vector<12x48xf32>
    %45 = tpu.matmul %44, %3, %cst_19 {dimension_numbers = #tpu.dot_dimension_numbers<[1], [0], [0], [1], [0, 0, 1, 1], [], []>} : vector<12x432xbf16>, vector<432x48xbf16>, vector<12x48xf32> -> vector<12x48xf32>
    %46 = vector.broadcast %6 : vector<1x48xf32> to vector<12x48xf32>
    %47 = arith.mulf %45, %46 : vector<12x48xf32>
    %48 = vector.broadcast %7 : vector<1x48xf32> to vector<12x48xf32>
    %49 = arith.addf %47, %48 : vector<12x48xf32>
    %50 = arith.addf %49, %1 : vector<12x48xf32>
    %cst_20 = arith.constant 0.000000e+00 : f32
    %51 = vector.broadcast %cst_20 : f32 to vector<12x48xf32>
    %52 = arith.maximumf %50, %51 : vector<12x48xf32>
    %53 = arith.addf %52, %1 : vector<12x48xf32>
    %54 = tpu.iota {dimensions = array<i32: 0>} : vector<4x12xi32>
    %55 = tpu.iota {dimensions = array<i32: 1>} : vector<4x12xi32>
    %c3_i32 = arith.constant 3 : i32
    %56 = vector.broadcast %c3_i32 : i32 to vector<4x12xi32>
    %57 = arith.muli %56, %54 : vector<4x12xi32>
    %c0_i32 = arith.constant 0 : i32
    %58 = vector.broadcast %c0_i32 : i32 to vector<4x12xi32>
    %59 = arith.addi %57, %58 : vector<4x12xi32>
    %60 = arith.cmpi eq, %55, %59 : vector<4x12xi32>
    %61 = arith.extui %60 : vector<4x12xi1> to vector<4x12xi32>
    %62 = arith.sitofp %61 : vector<4x12xi32> to vector<4x12xf32>
    %cst_21 = arith.constant dense<0.000000e+00> : vector<4x48xf32>
    %63 = tpu.matmul %62, %53, %cst_21 {dimension_numbers = #tpu.dot_dimension_numbers<[1], [0], [0], [1], [0, 0, 1, 1], [], []>} : vector<4x12xf32>, vector<12x48xf32>, vector<4x48xf32> -> vector<4x48xf32>
    %64 = tpu.iota {dimensions = array<i32: 0>} : vector<4x12xi32>
    %65 = tpu.iota {dimensions = array<i32: 1>} : vector<4x12xi32>
    %c3_i32_22 = arith.constant 3 : i32
    %66 = vector.broadcast %c3_i32_22 : i32 to vector<4x12xi32>
    %67 = arith.muli %66, %64 : vector<4x12xi32>
    %c1_i32 = arith.constant 1 : i32
    %68 = vector.broadcast %c1_i32 : i32 to vector<4x12xi32>
    %69 = arith.addi %67, %68 : vector<4x12xi32>
    %70 = arith.cmpi eq, %65, %69 : vector<4x12xi32>
    %71 = arith.extui %70 : vector<4x12xi1> to vector<4x12xi32>
    %72 = arith.sitofp %71 : vector<4x12xi32> to vector<4x12xf32>
    %cst_23 = arith.constant dense<0.000000e+00> : vector<4x48xf32>
    %73 = tpu.matmul %72, %53, %cst_23 {dimension_numbers = #tpu.dot_dimension_numbers<[1], [0], [0], [1], [0, 0, 1, 1], [], []>} : vector<4x12xf32>, vector<12x48xf32>, vector<4x48xf32> -> vector<4x48xf32>
    %74 = tpu.iota {dimensions = array<i32: 0>} : vector<4x12xi32>
    %75 = tpu.iota {dimensions = array<i32: 1>} : vector<4x12xi32>
    %c3_i32_24 = arith.constant 3 : i32
    %76 = vector.broadcast %c3_i32_24 : i32 to vector<4x12xi32>
    %77 = arith.muli %76, %74 : vector<4x12xi32>
    %c2_i32 = arith.constant 2 : i32
    %78 = vector.broadcast %c2_i32 : i32 to vector<4x12xi32>
    %79 = arith.addi %77, %78 : vector<4x12xi32>
    %80 = arith.cmpi eq, %75, %79 : vector<4x12xi32>
    %81 = arith.extui %80 : vector<4x12xi1> to vector<4x12xi32>
    %82 = arith.sitofp %81 : vector<4x12xi32> to vector<4x12xf32>
    %cst_25 = arith.constant dense<0.000000e+00> : vector<4x48xf32>
    %83 = tpu.matmul %82, %53, %cst_25 {dimension_numbers = #tpu.dot_dimension_numbers<[1], [0], [0], [1], [0, 0, 1, 1], [], []>} : vector<4x12xf32>, vector<12x48xf32>, vector<4x48xf32> -> vector<4x48xf32>
    %84 = tpu.concatenate %63, %73, %83 in 1 : vector<4x48xf32>, vector<4x48xf32>, vector<4x48xf32> -> vector<4x144xf32>
    %85 = arith.truncf %84 : vector<4x144xf32> to vector<4x144xbf16>
    %c0_26 = arith.constant 0 : index
    %c0_27 = arith.constant 0 : index
    %86 = vector.load %arg8[%c0_26, %c0_27] : memref<144x128xbf16, #tpu.memory_space<vmem>>, vector<144x128xbf16>
    %cst_28 = arith.constant dense<0.000000e+00> : vector<4x128xf32>
    %87 = tpu.matmul %85, %86, %cst_28 {dimension_numbers = #tpu.dot_dimension_numbers<[1], [0], [0], [1], [0, 0, 1, 1], [], []>} : vector<4x144xbf16>, vector<144x128xbf16>, vector<4x128xf32> -> vector<4x128xf32>
    %c0_29 = arith.constant 0 : index
    %c0_30 = arith.constant 0 : index
    %88 = vector.load %arg9[%c0_29, %c0_30] : memref<1x128xf32, #tpu.memory_space<vmem>>, vector<1x128xf32>
    %89 = vector.broadcast %88 : vector<1x128xf32> to vector<4x128xf32>
    %90 = arith.mulf %87, %89 : vector<4x128xf32>
    %c0_31 = arith.constant 0 : index
    %c0_32 = arith.constant 0 : index
    %91 = vector.load %arg10[%c0_31, %c0_32] : memref<1x128xf32, #tpu.memory_space<vmem>>, vector<1x128xf32>
    %92 = vector.broadcast %91 : vector<1x128xf32> to vector<4x128xf32>
    %93 = arith.addf %90, %92 : vector<4x128xf32>
    %c0_33 = arith.constant 0 : index
    %c0_34 = arith.constant 0 : index
    %94 = vector.load %arg11[%c0_33, %c0_34] : memref<1152x128xbf16, #tpu.memory_space<vmem>>, vector<1152x128xbf16>
    %c0_35 = arith.constant 0 : index
    %c0_36 = arith.constant 0 : index
    %95 = vector.load %arg12[%c0_35, %c0_36] : memref<1152x128xbf16, #tpu.memory_space<vmem>>, vector<1152x128xbf16>
    %c0_37 = arith.constant 0 : index
    %c0_38 = arith.constant 0 : index
    %96 = vector.load %arg13[%c0_37, %c0_38] : memref<1x128xf32, #tpu.memory_space<vmem>>, vector<1x128xf32>
    %c0_39 = arith.constant 0 : index
    %c0_40 = arith.constant 0 : index
    %97 = vector.load %arg14[%c0_39, %c0_40] : memref<1x128xf32, #tpu.memory_space<vmem>>, vector<1x128xf32>
    %c0_41 = arith.constant 0 : index
    %c0_42 = arith.constant 0 : index
    %98 = vector.load %arg15[%c0_41, %c0_42] : memref<1x128xf32, #tpu.memory_space<vmem>>, vector<1x128xf32>
    %c0_43 = arith.constant 0 : index
    %c0_44 = arith.constant 0 : index
    %99 = vector.load %arg16[%c0_43, %c0_44] : memref<1x128xf32, #tpu.memory_space<vmem>>, vector<1x128xf32>
    %cst_45 = arith.constant 0.000000e+00 : f32
    %100 = vector.broadcast %cst_45 : f32 to vector<4x32xf32>
    %101 = tpu.concatenate %100, %93, %100 in 1 : vector<4x32xf32>, vector<4x128xf32>, vector<4x32xf32> -> vector<4x192xf32>
    %cst_46 = arith.constant 0.000000e+00 : f32
    %102 = vector.broadcast %cst_46 : f32 to vector<1x192xf32>
    %103 = tpu.concatenate %102, %101, %102 in 0 : vector<1x192xf32>, vector<4x192xf32>, vector<1x192xf32> -> vector<6x192xf32>
    %104 = arith.truncf %103 : vector<6x192xf32> to vector<6x192xbf16>
    %105 = vector.extract_strided_slice %104 {offsets = [0, 0], sizes = [4, 128], strides = [1, 1]} : vector<6x192xbf16> to vector<4x128xbf16>
    %106 = vector.extract_strided_slice %104 {offsets = [0, 32], sizes = [4, 128], strides = [1, 1]} : vector<6x192xbf16> to vector<4x128xbf16>
    %107 = vector.extract_strided_slice %104 {offsets = [0, 64], sizes = [4, 128], strides = [1, 1]} : vector<6x192xbf16> to vector<4x128xbf16>
    %108 = vector.extract_strided_slice %104 {offsets = [1, 0], sizes = [4, 128], strides = [1, 1]} : vector<6x192xbf16> to vector<4x128xbf16>
    %109 = vector.extract_strided_slice %104 {offsets = [1, 32], sizes = [4, 128], strides = [1, 1]} : vector<6x192xbf16> to vector<4x128xbf16>
    %110 = vector.extract_strided_slice %104 {offsets = [1, 64], sizes = [4, 128], strides = [1, 1]} : vector<6x192xbf16> to vector<4x128xbf16>
    %111 = vector.extract_strided_slice %104 {offsets = [2, 0], sizes = [4, 128], strides = [1, 1]} : vector<6x192xbf16> to vector<4x128xbf16>
    %112 = vector.extract_strided_slice %104 {offsets = [2, 32], sizes = [4, 128], strides = [1, 1]} : vector<6x192xbf16> to vector<4x128xbf16>
    %113 = vector.extract_strided_slice %104 {offsets = [2, 64], sizes = [4, 128], strides = [1, 1]} : vector<6x192xbf16> to vector<4x128xbf16>
    %114 = tpu.concatenate %105, %106, %107, %108, %109, %110, %111, %112, %113 in 1 : vector<4x128xbf16>, vector<4x128xbf16>, vector<4x128xbf16>, vector<4x128xbf16>, vector<4x128xbf16>, vector<4x128xbf16>, vector<4x128xbf16>, vector<4x128xbf16>, vector<4x128xbf16> -> vector<4x1152xbf16>
    %cst_47 = arith.constant dense<0.000000e+00> : vector<4x128xf32>
    %115 = tpu.matmul %114, %94, %cst_47 {dimension_numbers = #tpu.dot_dimension_numbers<[1], [0], [0], [1], [0, 0, 1, 1], [], []>} : vector<4x1152xbf16>, vector<1152x128xbf16>, vector<4x128xf32> -> vector<4x128xf32>
    %116 = vector.broadcast %96 : vector<1x128xf32> to vector<4x128xf32>
    %117 = arith.mulf %115, %116 : vector<4x128xf32>
    %118 = vector.broadcast %97 : vector<1x128xf32> to vector<4x128xf32>
    %119 = arith.addf %117, %118 : vector<4x128xf32>
    %cst_48 = arith.constant 0.000000e+00 : f32
    %120 = vector.broadcast %cst_48 : f32 to vector<4x128xf32>
    %121 = arith.maximumf %119, %120 : vector<4x128xf32>
    %cst_49 = arith.constant 0.000000e+00 : f32
    %122 = vector.broadcast %cst_49 : f32 to vector<4x32xf32>
    %123 = tpu.concatenate %122, %121, %122 in 1 : vector<4x32xf32>, vector<4x128xf32>, vector<4x32xf32> -> vector<4x192xf32>
    %cst_50 = arith.constant 0.000000e+00 : f32
    %124 = vector.broadcast %cst_50 : f32 to vector<1x192xf32>
    %125 = tpu.concatenate %124, %123, %124 in 0 : vector<1x192xf32>, vector<4x192xf32>, vector<1x192xf32> -> vector<6x192xf32>
    %126 = arith.truncf %125 : vector<6x192xf32> to vector<6x192xbf16>
    %127 = vector.extract_strided_slice %126 {offsets = [0, 0], sizes = [4, 128], strides = [1, 1]} : vector<6x192xbf16> to vector<4x128xbf16>
    %128 = vector.extract_strided_slice %126 {offsets = [0, 32], sizes = [4, 128], strides = [1, 1]} : vector<6x192xbf16> to vector<4x128xbf16>
    %129 = vector.extract_strided_slice %126 {offsets = [0, 64], sizes = [4, 128], strides = [1, 1]} : vector<6x192xbf16> to vector<4x128xbf16>
    %130 = vector.extract_strided_slice %126 {offsets = [1, 0], sizes = [4, 128], strides = [1, 1]} : vector<6x192xbf16> to vector<4x128xbf16>
    %131 = vector.extract_strided_slice %126 {offsets = [1, 32], sizes = [4, 128], strides = [1, 1]} : vector<6x192xbf16> to vector<4x128xbf16>
    %132 = vector.extract_strided_slice %126 {offsets = [1, 64], sizes = [4, 128], strides = [1, 1]} : vector<6x192xbf16> to vector<4x128xbf16>
    %133 = vector.extract_strided_slice %126 {offsets = [2, 0], sizes = [4, 128], strides = [1, 1]} : vector<6x192xbf16> to vector<4x128xbf16>
    %134 = vector.extract_strided_slice %126 {offsets = [2, 32], sizes = [4, 128], strides = [1, 1]} : vector<6x192xbf16> to vector<4x128xbf16>
    %135 = vector.extract_strided_slice %126 {offsets = [2, 64], sizes = [4, 128], strides = [1, 1]} : vector<6x192xbf16> to vector<4x128xbf16>
    %136 = tpu.concatenate %127, %128, %129, %130, %131, %132, %133, %134, %135 in 1 : vector<4x128xbf16>, vector<4x128xbf16>, vector<4x128xbf16>, vector<4x128xbf16>, vector<4x128xbf16>, vector<4x128xbf16>, vector<4x128xbf16>, vector<4x128xbf16>, vector<4x128xbf16> -> vector<4x1152xbf16>
    %cst_51 = arith.constant dense<0.000000e+00> : vector<4x128xf32>
    %137 = tpu.matmul %136, %95, %cst_51 {dimension_numbers = #tpu.dot_dimension_numbers<[1], [0], [0], [1], [0, 0, 1, 1], [], []>} : vector<4x1152xbf16>, vector<1152x128xbf16>, vector<4x128xf32> -> vector<4x128xf32>
    %138 = vector.broadcast %98 : vector<1x128xf32> to vector<4x128xf32>
    %139 = arith.mulf %137, %138 : vector<4x128xf32>
    %140 = vector.broadcast %99 : vector<1x128xf32> to vector<4x128xf32>
    %141 = arith.addf %139, %140 : vector<4x128xf32>
    %142 = arith.addf %141, %93 : vector<4x128xf32>
    %cst_52 = arith.constant 0.000000e+00 : f32
    %143 = vector.broadcast %cst_52 : f32 to vector<4x128xf32>
    %144 = arith.maximumf %142, %143 : vector<4x128xf32>
    %145 = arith.addf %144, %93 : vector<4x128xf32>
    %cst_53 = arith.constant 0.000000e+00 : f32
    %146 = vector.broadcast %cst_53 : f32 to vector<4x32xf32>
    %147 = tpu.concatenate %146, %145, %146 in 1 : vector<4x32xf32>, vector<4x128xf32>, vector<4x32xf32> -> vector<4x192xf32>
    %cst_54 = arith.constant 0.000000e+00 : f32
    %148 = vector.broadcast %cst_54 : f32 to vector<1x192xf32>
    %149 = tpu.concatenate %148, %147, %148 in 0 : vector<1x192xf32>, vector<4x192xf32>, vector<1x192xf32> -> vector<6x192xf32>
    %150 = arith.truncf %149 : vector<6x192xf32> to vector<6x192xbf16>
    %151 = vector.extract_strided_slice %150 {offsets = [0, 0], sizes = [4, 128], strides = [1, 1]} : vector<6x192xbf16> to vector<4x128xbf16>
    %152 = vector.extract_strided_slice %150 {offsets = [0, 32], sizes = [4, 128], strides = [1, 1]} : vector<6x192xbf16> to vector<4x128xbf16>
    %153 = vector.extract_strided_slice %150 {offsets = [0, 64], sizes = [4, 128], strides = [1, 1]} : vector<6x192xbf16> to vector<4x128xbf16>
    %154 = vector.extract_strided_slice %150 {offsets = [1, 0], sizes = [4, 128], strides = [1, 1]} : vector<6x192xbf16> to vector<4x128xbf16>
    %155 = vector.extract_strided_slice %150 {offsets = [1, 32], sizes = [4, 128], strides = [1, 1]} : vector<6x192xbf16> to vector<4x128xbf16>
    %156 = vector.extract_strided_slice %150 {offsets = [1, 64], sizes = [4, 128], strides = [1, 1]} : vector<6x192xbf16> to vector<4x128xbf16>
    %157 = vector.extract_strided_slice %150 {offsets = [2, 0], sizes = [4, 128], strides = [1, 1]} : vector<6x192xbf16> to vector<4x128xbf16>
    %158 = vector.extract_strided_slice %150 {offsets = [2, 32], sizes = [4, 128], strides = [1, 1]} : vector<6x192xbf16> to vector<4x128xbf16>
    %159 = vector.extract_strided_slice %150 {offsets = [2, 64], sizes = [4, 128], strides = [1, 1]} : vector<6x192xbf16> to vector<4x128xbf16>
    %160 = tpu.concatenate %151, %152, %153, %154, %155, %156, %157, %158, %159 in 1 : vector<4x128xbf16>, vector<4x128xbf16>, vector<4x128xbf16>, vector<4x128xbf16>, vector<4x128xbf16>, vector<4x128xbf16>, vector<4x128xbf16>, vector<4x128xbf16>, vector<4x128xbf16> -> vector<4x1152xbf16>
    %c0_55 = arith.constant 0 : index
    %c0_56 = arith.constant 0 : index
    %161 = vector.load %arg17[%c0_55, %c0_56] : memref<1152x32xbf16, #tpu.memory_space<vmem>>, vector<1152x32xbf16>
    %cst_57 = arith.constant dense<0.000000e+00> : vector<4x32xf32>
    %162 = tpu.matmul %160, %161, %cst_57 {dimension_numbers = #tpu.dot_dimension_numbers<[1], [0], [0], [1], [0, 0, 1, 1], [], []>} : vector<4x1152xbf16>, vector<1152x32xbf16>, vector<4x32xf32> -> vector<4x32xf32>
    %c0_58 = arith.constant 0 : index
    %c0_59 = arith.constant 0 : index
    %163 = vector.load %arg18[%c0_58, %c0_59] : memref<1x32xf32, #tpu.memory_space<vmem>>, vector<1x32xf32>
    %164 = vector.broadcast %163 : vector<1x32xf32> to vector<4x32xf32>
    %165 = arith.addf %162, %164 : vector<4x32xf32>
    %c0_60 = arith.constant 0 : index
    %c0_61 = arith.constant 0 : index
    %c0_62 = arith.constant 0 : index
    %166 = vector.load %arg19[%c0_60, %c0_61, %c0_62] : memref<1x4x32xf32, #tpu.memory_space<vmem>>, vector<1x4x32xf32>
    %167 = vector.shape_cast %166 : vector<1x4x32xf32> to vector<4x32xf32>
    %168 = vector.shape_cast %165 : vector<4x32xf32> to vector<1x4x32xf32>
    tpu.vector_store %arg19[%c0_60, %c0_61, %c0_62], %168 {strides = array<i32>} : memref<1x4x32xf32, #tpu.memory_space<vmem>>, vector<1x4x32xf32>,
    return
  }
  func.func @transform_0(%arg0: i32) -> (i32, i32, i32) {
    %c0_i32 = arith.constant 0 : i32
    %c0_i32_0 = arith.constant 0 : i32
    %c0_i32_1 = arith.constant 0 : i32
    return %arg0, %c0_i32, %c0_i32_0 : i32, i32, i32
  }
  func.func @transform_1(%arg0: i32) -> (i32, i32) {
    %c0_i32 = arith.constant 0 : i32
    %c0_i32_0 = arith.constant 0 : i32
    %c0_i32_1 = arith.constant 0 : i32
    return %c0_i32, %c0_i32_0 : i32, i32
  }
  func.func @transform_2(%arg0: i32) -> (i32, i32) {
    %c0_i32 = arith.constant 0 : i32
    %c0_i32_0 = arith.constant 0 : i32
    %c0_i32_1 = arith.constant 0 : i32
    return %c0_i32, %c0_i32_0 : i32, i32
  }
  func.func @transform_3(%arg0: i32) -> (i32, i32) {
    %c0_i32 = arith.constant 0 : i32
    %c0_i32_0 = arith.constant 0 : i32
    %c0_i32_1 = arith.constant 0 : i32
    return %c0_i32, %c0_i32_0 : i32, i32
  }
  func.func @transform_4(%arg0: i32) -> (i32, i32) {
    %c0_i32 = arith.constant 0 : i32
    %c0_i32_0 = arith.constant 0 : i32
    %c0_i32_1 = arith.constant 0 : i32
    return %c0_i32, %c0_i32_0 : i32, i32
  }
  func.func @transform_5(%arg0: i32) -> (i32, i32) {
    %c0_i32 = arith.constant 0 : i32
    %c0_i32_0 = arith.constant 0 : i32
    %c0_i32_1 = arith.constant 0 : i32
    return %c0_i32, %c0_i32_0 : i32, i32
  }
  func.func @transform_6(%arg0: i32) -> (i32, i32) {
    %c0_i32 = arith.constant 0 : i32
    %c0_i32_0 = arith.constant 0 : i32
    %c0_i32_1 = arith.constant 0 : i32
    return %c0_i32, %c0_i32_0 : i32, i32
  }
  func.func @transform_7(%arg0: i32) -> (i32, i32) {
    %c0_i32 = arith.constant 0 : i32
    %c0_i32_0 = arith.constant 0 : i32
    %c0_i32_1 = arith.constant 0 : i32
    return %c0_i32, %c0_i32_0 : i32, i32
  }
  func.func @transform_8(%arg0: i32) -> (i32, i32) {
    %c0_i32 = arith.constant 0 : i32
    %c0_i32_0 = arith.constant 0 : i32
    %c0_i32_1 = arith.constant 0 : i32
    return %c0_i32, %c0_i32_0 : i32, i32
  }
  func.func @transform_9(%arg0: i32) -> (i32, i32) {
    %c0_i32 = arith.constant 0 : i32
    %c0_i32_0 = arith.constant 0 : i32
    %c0_i32_1 = arith.constant 0 : i32
    return %c0_i32, %c0_i32_0 : i32, i32
  }
  func.func @transform_10(%arg0: i32) -> (i32, i32) {
    %c0_i32 = arith.constant 0 : i32
    %c0_i32_0 = arith.constant 0 : i32
    %c0_i32_1 = arith.constant 0 : i32
    return %c0_i32, %c0_i32_0 : i32, i32
  }
  func.func @transform_11(%arg0: i32) -> (i32, i32) {
    %c0_i32 = arith.constant 0 : i32
    %c0_i32_0 = arith.constant 0 : i32
    %c0_i32_1 = arith.constant 0 : i32
    return %c0_i32, %c0_i32_0 : i32, i32
  }
  func.func @transform_12(%arg0: i32) -> (i32, i32) {
    %c0_i32 = arith.constant 0 : i32
    %c0_i32_0 = arith.constant 0 : i32
    %c0_i32_1 = arith.constant 0 : i32
    return %c0_i32, %c0_i32_0 : i32, i32
  }
  func.func @transform_13(%arg0: i32) -> (i32, i32) {
    %c0_i32 = arith.constant 0 : i32
    %c0_i32_0 = arith.constant 0 : i32
    %c0_i32_1 = arith.constant 0 : i32
    return %c0_i32, %c0_i32_0 : i32, i32
  }
  func.func @transform_14(%arg0: i32) -> (i32, i32) {
    %c0_i32 = arith.constant 0 : i32
    %c0_i32_0 = arith.constant 0 : i32
    %c0_i32_1 = arith.constant 0 : i32
    return %c0_i32, %c0_i32_0 : i32, i32
  }
  func.func @transform_15(%arg0: i32) -> (i32, i32) {
    %c0_i32 = arith.constant 0 : i32
    %c0_i32_0 = arith.constant 0 : i32
    %c0_i32_1 = arith.constant 0 : i32
    return %c0_i32, %c0_i32_0 : i32, i32
  }
  func.func @transform_16(%arg0: i32) -> (i32, i32) {
    %c0_i32 = arith.constant 0 : i32
    %c0_i32_0 = arith.constant 0 : i32
    %c0_i32_1 = arith.constant 0 : i32
    return %c0_i32, %c0_i32_0 : i32, i32
  }
  func.func @transform_17(%arg0: i32) -> (i32, i32) {
    %c0_i32 = arith.constant 0 : i32
    %c0_i32_0 = arith.constant 0 : i32
    %c0_i32_1 = arith.constant 0 : i32
    return %c0_i32, %c0_i32_0 : i32, i32
  }
  func.func @transform_18(%arg0: i32) -> (i32, i32, i32) {
    %c0_i32 = arith.constant 0 : i32
    %c0_i32_0 = arith.constant 0 : i32
    %c0_i32_1 = arith.constant 0 : i32
    return %arg0, %c0_i32, %c0_i32_0 : i32, i32, i32
  }
}

module attributes {stable_mosaic.version = 11 : i64} {
  func.func @kernel(%arg0: i32, %arg1: memref<32x8xf32, #tpu.memory_space<vmem>>, %arg2: memref<16x8xf32, #tpu.memory_space<vmem>>, %arg3: memref<1x16xf32, #tpu.memory_space<vmem>>, %arg4: memref<8x32xf32, #tpu.memory_space<vmem>>, %arg5: memref<1x32xf32, #tpu.memory_space<vmem>>, %arg6: memref<32x32xf32, #tpu.memory_space<vmem>>, %arg7: memref<1x1xf32, #tpu.memory_space<vmem>>, %arg8: memref<1x1xf32, #tpu.memory_space<vmem>>) attributes {dimension_semantics = [#tpu.dimension_semantics<arbitrary>], iteration_bounds = array<i64: 1>, scalar_prefetch = 0 : i64, scratch_operands = 0 : i64, tpu.core_type = #tpu.core_type<tc>, window_params = [{pipeline_mode = #tpu.pipeline_mode<synchronous>, transform_indices = @transform_0, window_bounds = array<i64: 32, 8>}, {pipeline_mode = #tpu.pipeline_mode<synchronous>, transform_indices = @transform_1, window_bounds = array<i64: 16, 8>}, {pipeline_mode = #tpu.pipeline_mode<synchronous>, transform_indices = @transform_2, window_bounds = array<i64: 1, 16>}, {pipeline_mode = #tpu.pipeline_mode<synchronous>, transform_indices = @transform_3, window_bounds = array<i64: 8, 32>}, {pipeline_mode = #tpu.pipeline_mode<synchronous>, transform_indices = @transform_4, window_bounds = array<i64: 1, 32>}, {pipeline_mode = #tpu.pipeline_mode<synchronous>, transform_indices = @transform_5, window_bounds = array<i64: 32, 32>}, {pipeline_mode = #tpu.pipeline_mode<synchronous>, transform_indices = @transform_6, window_bounds = array<i64: 1, 1>}, {pipeline_mode = #tpu.pipeline_mode<synchronous>, transform_indices = @transform_7, window_bounds = array<i64: 1, 1>}]} {
    %c0 = arith.constant 0 : index
    %c0_0 = arith.constant 0 : index
    %0 = vector.load %arg1[%c0, %c0_0] : memref<32x8xf32, #tpu.memory_space<vmem>>, vector<32x8xf32>
    %c0_1 = arith.constant 0 : index
    %c0_2 = arith.constant 0 : index
    %1 = vector.load %arg2[%c0_1, %c0_2] : memref<16x8xf32, #tpu.memory_space<vmem>>, vector<16x8xf32>
    %cst = arith.constant dense<0.000000e+00> : vector<32x16xf32>
    %2 = tpu.matmul %0, %1, %cst {dimension_numbers = #tpu.dot_dimension_numbers<[1], [1], [0], [0], [0, 0, 1, 0], [], []>} : vector<32x8xf32>, vector<16x8xf32>, vector<32x16xf32> -> vector<32x16xf32>
    %c0_3 = arith.constant 0 : index
    %c0_4 = arith.constant 0 : index
    %3 = vector.load %arg3[%c0_3, %c0_4] : memref<1x16xf32, #tpu.memory_space<vmem>>, vector<1x16xf32>
    %cst_5 = arith.constant 2.000000e+00 : f32
    %4 = vector.broadcast %cst_5 : f32 to vector<32x16xf32>
    %5 = arith.mulf %4, %2 : vector<32x16xf32>
    %6 = vector.broadcast %3 : vector<1x16xf32> to vector<32x16xf32>
    %7 = arith.subf %6, %5 : vector<32x16xf32>
    %8 = tpu.iota {dimensions = array<i32: 1>} : vector<32x16xi32>
    %cst_6 = arith.constant dense<0x7F800000> : vector<32xf32>
    %9 = vector.multi_reduction <minimumf>, %7, %cst_6 [1] : vector<32x16xf32> to vector<32xf32>
    %10 = vector.shape_cast %9 : vector<32xf32> to vector<32x1xf32>
    %11 = vector.broadcast %10 : vector<32x1xf32> to vector<32x16xf32>
    %12 = arith.cmpf ole, %7, %11 : vector<32x16xf32>
    %c16_i32 = arith.constant 16 : i32
    %13 = vector.broadcast %c16_i32 : i32 to vector<32x16xi32>
    %14 = arith.select %12, %8, %13 : vector<32x16xi1>, vector<32x16xi32>
    %cst_7 = arith.constant dense<2147483647> : vector<32xi32>
    %15 = vector.multi_reduction <minsi>, %14, %cst_7 [1] : vector<32x16xi32> to vector<32xi32>
    %16 = vector.shape_cast %15 : vector<32xi32> to vector<32x1xi32>
    %17 = vector.broadcast %16 : vector<32x1xi32> to vector<32x16xi32>
    %18 = arith.cmpi eq, %8, %17 : vector<32x16xi32>
    %19 = arith.extui %18 : vector<32x16xi1> to vector<32x16xi32>
    %20 = arith.sitofp %19 : vector<32x16xi32> to vector<32x16xf32>
    %cst_8 = arith.constant dense<0.000000e+00> : vector<32x8xf32>
    %21 = tpu.matmul %20, %1, %cst_8 {dimension_numbers = #tpu.dot_dimension_numbers<[1], [0], [0], [1], [0, 0, 1, 1], [], []>} : vector<32x16xf32>, vector<16x8xf32>, vector<32x8xf32> -> vector<32x8xf32>
    %22 = arith.subf %21, %0 : vector<32x8xf32>
    %23 = arith.mulf %22, %22 : vector<32x8xf32>
    %cst_9 = arith.constant dense<0.000000e+00> : vector<32xf32>
    %24 = vector.multi_reduction <add>, %23, %cst_9 [1] : vector<32x8xf32> to vector<32xf32>
    %25 = vector.shape_cast %24 : vector<32xf32> to vector<32x1xf32>
    %cst_10 = arith.constant dense<0.000000e+00> : vector<1xf32>
    %26 = vector.multi_reduction <add>, %25, %cst_10 [0] : vector<32x1xf32> to vector<1xf32>
    %27 = vector.shape_cast %26 : vector<1xf32> to vector<1x1xf32>
    %cst_11 = arith.constant 1.250000e+00 : f32
    %28 = vector.broadcast %cst_11 : f32 to vector<1x1xf32>
    %29 = arith.mulf %28, %27 : vector<1x1xf32>
    %cst_12 = arith.constant 3.906250e-03 : f32
    %30 = vector.broadcast %cst_12 : f32 to vector<1x1xf32>
    %31 = arith.mulf %29, %30 : vector<1x1xf32>
    %c0_13 = arith.constant 0 : index
    %c0_14 = arith.constant 0 : index
    %32 = vector.load %arg7[%c0_13, %c0_14] : memref<1x1xf32, #tpu.memory_space<vmem>>, vector<1x1xf32>
    tpu.vector_store %arg7[%c0_13, %c0_14], %31 {strides = array<i32>} : memref<1x1xf32, #tpu.memory_space<vmem>>, vector<1x1xf32>,
    %cst_15 = arith.constant dense<0.000000e+00> : vector<16xf32>
    %33 = vector.multi_reduction <add>, %20, %cst_15 [0] : vector<32x16xf32> to vector<16xf32>
    %34 = vector.shape_cast %33 : vector<16xf32> to vector<1x16xf32>
    %cst_16 = arith.constant 3.125000e-02 : f32
    %35 = vector.broadcast %cst_16 : f32 to vector<1x16xf32>
    %36 = arith.mulf %34, %35 : vector<1x16xf32>
    %cst_17 = arith.constant 1.000000e-10 : f32
    %37 = vector.broadcast %cst_17 : f32 to vector<1x16xf32>
    %38 = arith.addf %36, %37 : vector<1x16xf32>
    %39 = math.log %38 : vector<1x16xf32>
    %40 = arith.mulf %36, %39 : vector<1x16xf32>
    %cst_18 = arith.constant dense<0.000000e+00> : vector<1xf32>
    %41 = vector.multi_reduction <add>, %40, %cst_18 [1] : vector<1x16xf32> to vector<1xf32>
    %42 = vector.shape_cast %41 : vector<1xf32> to vector<1x1xf32>
    %cst_19 = arith.constant 0.000000e+00 : f32
    %43 = vector.broadcast %cst_19 : f32 to vector<1x1xf32>
    %44 = arith.subf %43, %42 : vector<1x1xf32>
    %45 = math.exp %44 : vector<1x1xf32>
    %c0_20 = arith.constant 0 : index
    %c0_21 = arith.constant 0 : index
    %46 = vector.load %arg8[%c0_20, %c0_21] : memref<1x1xf32, #tpu.memory_space<vmem>>, vector<1x1xf32>
    tpu.vector_store %arg8[%c0_20, %c0_21], %45 {strides = array<i32>} : memref<1x1xf32, #tpu.memory_space<vmem>>, vector<1x1xf32>,
    %c0_22 = arith.constant 0 : index
    %c0_23 = arith.constant 0 : index
    %47 = vector.load %arg4[%c0_22, %c0_23] : memref<8x32xf32, #tpu.memory_space<vmem>>, vector<8x32xf32>
    %cst_24 = arith.constant dense<0.000000e+00> : vector<32x32xf32>
    %48 = tpu.matmul %21, %47, %cst_24 {dimension_numbers = #tpu.dot_dimension_numbers<[1], [0], [0], [1], [0, 0, 1, 1], [], []>} : vector<32x8xf32>, vector<8x32xf32>, vector<32x32xf32> -> vector<32x32xf32>
    %c0_25 = arith.constant 0 : index
    %c0_26 = arith.constant 0 : index
    %49 = vector.load %arg5[%c0_25, %c0_26] : memref<1x32xf32, #tpu.memory_space<vmem>>, vector<1x32xf32>
    %50 = vector.broadcast %49 : vector<1x32xf32> to vector<32x32xf32>
    %51 = arith.addf %48, %50 : vector<32x32xf32>
    %c0_27 = arith.constant 0 : index
    %c0_28 = arith.constant 0 : index
    %52 = vector.load %arg6[%c0_27, %c0_28] : memref<32x32xf32, #tpu.memory_space<vmem>>, vector<32x32xf32>
    tpu.vector_store %arg6[%c0_27, %c0_28], %51 {strides = array<i32>} : memref<32x32xf32, #tpu.memory_space<vmem>>, vector<32x32xf32>,
    return
  }
  func.func @transform_0(%arg0: i32) -> (i32, i32) {
    %c0_i32 = arith.constant 0 : i32
    %c0_i32_0 = arith.constant 0 : i32
    %c0_i32_1 = arith.constant 0 : i32
    return %c0_i32, %c0_i32_0 : i32, i32
  }
  func.func @transform_1(%arg0: i32) -> (i32, i32) {
    %c0_i32 = arith.constant 0 : i32
    %c0_i32_0 = arith.constant 0 : i32
    %c0_i32_1 = arith.constant 0 : i32
    return %c0_i32, %c0_i32_0 : i32, i32
  }
  func.func @transform_2(%arg0: i32) -> (i32, i32) {
    %c0_i32 = arith.constant 0 : i32
    %c0_i32_0 = arith.constant 0 : i32
    %c0_i32_1 = arith.constant 0 : i32
    return %c0_i32, %c0_i32_0 : i32, i32
  }
  func.func @transform_3(%arg0: i32) -> (i32, i32) {
    %c0_i32 = arith.constant 0 : i32
    %c0_i32_0 = arith.constant 0 : i32
    %c0_i32_1 = arith.constant 0 : i32
    return %c0_i32, %c0_i32_0 : i32, i32
  }
  func.func @transform_4(%arg0: i32) -> (i32, i32) {
    %c0_i32 = arith.constant 0 : i32
    %c0_i32_0 = arith.constant 0 : i32
    %c0_i32_1 = arith.constant 0 : i32
    return %c0_i32, %c0_i32_0 : i32, i32
  }
  func.func @transform_5(%arg0: i32) -> (i32, i32) {
    %c0_i32 = arith.constant 0 : i32
    %c0_i32_0 = arith.constant 0 : i32
    %c0_i32_1 = arith.constant 0 : i32
    return %c0_i32, %c0_i32_0 : i32, i32
  }
  func.func @transform_6(%arg0: i32) -> (i32, i32) {
    %c0_i32 = arith.constant 0 : i32
    %c0_i32_0 = arith.constant 0 : i32
    %c0_i32_1 = arith.constant 0 : i32
    return %c0_i32, %c0_i32_0 : i32, i32
  }
  func.func @transform_7(%arg0: i32) -> (i32, i32) {
    %c0_i32 = arith.constant 0 : i32
    %c0_i32_0 = arith.constant 0 : i32
    %c0_i32_1 = arith.constant 0 : i32
    return %c0_i32, %c0_i32_0 : i32, i32
  }
}

module attributes {stable_mosaic.version = 11 : i64} {
  func.func @kernel(%arg0: i32, %arg1: memref<1x4x128xf32, #tpu.memory_space<vmem>>, %arg2: memref<1152x128xbf16, #tpu.memory_space<vmem>>, %arg3: memref<1152x128xbf16, #tpu.memory_space<vmem>>, %arg4: memref<1x128xf32, #tpu.memory_space<vmem>>, %arg5: memref<1x128xf32, #tpu.memory_space<vmem>>, %arg6: memref<1x128xf32, #tpu.memory_space<vmem>>, %arg7: memref<1x128xf32, #tpu.memory_space<vmem>>, %arg8: memref<128x144xbf16, #tpu.memory_space<vmem>>, %arg9: memref<1x48xf32, #tpu.memory_space<vmem>>, %arg10: memref<1x48xf32, #tpu.memory_space<vmem>>, %arg11: memref<432x48xbf16, #tpu.memory_space<vmem>>, %arg12: memref<432x48xbf16, #tpu.memory_space<vmem>>, %arg13: memref<1x48xf32, #tpu.memory_space<vmem>>, %arg14: memref<1x48xf32, #tpu.memory_space<vmem>>, %arg15: memref<1x48xf32, #tpu.memory_space<vmem>>, %arg16: memref<1x48xf32, #tpu.memory_space<vmem>>, %arg17: memref<432x48xbf16, #tpu.memory_space<vmem>>, %arg18: memref<1x48xf32, #tpu.memory_space<vmem>>, %arg19: memref<1x48xf32, #tpu.memory_space<vmem>>, %arg20: memref<1x12x48xf32, #tpu.memory_space<vmem>>) attributes {dimension_semantics = [#tpu.dimension_semantics<parallel>], iteration_bounds = array<i64: 2>, scalar_prefetch = 0 : i64, scratch_operands = 0 : i64, tpu.core_type = #tpu.core_type<tc>, window_params = [{transform_indices = @transform_0, window_bounds = array<i64: 1, 4, 128>}, {pipeline_mode = #tpu.pipeline_mode<synchronous>, transform_indices = @transform_1, window_bounds = array<i64: 1152, 128>}, {pipeline_mode = #tpu.pipeline_mode<synchronous>, transform_indices = @transform_2, window_bounds = array<i64: 1152, 128>}, {pipeline_mode = #tpu.pipeline_mode<synchronous>, transform_indices = @transform_3, window_bounds = array<i64: 1, 128>}, {pipeline_mode = #tpu.pipeline_mode<synchronous>, transform_indices = @transform_4, window_bounds = array<i64: 1, 128>}, {pipeline_mode = #tpu.pipeline_mode<synchronous>, transform_indices = @transform_5, window_bounds = array<i64: 1, 128>}, {pipeline_mode = #tpu.pipeline_mode<synchronous>, transform_indices = @transform_6, window_bounds = array<i64: 1, 128>}, {pipeline_mode = #tpu.pipeline_mode<synchronous>, transform_indices = @transform_7, window_bounds = array<i64: 128, 144>}, {pipeline_mode = #tpu.pipeline_mode<synchronous>, transform_indices = @transform_8, window_bounds = array<i64: 1, 48>}, {pipeline_mode = #tpu.pipeline_mode<synchronous>, transform_indices = @transform_9, window_bounds = array<i64: 1, 48>}, {pipeline_mode = #tpu.pipeline_mode<synchronous>, transform_indices = @transform_10, window_bounds = array<i64: 432, 48>}, {pipeline_mode = #tpu.pipeline_mode<synchronous>, transform_indices = @transform_11, window_bounds = array<i64: 432, 48>}, {pipeline_mode = #tpu.pipeline_mode<synchronous>, transform_indices = @transform_12, window_bounds = array<i64: 1, 48>}, {pipeline_mode = #tpu.pipeline_mode<synchronous>, transform_indices = @transform_13, window_bounds = array<i64: 1, 48>}, {pipeline_mode = #tpu.pipeline_mode<synchronous>, transform_indices = @transform_14, window_bounds = array<i64: 1, 48>}, {pipeline_mode = #tpu.pipeline_mode<synchronous>, transform_indices = @transform_15, window_bounds = array<i64: 1, 48>}, {pipeline_mode = #tpu.pipeline_mode<synchronous>, transform_indices = @transform_16, window_bounds = array<i64: 432, 48>}, {pipeline_mode = #tpu.pipeline_mode<synchronous>, transform_indices = @transform_17, window_bounds = array<i64: 1, 48>}, {pipeline_mode = #tpu.pipeline_mode<synchronous>, transform_indices = @transform_18, window_bounds = array<i64: 1, 48>}, {transform_indices = @transform_19, window_bounds = array<i64: 1, 12, 48>}]} {
    %c0 = arith.constant 0 : index
    %c0_0 = arith.constant 0 : index
    %c0_1 = arith.constant 0 : index
    %0 = vector.load %arg1[%c0, %c0_0, %c0_1] : memref<1x4x128xf32, #tpu.memory_space<vmem>>, vector<1x4x128xf32>
    %1 = vector.shape_cast %0 : vector<1x4x128xf32> to vector<4x128xf32>
    %c0_2 = arith.constant 0 : index
    %c0_3 = arith.constant 0 : index
    %2 = vector.load %arg2[%c0_2, %c0_3] : memref<1152x128xbf16, #tpu.memory_space<vmem>>, vector<1152x128xbf16>
    %c0_4 = arith.constant 0 : index
    %c0_5 = arith.constant 0 : index
    %3 = vector.load %arg3[%c0_4, %c0_5] : memref<1152x128xbf16, #tpu.memory_space<vmem>>, vector<1152x128xbf16>
    %c0_6 = arith.constant 0 : index
    %c0_7 = arith.constant 0 : index
    %4 = vector.load %arg4[%c0_6, %c0_7] : memref<1x128xf32, #tpu.memory_space<vmem>>, vector<1x128xf32>
    %c0_8 = arith.constant 0 : index
    %c0_9 = arith.constant 0 : index
    %5 = vector.load %arg5[%c0_8, %c0_9] : memref<1x128xf32, #tpu.memory_space<vmem>>, vector<1x128xf32>
    %c0_10 = arith.constant 0 : index
    %c0_11 = arith.constant 0 : index
    %6 = vector.load %arg6[%c0_10, %c0_11] : memref<1x128xf32, #tpu.memory_space<vmem>>, vector<1x128xf32>
    %c0_12 = arith.constant 0 : index
    %c0_13 = arith.constant 0 : index
    %7 = vector.load %arg7[%c0_12, %c0_13] : memref<1x128xf32, #tpu.memory_space<vmem>>, vector<1x128xf32>
    %cst = arith.constant 0.000000e+00 : f32
    %8 = vector.broadcast %cst : f32 to vector<4x32xf32>
    %9 = tpu.concatenate %8, %1, %8 in 1 : vector<4x32xf32>, vector<4x128xf32>, vector<4x32xf32> -> vector<4x192xf32>
    %cst_14 = arith.constant 0.000000e+00 : f32
    %10 = vector.broadcast %cst_14 : f32 to vector<1x192xf32>
    %11 = tpu.concatenate %10, %9, %10 in 0 : vector<1x192xf32>, vector<4x192xf32>, vector<1x192xf32> -> vector<6x192xf32>
    %12 = arith.truncf %11 : vector<6x192xf32> to vector<6x192xbf16>
    %13 = vector.extract_strided_slice %12 {offsets = [0, 0], sizes = [4, 128], strides = [1, 1]} : vector<6x192xbf16> to vector<4x128xbf16>
    %14 = vector.extract_strided_slice %12 {offsets = [0, 32], sizes = [4, 128], strides = [1, 1]} : vector<6x192xbf16> to vector<4x128xbf16>
    %15 = vector.extract_strided_slice %12 {offsets = [0, 64], sizes = [4, 128], strides = [1, 1]} : vector<6x192xbf16> to vector<4x128xbf16>
    %16 = vector.extract_strided_slice %12 {offsets = [1, 0], sizes = [4, 128], strides = [1, 1]} : vector<6x192xbf16> to vector<4x128xbf16>
    %17 = vector.extract_strided_slice %12 {offsets = [1, 32], sizes = [4, 128], strides = [1, 1]} : vector<6x192xbf16> to vector<4x128xbf16>
    %18 = vector.extract_strided_slice %12 {offsets = [1, 64], sizes = [4, 128], strides = [1, 1]} : vector<6x192xbf16> to vector<4x128xbf16>
    %19 = vector.extract_strided_slice %12 {offsets = [2, 0], sizes = [4, 128], strides = [1, 1]} : vector<6x192xbf16> to vector<4x128xbf16>
    %20 = vector.extract_strided_slice %12 {offsets = [2, 32], sizes = [4, 128], strides = [1, 1]} : vector<6x192xbf16> to vector<4x128xbf16>
    %21 = vector.extract_strided_slice %12 {offsets = [2, 64], sizes = [4, 128], strides = [1, 1]} : vector<6x192xbf16> to vector<4x128xbf16>
    %22 = tpu.concatenate %13, %14, %15, %16, %17, %18, %19, %20, %21 in 1 : vector<4x128xbf16>, vector<4x128xbf16>, vector<4x128xbf16>, vector<4x128xbf16>, vector<4x128xbf16>, vector<4x128xbf16>, vector<4x128xbf16>, vector<4x128xbf16>, vector<4x128xbf16> -> vector<4x1152xbf16>
    %cst_15 = arith.constant dense<0.000000e+00> : vector<4x128xf32>
    %23 = tpu.matmul %22, %2, %cst_15 {dimension_numbers = #tpu.dot_dimension_numbers<[1], [0], [0], [1], [0, 0, 1, 1], [], []>} : vector<4x1152xbf16>, vector<1152x128xbf16>, vector<4x128xf32> -> vector<4x128xf32>
    %24 = vector.broadcast %4 : vector<1x128xf32> to vector<4x128xf32>
    %25 = arith.mulf %23, %24 : vector<4x128xf32>
    %26 = vector.broadcast %5 : vector<1x128xf32> to vector<4x128xf32>
    %27 = arith.addf %25, %26 : vector<4x128xf32>
    %cst_16 = arith.constant 0.000000e+00 : f32
    %28 = vector.broadcast %cst_16 : f32 to vector<4x128xf32>
    %29 = arith.maximumf %27, %28 : vector<4x128xf32>
    %cst_17 = arith.constant 0.000000e+00 : f32
    %30 = vector.broadcast %cst_17 : f32 to vector<4x32xf32>
    %31 = tpu.concatenate %30, %29, %30 in 1 : vector<4x32xf32>, vector<4x128xf32>, vector<4x32xf32> -> vector<4x192xf32>
    %cst_18 = arith.constant 0.000000e+00 : f32
    %32 = vector.broadcast %cst_18 : f32 to vector<1x192xf32>
    %33 = tpu.concatenate %32, %31, %32 in 0 : vector<1x192xf32>, vector<4x192xf32>, vector<1x192xf32> -> vector<6x192xf32>
    %34 = arith.truncf %33 : vector<6x192xf32> to vector<6x192xbf16>
    %35 = vector.extract_strided_slice %34 {offsets = [0, 0], sizes = [4, 128], strides = [1, 1]} : vector<6x192xbf16> to vector<4x128xbf16>
    %36 = vector.extract_strided_slice %34 {offsets = [0, 32], sizes = [4, 128], strides = [1, 1]} : vector<6x192xbf16> to vector<4x128xbf16>
    %37 = vector.extract_strided_slice %34 {offsets = [0, 64], sizes = [4, 128], strides = [1, 1]} : vector<6x192xbf16> to vector<4x128xbf16>
    %38 = vector.extract_strided_slice %34 {offsets = [1, 0], sizes = [4, 128], strides = [1, 1]} : vector<6x192xbf16> to vector<4x128xbf16>
    %39 = vector.extract_strided_slice %34 {offsets = [1, 32], sizes = [4, 128], strides = [1, 1]} : vector<6x192xbf16> to vector<4x128xbf16>
    %40 = vector.extract_strided_slice %34 {offsets = [1, 64], sizes = [4, 128], strides = [1, 1]} : vector<6x192xbf16> to vector<4x128xbf16>
    %41 = vector.extract_strided_slice %34 {offsets = [2, 0], sizes = [4, 128], strides = [1, 1]} : vector<6x192xbf16> to vector<4x128xbf16>
    %42 = vector.extract_strided_slice %34 {offsets = [2, 32], sizes = [4, 128], strides = [1, 1]} : vector<6x192xbf16> to vector<4x128xbf16>
    %43 = vector.extract_strided_slice %34 {offsets = [2, 64], sizes = [4, 128], strides = [1, 1]} : vector<6x192xbf16> to vector<4x128xbf16>
    %44 = tpu.concatenate %35, %36, %37, %38, %39, %40, %41, %42, %43 in 1 : vector<4x128xbf16>, vector<4x128xbf16>, vector<4x128xbf16>, vector<4x128xbf16>, vector<4x128xbf16>, vector<4x128xbf16>, vector<4x128xbf16>, vector<4x128xbf16>, vector<4x128xbf16> -> vector<4x1152xbf16>
    %cst_19 = arith.constant dense<0.000000e+00> : vector<4x128xf32>
    %45 = tpu.matmul %44, %3, %cst_19 {dimension_numbers = #tpu.dot_dimension_numbers<[1], [0], [0], [1], [0, 0, 1, 1], [], []>} : vector<4x1152xbf16>, vector<1152x128xbf16>, vector<4x128xf32> -> vector<4x128xf32>
    %46 = vector.broadcast %6 : vector<1x128xf32> to vector<4x128xf32>
    %47 = arith.mulf %45, %46 : vector<4x128xf32>
    %48 = vector.broadcast %7 : vector<1x128xf32> to vector<4x128xf32>
    %49 = arith.addf %47, %48 : vector<4x128xf32>
    %50 = arith.addf %49, %1 : vector<4x128xf32>
    %cst_20 = arith.constant 0.000000e+00 : f32
    %51 = vector.broadcast %cst_20 : f32 to vector<4x128xf32>
    %52 = arith.maximumf %50, %51 : vector<4x128xf32>
    %53 = arith.addf %52, %1 : vector<4x128xf32>
    %54 = arith.truncf %53 : vector<4x128xf32> to vector<4x128xbf16>
    %c0_21 = arith.constant 0 : index
    %c0_22 = arith.constant 0 : index
    %55 = vector.load %arg8[%c0_21, %c0_22] : memref<128x144xbf16, #tpu.memory_space<vmem>>, vector<128x144xbf16>
    %cst_23 = arith.constant dense<0.000000e+00> : vector<4x144xf32>
    %56 = tpu.matmul %54, %55, %cst_23 {dimension_numbers = #tpu.dot_dimension_numbers<[1], [0], [0], [1], [0, 0, 1, 1], [], []>} : vector<4x128xbf16>, vector<128x144xbf16>, vector<4x144xf32> -> vector<4x144xf32>
    %57 = vector.extract_strided_slice %56 {offsets = [0, 0], sizes = [4, 48], strides = [1, 1]} : vector<4x144xf32> to vector<4x48xf32>
    %58 = tpu.iota {dimensions = array<i32: 0>} : vector<12x4xi32>
    %59 = tpu.iota {dimensions = array<i32: 1>} : vector<12x4xi32>
    %c3_i32 = arith.constant 3 : i32
    %60 = vector.broadcast %c3_i32 : i32 to vector<12x4xi32>
    %61 = arith.muli %60, %59 : vector<12x4xi32>
    %c0_i32 = arith.constant 0 : i32
    %62 = vector.broadcast %c0_i32 : i32 to vector<12x4xi32>
    %63 = arith.addi %61, %62 : vector<12x4xi32>
    %64 = arith.cmpi eq, %58, %63 : vector<12x4xi32>
    %65 = arith.extui %64 : vector<12x4xi1> to vector<12x4xi32>
    %66 = arith.sitofp %65 : vector<12x4xi32> to vector<12x4xf32>
    %cst_24 = arith.constant dense<0.000000e+00> : vector<12x48xf32>
    %67 = tpu.matmul %66, %57, %cst_24 {dimension_numbers = #tpu.dot_dimension_numbers<[1], [0], [0], [1], [0, 0, 1, 1], [], []>} : vector<12x4xf32>, vector<4x48xf32>, vector<12x48xf32> -> vector<12x48xf32>
    %68 = vector.extract_strided_slice %56 {offsets = [0, 48], sizes = [4, 48], strides = [1, 1]} : vector<4x144xf32> to vector<4x48xf32>
    %69 = tpu.iota {dimensions = array<i32: 0>} : vector<12x4xi32>
    %70 = tpu.iota {dimensions = array<i32: 1>} : vector<12x4xi32>
    %c3_i32_25 = arith.constant 3 : i32
    %71 = vector.broadcast %c3_i32_25 : i32 to vector<12x4xi32>
    %72 = arith.muli %71, %70 : vector<12x4xi32>
    %c1_i32 = arith.constant 1 : i32
    %73 = vector.broadcast %c1_i32 : i32 to vector<12x4xi32>
    %74 = arith.addi %72, %73 : vector<12x4xi32>
    %75 = arith.cmpi eq, %69, %74 : vector<12x4xi32>
    %76 = arith.extui %75 : vector<12x4xi1> to vector<12x4xi32>
    %77 = arith.sitofp %76 : vector<12x4xi32> to vector<12x4xf32>
    %cst_26 = arith.constant dense<0.000000e+00> : vector<12x48xf32>
    %78 = tpu.matmul %77, %68, %cst_26 {dimension_numbers = #tpu.dot_dimension_numbers<[1], [0], [0], [1], [0, 0, 1, 1], [], []>} : vector<12x4xf32>, vector<4x48xf32>, vector<12x48xf32> -> vector<12x48xf32>
    %79 = arith.addf %67, %78 : vector<12x48xf32>
    %80 = vector.extract_strided_slice %56 {offsets = [0, 96], sizes = [4, 48], strides = [1, 1]} : vector<4x144xf32> to vector<4x48xf32>
    %81 = tpu.iota {dimensions = array<i32: 0>} : vector<12x4xi32>
    %82 = tpu.iota {dimensions = array<i32: 1>} : vector<12x4xi32>
    %c3_i32_27 = arith.constant 3 : i32
    %83 = vector.broadcast %c3_i32_27 : i32 to vector<12x4xi32>
    %84 = arith.muli %83, %82 : vector<12x4xi32>
    %c2_i32 = arith.constant 2 : i32
    %85 = vector.broadcast %c2_i32 : i32 to vector<12x4xi32>
    %86 = arith.addi %84, %85 : vector<12x4xi32>
    %87 = arith.cmpi eq, %81, %86 : vector<12x4xi32>
    %88 = arith.extui %87 : vector<12x4xi1> to vector<12x4xi32>
    %89 = arith.sitofp %88 : vector<12x4xi32> to vector<12x4xf32>
    %cst_28 = arith.constant dense<0.000000e+00> : vector<12x48xf32>
    %90 = tpu.matmul %89, %80, %cst_28 {dimension_numbers = #tpu.dot_dimension_numbers<[1], [0], [0], [1], [0, 0, 1, 1], [], []>} : vector<12x4xf32>, vector<4x48xf32>, vector<12x48xf32> -> vector<12x48xf32>
    %91 = arith.addf %79, %90 : vector<12x48xf32>
    %c0_29 = arith.constant 0 : index
    %c0_30 = arith.constant 0 : index
    %92 = vector.load %arg9[%c0_29, %c0_30] : memref<1x48xf32, #tpu.memory_space<vmem>>, vector<1x48xf32>
    %93 = vector.broadcast %92 : vector<1x48xf32> to vector<12x48xf32>
    %94 = arith.mulf %91, %93 : vector<12x48xf32>
    %c0_31 = arith.constant 0 : index
    %c0_32 = arith.constant 0 : index
    %95 = vector.load %arg10[%c0_31, %c0_32] : memref<1x48xf32, #tpu.memory_space<vmem>>, vector<1x48xf32>
    %96 = vector.broadcast %95 : vector<1x48xf32> to vector<12x48xf32>
    %97 = arith.addf %94, %96 : vector<12x48xf32>
    %c0_33 = arith.constant 0 : index
    %c0_34 = arith.constant 0 : index
    %98 = vector.load %arg11[%c0_33, %c0_34] : memref<432x48xbf16, #tpu.memory_space<vmem>>, vector<432x48xbf16>
    %c0_35 = arith.constant 0 : index
    %c0_36 = arith.constant 0 : index
    %99 = vector.load %arg12[%c0_35, %c0_36] : memref<432x48xbf16, #tpu.memory_space<vmem>>, vector<432x48xbf16>
    %c0_37 = arith.constant 0 : index
    %c0_38 = arith.constant 0 : index
    %100 = vector.load %arg13[%c0_37, %c0_38] : memref<1x48xf32, #tpu.memory_space<vmem>>, vector<1x48xf32>
    %c0_39 = arith.constant 0 : index
    %c0_40 = arith.constant 0 : index
    %101 = vector.load %arg14[%c0_39, %c0_40] : memref<1x48xf32, #tpu.memory_space<vmem>>, vector<1x48xf32>
    %c0_41 = arith.constant 0 : index
    %c0_42 = arith.constant 0 : index
    %102 = vector.load %arg15[%c0_41, %c0_42] : memref<1x48xf32, #tpu.memory_space<vmem>>, vector<1x48xf32>
    %c0_43 = arith.constant 0 : index
    %c0_44 = arith.constant 0 : index
    %103 = vector.load %arg16[%c0_43, %c0_44] : memref<1x48xf32, #tpu.memory_space<vmem>>, vector<1x48xf32>
    %cst_45 = arith.constant 0.000000e+00 : f32
    %104 = vector.broadcast %cst_45 : f32 to vector<12x4xf32>
    %105 = tpu.concatenate %104, %97, %104 in 1 : vector<12x4xf32>, vector<12x48xf32>, vector<12x4xf32> -> vector<12x56xf32>
    %cst_46 = arith.constant 0.000000e+00 : f32
    %106 = vector.broadcast %cst_46 : f32 to vector<1x56xf32>
    %107 = tpu.concatenate %106, %105, %106 in 0 : vector<1x56xf32>, vector<12x56xf32>, vector<1x56xf32> -> vector<14x56xf32>
    %108 = arith.truncf %107 : vector<14x56xf32> to vector<14x56xbf16>
    %109 = vector.extract_strided_slice %108 {offsets = [0, 0], sizes = [12, 48], strides = [1, 1]} : vector<14x56xbf16> to vector<12x48xbf16>
    %110 = vector.extract_strided_slice %108 {offsets = [0, 4], sizes = [12, 48], strides = [1, 1]} : vector<14x56xbf16> to vector<12x48xbf16>
    %111 = vector.extract_strided_slice %108 {offsets = [0, 8], sizes = [12, 48], strides = [1, 1]} : vector<14x56xbf16> to vector<12x48xbf16>
    %112 = vector.extract_strided_slice %108 {offsets = [1, 0], sizes = [12, 48], strides = [1, 1]} : vector<14x56xbf16> to vector<12x48xbf16>
    %113 = vector.extract_strided_slice %108 {offsets = [1, 4], sizes = [12, 48], strides = [1, 1]} : vector<14x56xbf16> to vector<12x48xbf16>
    %114 = vector.extract_strided_slice %108 {offsets = [1, 8], sizes = [12, 48], strides = [1, 1]} : vector<14x56xbf16> to vector<12x48xbf16>
    %115 = vector.extract_strided_slice %108 {offsets = [2, 0], sizes = [12, 48], strides = [1, 1]} : vector<14x56xbf16> to vector<12x48xbf16>
    %116 = vector.extract_strided_slice %108 {offsets = [2, 4], sizes = [12, 48], strides = [1, 1]} : vector<14x56xbf16> to vector<12x48xbf16>
    %117 = vector.extract_strided_slice %108 {offsets = [2, 8], sizes = [12, 48], strides = [1, 1]} : vector<14x56xbf16> to vector<12x48xbf16>
    %118 = tpu.concatenate %109, %110, %111, %112, %113, %114, %115, %116, %117 in 1 : vector<12x48xbf16>, vector<12x48xbf16>, vector<12x48xbf16>, vector<12x48xbf16>, vector<12x48xbf16>, vector<12x48xbf16>, vector<12x48xbf16>, vector<12x48xbf16>, vector<12x48xbf16> -> vector<12x432xbf16>
    %cst_47 = arith.constant dense<0.000000e+00> : vector<12x48xf32>
    %119 = tpu.matmul %118, %98, %cst_47 {dimension_numbers = #tpu.dot_dimension_numbers<[1], [0], [0], [1], [0, 0, 1, 1], [], []>} : vector<12x432xbf16>, vector<432x48xbf16>, vector<12x48xf32> -> vector<12x48xf32>
    %120 = vector.broadcast %100 : vector<1x48xf32> to vector<12x48xf32>
    %121 = arith.mulf %119, %120 : vector<12x48xf32>
    %122 = vector.broadcast %101 : vector<1x48xf32> to vector<12x48xf32>
    %123 = arith.addf %121, %122 : vector<12x48xf32>
    %cst_48 = arith.constant 0.000000e+00 : f32
    %124 = vector.broadcast %cst_48 : f32 to vector<12x48xf32>
    %125 = arith.maximumf %123, %124 : vector<12x48xf32>
    %cst_49 = arith.constant 0.000000e+00 : f32
    %126 = vector.broadcast %cst_49 : f32 to vector<12x4xf32>
    %127 = tpu.concatenate %126, %125, %126 in 1 : vector<12x4xf32>, vector<12x48xf32>, vector<12x4xf32> -> vector<12x56xf32>
    %cst_50 = arith.constant 0.000000e+00 : f32
    %128 = vector.broadcast %cst_50 : f32 to vector<1x56xf32>
    %129 = tpu.concatenate %128, %127, %128 in 0 : vector<1x56xf32>, vector<12x56xf32>, vector<1x56xf32> -> vector<14x56xf32>
    %130 = arith.truncf %129 : vector<14x56xf32> to vector<14x56xbf16>
    %131 = vector.extract_strided_slice %130 {offsets = [0, 0], sizes = [12, 48], strides = [1, 1]} : vector<14x56xbf16> to vector<12x48xbf16>
    %132 = vector.extract_strided_slice %130 {offsets = [0, 4], sizes = [12, 48], strides = [1, 1]} : vector<14x56xbf16> to vector<12x48xbf16>
    %133 = vector.extract_strided_slice %130 {offsets = [0, 8], sizes = [12, 48], strides = [1, 1]} : vector<14x56xbf16> to vector<12x48xbf16>
    %134 = vector.extract_strided_slice %130 {offsets = [1, 0], sizes = [12, 48], strides = [1, 1]} : vector<14x56xbf16> to vector<12x48xbf16>
    %135 = vector.extract_strided_slice %130 {offsets = [1, 4], sizes = [12, 48], strides = [1, 1]} : vector<14x56xbf16> to vector<12x48xbf16>
    %136 = vector.extract_strided_slice %130 {offsets = [1, 8], sizes = [12, 48], strides = [1, 1]} : vector<14x56xbf16> to vector<12x48xbf16>
    %137 = vector.extract_strided_slice %130 {offsets = [2, 0], sizes = [12, 48], strides = [1, 1]} : vector<14x56xbf16> to vector<12x48xbf16>
    %138 = vector.extract_strided_slice %130 {offsets = [2, 4], sizes = [12, 48], strides = [1, 1]} : vector<14x56xbf16> to vector<12x48xbf16>
    %139 = vector.extract_strided_slice %130 {offsets = [2, 8], sizes = [12, 48], strides = [1, 1]} : vector<14x56xbf16> to vector<12x48xbf16>
    %140 = tpu.concatenate %131, %132, %133, %134, %135, %136, %137, %138, %139 in 1 : vector<12x48xbf16>, vector<12x48xbf16>, vector<12x48xbf16>, vector<12x48xbf16>, vector<12x48xbf16>, vector<12x48xbf16>, vector<12x48xbf16>, vector<12x48xbf16>, vector<12x48xbf16> -> vector<12x432xbf16>
    %cst_51 = arith.constant dense<0.000000e+00> : vector<12x48xf32>
    %141 = tpu.matmul %140, %99, %cst_51 {dimension_numbers = #tpu.dot_dimension_numbers<[1], [0], [0], [1], [0, 0, 1, 1], [], []>} : vector<12x432xbf16>, vector<432x48xbf16>, vector<12x48xf32> -> vector<12x48xf32>
    %142 = vector.broadcast %102 : vector<1x48xf32> to vector<12x48xf32>
    %143 = arith.mulf %141, %142 : vector<12x48xf32>
    %144 = vector.broadcast %103 : vector<1x48xf32> to vector<12x48xf32>
    %145 = arith.addf %143, %144 : vector<12x48xf32>
    %146 = arith.addf %145, %97 : vector<12x48xf32>
    %cst_52 = arith.constant 0.000000e+00 : f32
    %147 = vector.broadcast %cst_52 : f32 to vector<12x48xf32>
    %148 = arith.maximumf %146, %147 : vector<12x48xf32>
    %149 = arith.addf %148, %97 : vector<12x48xf32>
    %cst_53 = arith.constant 0.000000e+00 : f32
    %150 = vector.broadcast %cst_53 : f32 to vector<12x4xf32>
    %151 = tpu.concatenate %150, %149, %150 in 1 : vector<12x4xf32>, vector<12x48xf32>, vector<12x4xf32> -> vector<12x56xf32>
    %cst_54 = arith.constant 0.000000e+00 : f32
    %152 = vector.broadcast %cst_54 : f32 to vector<1x56xf32>
    %153 = tpu.concatenate %152, %151, %152 in 0 : vector<1x56xf32>, vector<12x56xf32>, vector<1x56xf32> -> vector<14x56xf32>
    %154 = arith.truncf %153 : vector<14x56xf32> to vector<14x56xbf16>
    %155 = vector.extract_strided_slice %154 {offsets = [0, 0], sizes = [12, 48], strides = [1, 1]} : vector<14x56xbf16> to vector<12x48xbf16>
    %156 = vector.extract_strided_slice %154 {offsets = [0, 4], sizes = [12, 48], strides = [1, 1]} : vector<14x56xbf16> to vector<12x48xbf16>
    %157 = vector.extract_strided_slice %154 {offsets = [0, 8], sizes = [12, 48], strides = [1, 1]} : vector<14x56xbf16> to vector<12x48xbf16>
    %158 = vector.extract_strided_slice %154 {offsets = [1, 0], sizes = [12, 48], strides = [1, 1]} : vector<14x56xbf16> to vector<12x48xbf16>
    %159 = vector.extract_strided_slice %154 {offsets = [1, 4], sizes = [12, 48], strides = [1, 1]} : vector<14x56xbf16> to vector<12x48xbf16>
    %160 = vector.extract_strided_slice %154 {offsets = [1, 8], sizes = [12, 48], strides = [1, 1]} : vector<14x56xbf16> to vector<12x48xbf16>
    %161 = vector.extract_strided_slice %154 {offsets = [2, 0], sizes = [12, 48], strides = [1, 1]} : vector<14x56xbf16> to vector<12x48xbf16>
    %162 = vector.extract_strided_slice %154 {offsets = [2, 4], sizes = [12, 48], strides = [1, 1]} : vector<14x56xbf16> to vector<12x48xbf16>
    %163 = vector.extract_strided_slice %154 {offsets = [2, 8], sizes = [12, 48], strides = [1, 1]} : vector<14x56xbf16> to vector<12x48xbf16>
    %164 = tpu.concatenate %155, %156, %157, %158, %159, %160, %161, %162, %163 in 1 : vector<12x48xbf16>, vector<12x48xbf16>, vector<12x48xbf16>, vector<12x48xbf16>, vector<12x48xbf16>, vector<12x48xbf16>, vector<12x48xbf16>, vector<12x48xbf16>, vector<12x48xbf16> -> vector<12x432xbf16>
    %c0_55 = arith.constant 0 : index
    %c0_56 = arith.constant 0 : index
    %165 = vector.load %arg17[%c0_55, %c0_56] : memref<432x48xbf16, #tpu.memory_space<vmem>>, vector<432x48xbf16>
    %cst_57 = arith.constant dense<0.000000e+00> : vector<12x48xf32>
    %166 = tpu.matmul %164, %165, %cst_57 {dimension_numbers = #tpu.dot_dimension_numbers<[1], [0], [0], [1], [0, 0, 1, 1], [], []>} : vector<12x432xbf16>, vector<432x48xbf16>, vector<12x48xf32> -> vector<12x48xf32>
    %c0_58 = arith.constant 0 : index
    %c0_59 = arith.constant 0 : index
    %167 = vector.load %arg18[%c0_58, %c0_59] : memref<1x48xf32, #tpu.memory_space<vmem>>, vector<1x48xf32>
    %168 = vector.broadcast %167 : vector<1x48xf32> to vector<12x48xf32>
    %169 = arith.mulf %166, %168 : vector<12x48xf32>
    %c0_60 = arith.constant 0 : index
    %c0_61 = arith.constant 0 : index
    %170 = vector.load %arg19[%c0_60, %c0_61] : memref<1x48xf32, #tpu.memory_space<vmem>>, vector<1x48xf32>
    %171 = vector.broadcast %170 : vector<1x48xf32> to vector<12x48xf32>
    %172 = arith.addf %169, %171 : vector<12x48xf32>
    %173 = math.tanh %172 : vector<12x48xf32>
    %c0_62 = arith.constant 0 : index
    %c0_63 = arith.constant 0 : index
    %c0_64 = arith.constant 0 : index
    %174 = vector.load %arg20[%c0_62, %c0_63, %c0_64] : memref<1x12x48xf32, #tpu.memory_space<vmem>>, vector<1x12x48xf32>
    %175 = vector.shape_cast %174 : vector<1x12x48xf32> to vector<12x48xf32>
    %176 = vector.shape_cast %173 : vector<12x48xf32> to vector<1x12x48xf32>
    tpu.vector_store %arg20[%c0_62, %c0_63, %c0_64], %176 {strides = array<i32>} : memref<1x12x48xf32, #tpu.memory_space<vmem>>, vector<1x12x48xf32>,
    return
  }
  func.func @transform_0(%arg0: i32) -> (i32, i32, i32) {
    %c0_i32 = arith.constant 0 : i32
    %c0_i32_0 = arith.constant 0 : i32
    %c0_i32_1 = arith.constant 0 : i32
    return %arg0, %c0_i32, %c0_i32_0 : i32, i32, i32
  }
  func.func @transform_1(%arg0: i32) -> (i32, i32) {
    %c0_i32 = arith.constant 0 : i32
    %c0_i32_0 = arith.constant 0 : i32
    %c0_i32_1 = arith.constant 0 : i32
    return %c0_i32, %c0_i32_0 : i32, i32
  }
  func.func @transform_2(%arg0: i32) -> (i32, i32) {
    %c0_i32 = arith.constant 0 : i32
    %c0_i32_0 = arith.constant 0 : i32
    %c0_i32_1 = arith.constant 0 : i32
    return %c0_i32, %c0_i32_0 : i32, i32
  }
  func.func @transform_3(%arg0: i32) -> (i32, i32) {
    %c0_i32 = arith.constant 0 : i32
    %c0_i32_0 = arith.constant 0 : i32
    %c0_i32_1 = arith.constant 0 : i32
    return %c0_i32, %c0_i32_0 : i32, i32
  }
  func.func @transform_4(%arg0: i32) -> (i32, i32) {
    %c0_i32 = arith.constant 0 : i32
    %c0_i32_0 = arith.constant 0 : i32
    %c0_i32_1 = arith.constant 0 : i32
    return %c0_i32, %c0_i32_0 : i32, i32
  }
  func.func @transform_5(%arg0: i32) -> (i32, i32) {
    %c0_i32 = arith.constant 0 : i32
    %c0_i32_0 = arith.constant 0 : i32
    %c0_i32_1 = arith.constant 0 : i32
    return %c0_i32, %c0_i32_0 : i32, i32
  }
  func.func @transform_6(%arg0: i32) -> (i32, i32) {
    %c0_i32 = arith.constant 0 : i32
    %c0_i32_0 = arith.constant 0 : i32
    %c0_i32_1 = arith.constant 0 : i32
    return %c0_i32, %c0_i32_0 : i32, i32
  }
  func.func @transform_7(%arg0: i32) -> (i32, i32) {
    %c0_i32 = arith.constant 0 : i32
    %c0_i32_0 = arith.constant 0 : i32
    %c0_i32_1 = arith.constant 0 : i32
    return %c0_i32, %c0_i32_0 : i32, i32
  }
  func.func @transform_8(%arg0: i32) -> (i32, i32) {
    %c0_i32 = arith.constant 0 : i32
    %c0_i32_0 = arith.constant 0 : i32
    %c0_i32_1 = arith.constant 0 : i32
    return %c0_i32, %c0_i32_0 : i32, i32
  }
  func.func @transform_9(%arg0: i32) -> (i32, i32) {
    %c0_i32 = arith.constant 0 : i32
    %c0_i32_0 = arith.constant 0 : i32
    %c0_i32_1 = arith.constant 0 : i32
    return %c0_i32, %c0_i32_0 : i32, i32
  }
  func.func @transform_10(%arg0: i32) -> (i32, i32) {
    %c0_i32 = arith.constant 0 : i32
    %c0_i32_0 = arith.constant 0 : i32
    %c0_i32_1 = arith.constant 0 : i32
    return %c0_i32, %c0_i32_0 : i32, i32
  }
  func.func @transform_11(%arg0: i32) -> (i32, i32) {
    %c0_i32 = arith.constant 0 : i32
    %c0_i32_0 = arith.constant 0 : i32
    %c0_i32_1 = arith.constant 0 : i32
    return %c0_i32, %c0_i32_0 : i32, i32
  }
  func.func @transform_12(%arg0: i32) -> (i32, i32) {
    %c0_i32 = arith.constant 0 : i32
    %c0_i32_0 = arith.constant 0 : i32
    %c0_i32_1 = arith.constant 0 : i32
    return %c0_i32, %c0_i32_0 : i32, i32
  }
  func.func @transform_13(%arg0: i32) -> (i32, i32) {
    %c0_i32 = arith.constant 0 : i32
    %c0_i32_0 = arith.constant 0 : i32
    %c0_i32_1 = arith.constant 0 : i32
    return %c0_i32, %c0_i32_0 : i32, i32
  }
  func.func @transform_14(%arg0: i32) -> (i32, i32) {
    %c0_i32 = arith.constant 0 : i32
    %c0_i32_0 = arith.constant 0 : i32
    %c0_i32_1 = arith.constant 0 : i32
    return %c0_i32, %c0_i32_0 : i32, i32
  }
  func.func @transform_15(%arg0: i32) -> (i32, i32) {
    %c0_i32 = arith.constant 0 : i32
    %c0_i32_0 = arith.constant 0 : i32
    %c0_i32_1 = arith.constant 0 : i32
    return %c0_i32, %c0_i32_0 : i32, i32
  }
  func.func @transform_16(%arg0: i32) -> (i32, i32) {
    %c0_i32 = arith.constant 0 : i32
    %c0_i32_0 = arith.constant 0 : i32
    %c0_i32_1 = arith.constant 0 : i32
    return %c0_i32, %c0_i32_0 : i32, i32
  }
  func.func @transform_17(%arg0: i32) -> (i32, i32) {
    %c0_i32 = arith.constant 0 : i32
    %c0_i32_0 = arith.constant 0 : i32
    %c0_i32_1 = arith.constant 0 : i32
    return %c0_i32, %c0_i32_0 : i32, i32
  }
  func.func @transform_18(%arg0: i32) -> (i32, i32) {
    %c0_i32 = arith.constant 0 : i32
    %c0_i32_0 = arith.constant 0 : i32
    %c0_i32_1 = arith.constant 0 : i32
    return %c0_i32, %c0_i32_0 : i32, i32
  }
  func.func @transform_19(%arg0: i32) -> (i32, i32, i32) {
    %c0_i32 = arith.constant 0 : i32
    %c0_i32_0 = arith.constant 0 : i32
    %c0_i32_1 = arith.constant 0 : i32
    return %arg0, %c0_i32, %c0_i32_0 : i32, i32, i32
  }
}

</mosaic_0001>

<bundles_post_ra>
// kernel: a_call__.4
= control target key start
LH: loop header
LB: loop body
LE: loop exit
PB: predicated region body
PF: predicated region fallthrough
CT: control target
= control target key end

     0   :  { %13 = vsyncpa [#allocation3], 0  ;;  %vm31_vm0 = vcmask 64512   ;;  %s843_s0 = inlined_call_operand.vmem [shape: f32[32,8], index: 0, kind: input, shape index: {}]   ;;  %s844_s1 = inlined_call_operand.vmem [shape: f32[16,8], index: 1, kind: input, shape index: {}]   ;;  %s845_s2 = inlined_call_operand.vmem [shape: f32[1,16], index: 2, kind: input, shape index: {}]   ;;  %s846_s3 = inlined_call_operand.vmem [shape: f32[8,32], index: 3, kind: input, shape index: {}]   ;;  %s847_s4 = inlined_call_operand.vmem [shape: f32[1,32], index: 4, kind: input, shape index: {}]   ;;  %s848_s5 = inlined_call_operand.vmem [shape: f32[32,32], index: 5, kind: output, shape index: {0}]   ;;  %s849_s6 = inlined_call_operand.hbm [shape: f32[1,1], index: 6, kind: output, shape index: {1}]   ;;  %s850_s7 = inlined_call_operand.hbm [shape: f32[1,1], index: 7, kind: output, shape index: {2}]  }
   0x1   :  { %v29_v0 = vld [vmem:[%s844_s1] sm:$0xff]  ;;  %v30_v1 = vld [vmem:[%s844_s1 + $0x8] sm:$0xff]  ;;  %vm608_vm1 = vmpackc.low %vm31_vm0, %vm31_vm0 }
   0x2   :  { %v724_v2 = vld [vmem:[%s843_s0] sm:$0xff]  ;;  %v607_v3 = vpack.c.bf16 %v30_v1, %v29_v0 }
   0x3   :  { %583 = vmatprep.mubr.msk.f32.mxu0 %vm31_vm0, %v724_v2 }
   0x4   :  { %14 = vsyncpa [#allocation5], 0  ;;  %609 = vmatprep.subr.msk.bf16.mxu0 %vm608_vm1, %v607_v3  ;;  %614 = vmatprep.subr.bf16.mxu1 %v607_v3  ;;  %v733_v4 = vld [vmem:[%s843_s0 + $0x8] sm:$0xff]  ;;  %v738_v5 = vld [vmem:[%s843_s0 + $0x10] sm:$0xff]  ;;  %vm152_vm2 = vcmask 130048   ;;  %v150_v24 = vlaneseq  ;;  %s674_s15 = smov [#allocation2]  }
   0x5   :  { %612 = vmatpush3.bf16.xpose.msk.msra.mxu0 %vm608_vm1, %v607_v3  ;;  %616 = vmatpush3.bf16.msra.mxu1 %v607_v3  ;;  %v747_v6 = vld [vmem:[%s843_s0 + $0x18] sm:$0xff]  ;;  %v548_v9 = vld [vmem:[%s845_s2] ss:$0 sm:$0xff]  ;;  %s518_s16 = sshll.u32 %s674_s15, 4  ;;  %vm373_vm15 = vcmask 0   ;;  %s796_s16 = int_to_ptr.vmem [resolvable:$true] %s518_s16 }
   0x6   :  { %v758_v25 = vand.u32 127, %v150_v24  ;;  %v400_v62 = vld [vmem:[%s846_s3] sm:$0xff]  ;;  %s673_s3 = smov [#allocation4]  }
   0x7   :  { %599 = vmatprep.subr.mxu1 %v400_v62  ;;  %s528_s14 = sshll.u32 %s673_s3, 4  ;;  %s529_s14 = int_to_ptr.vmem [resolvable:$true] %s528_s14 }
   0x8   :  { %s624_s17 = scalar_lea.vmem %s529_s14, 16  ;;  %s628_s18 = scalar_lea.vmem %s529_s14, 32 }
   0x9   :  { %p625_p0 = scmp.ne.s32.totalorder %s529_s14, %s624_s17  ;;  %p629_p1 = scmp.lt.s32.totalorder %s529_s14, %s529_s14 }
   0xa   :  { %p630_p2 = scmp.lt.s32.totalorder %s628_s18, %s624_s17 }
   0xc   :  { %584 = vmatmul.mubr.msk.f32.vlgmr.msra.gmra.mrb[0].mxu0 %vm31_vm0, %v733_v4  ;;  %p631_p3 = por %p630_p2, %p629_p1 }
   0xd   :  { %586 = vmatprep.mubr.msk.f32.mxu0 %vm31_vm0, %v738_v5 }
   0xe   :  { %p632_p4 = pnand %p631_p3, %p625_p0 }
  0x10   :  { %587 = vmatmul.mubr.msk.f32.gmra.mrb[2].mxu0 %vm31_vm0, %v747_v6 }
  0xdf   :  { %v585_v7 = vpop.f32.mrb[0].mxu0 }
  0xe0   :  { %v116_v8 = vpop.f32.mrb[1].mxu0  ;;  %v137_v10 = vmul.f32 2.0, %v585_v7 }
  0xe1   :  { %v136_v11 = vmul.f32 2.0, %v116_v8 }
  0xe2   :  { %v147_v18 = vsub.f32 %v548_v9, %v137_v10 }
  0xe3   :  { %v588_v12 = vpop.f32.mrb[2].mxu0  ;;  %v146_v13 = vsub.f32 %v548_v9, %v136_v11 }
  0xe4   :  { %v126_v14 = vpop.f32.mrb[3].mxu0  ;;  %v139_v15 = vmul.f32 2.0, %v588_v12  ;;  %v156_v20 = vsel %vm152_vm2, %v147_v18, inf }
  0xe5   :  { %v138_v16 = vmul.f32 2.0, %v126_v14  ;;  %v153_v17 = vsel %vm152_vm2, %v146_v13, inf }
  0xe6   :  { %154 = vmin.xlane.f32.xlu0 %v153_v17  ;;  %v149_v22 = vsub.f32 %v548_v9, %v139_v15  ;;  %v672_v17 = vmov 0.0  }
  0xe7   :  { %v148_v19 = vsub.f32 %v548_v9, %v138_v16 }
  0xe8   :  { %v162_v23 = vsel %vm152_vm2, %v149_v22, inf }
  0xe9   :  { %v159_v21 = vsel %vm152_vm2, %v148_v19, inf }
  0xea   :  { %157 = vmin.xlane.f32.xlu0 %v156_v20  ;;  %160 = vmin.xlane.f32.xlu1 %v159_v21 }
  0xee   :  { %163 = vmin.xlane.f32.xlu1 %v162_v23 }
 0x173   :  { %v155_v26 = vpop.xlane.xlu0 %154 }
 0x174   :  { %vm165_vm3 = vcmp.le.f32.partialorder %v146_v13, %v155_v26 }
 0x175   :  { %v169_v27 = vsel %vm165_vm3, %v758_v25, 16 }
 0x176   :  { %v173_v28 = vsel %vm152_vm2, %v169_v27, 2147483647 }
 0x177   :  { %v158_v29 = vpop.xlane.xlu0 %157  ;;  %v161_v30 = vpop.xlane.xlu1 %160  ;;  %v175_v31 = vshra.s32 %v173_v28, 16  ;;  %v174_v46 = vand.u32 65535, %v173_v28 }
 0x178   :  { %vm166_vm4 = vcmp.le.f32.partialorder %v147_v18, %v158_v29  ;;  %vm167_vm5 = vcmp.le.f32.partialorder %v148_v19, %v161_v30 }
 0x179   :  { %v170_v32 = vsel %vm166_vm4, %v758_v25, 16  ;;  %v171_v33 = vsel %vm167_vm5, %v758_v25, 16  ;;  %v177_v34 = vcvt.s32.f32 %v175_v31  ;;  %v176_v48 = vcvt.s32.f32 %v174_v46 }
 0x17a   :  { %v188_v35 = vsel %vm152_vm2, %v170_v32, 2147483647  ;;  %v203_v36 = vsel %vm152_vm2, %v171_v33, 2147483647 }
 0x17b   :  { %178 = vmin.xlane.f32.xlu0 %v177_v34  ;;  %v164_v37 = vpop.xlane.xlu1 %163  ;;  %v190_v38 = vshra.s32 %v188_v35, 16  ;;  %v205_v39 = vshra.s32 %v203_v36, 16  ;;  %v204_v49 = vand.u32 65535, %v203_v36  ;;  %v189_v50 = vand.u32 65535, %v188_v35 }
 0x17c   :  { %vm168_vm6 = vcmp.le.f32.partialorder %v149_v22, %v164_v37 }
 0x17d   :  { %v172_v40 = vsel %vm168_vm6, %v758_v25, 16  ;;  %v192_v41 = vcvt.s32.f32 %v190_v38  ;;  %v207_v42 = vcvt.s32.f32 %v205_v39  ;;  %v206_v54 = vcvt.s32.f32 %v204_v49 }
 0x17e   :  { %v218_v43 = vsel %vm152_vm2, %v172_v40, 2147483647  ;;  %v191_v55 = vcvt.s32.f32 %v189_v50 }
 0x17f   :  { %193 = vmin.xlane.f32.xlu1 %v192_v41  ;;  %208 = vmin.xlane.f32.xlu0 %v207_v42  ;;  %v220_v44 = vshra.s32 %v218_v43, 16  ;;  %v219_v56 = vand.u32 65535, %v218_v43 }
 0x181   :  { %v222_v45 = vcvt.s32.f32 %v220_v44  ;;  %v221_v60 = vcvt.s32.f32 %v219_v56 }
 0x183   :  { %223 = vmin.xlane.f32.xlu1 %v222_v45 }
 0x208   :  { %v179_v47 = vpop.xlane.xlu0 %178 }
 0x209   :  { %vm180_vm7 = vcmp.eq.f32.partialorder %v177_v34, %v179_v47  ;;  %v185_v63 = vcvt.f32.s32 %v179_v47 }
 0x20a   :  { %v181_v51 = vsel %vm180_vm7, %v176_v48, inf }
 0x20b   :  { %182 = vmin.xlane.f32.xlu0 %v181_v51  ;;  %v186_v7 = vshll.u32 %v185_v63, 16 }
 0x20c   :  { %v209_v52 = vpop.xlane.xlu0 %208  ;;  %v194_v53 = vpop.xlane.xlu1 %193 }
 0x20d   :  { %vm210_vm8 = vcmp.eq.f32.partialorder %v207_v42, %v209_v52  ;;  %vm195_vm9 = vcmp.eq.f32.partialorder %v192_v41, %v194_v53  ;;  %v215_v0 = vcvt.f32.s32 %v209_v52  ;;  %v200_v1 = vcvt.f32.s32 %v194_v53 }
 0x20e   :  { %v211_v57 = vsel %vm210_vm8, %v206_v54, inf  ;;  %v196_v58 = vsel %vm195_vm9, %v191_v55, inf }
 0x20f   :  { %212 = vmin.xlane.f32.xlu0 %v211_v57  ;;  %197 = vmin.xlane.f32.xlu1 %v196_v58  ;;  %v216_v10 = vshll.u32 %v215_v0, 16  ;;  %v201_v11 = vshll.u32 %v200_v1, 16 }
 0x210   :  { %v224_v59 = vpop.xlane.xlu1 %223 }
 0x211   :  { %vm225_vm10 = vcmp.eq.f32.partialorder %v222_v45, %v224_v59  ;;  %v230_v14 = vcvt.f32.s32 %v224_v59 }
 0x212   :  { %v226_v61 = vsel %vm225_vm10, %v221_v60, inf }
 0x213   :  { %227 = vmin.xlane.f32.xlu1 %v226_v61  ;;  %v231_v22 = vshll.u32 %v230_v14, 16 }
 0x298   :  { %v183_v3 = vpop.xlane.xlu0 %182 }
 0x299   :  { %v184_v8 = vcvt.f32.s32 %v183_v3 }
 0x29b   :  { %v187_v9 = vadd.s32 %v186_v7, %v184_v8 }
 0x29c   :  { %v213_v12 = vpop.xlane.xlu0 %212  ;;  %v198_v13 = vpop.xlane.xlu1 %197 }
 0x29d   :  { %v214_v15 = vcvt.f32.s32 %v213_v12  ;;  %v199_v16 = vcvt.f32.s32 %v198_v13  ;;  %vm233_vm11 = vcmp.eq.s32.totalorder %v758_v25, %v187_v9 }
 0x29e   :  { %v549_v18 = vsel %vm233_vm11, 1.0, %v672_v17 }
 0x29f   :  { %v217_v19 = vadd.s32 %v216_v10, %v214_v15  ;;  %v202_v20 = vadd.s32 %v201_v11, %v199_v16  ;;  %593 = vmatprep.mubr.msk.f32.mxu1 %vm152_vm2, %v549_v18  ;;  %v375_v27 = vsel %vm152_vm2, %v549_v18, 0.0 }
 0x2a0   :  { %v228_v21 = vpop.xlane.xlu1 %227 }
 0x2a1   :  { %vm234_vm12 = vcmp.eq.s32.totalorder %v758_v25, %v202_v20  ;;  %v229_v23 = vcvt.f32.s32 %v228_v21  ;;  %vm235_vm13 = vcmp.eq.s32.totalorder %v758_v25, %v217_v19 }
 0x2a2   :  { %v550_v24 = vsel %vm234_vm12, 1.0, %v672_v17  ;;  %v551_v26 = vsel %vm235_vm13, 1.0, %v672_v17 }
 0x2a3   :  { %v376_v28 = vsel %vm152_vm2, %v550_v24, 0.0  ;;  %v232_v29 = vadd.s32 %v231_v22, %v229_v23  ;;  %594 = vmatmul.mubr.msk.f32.vlgmr.msra.gmra.mrb[0].mxu1 %vm152_vm2, %v550_v24  ;;  %v378_v31 = vsel %vm152_vm2, %v551_v26, 0.0 }
 0x2a4   :  { %v377_v30 = vadd.f32 %v376_v28, %v375_v27  ;;  %596 = vmatprep.mubr.msk.f32.mxu1 %vm152_vm2, %v551_v26  ;;  %600 = vmatpush3.msra.mxu1 %v400_v62 }
 0x2a5   :  { %vm236_vm14 = vcmp.eq.s32.totalorder %v758_v25, %v232_v29 }
 0x2a6   :  { %v379_v32 = vadd.f32 %v378_v31, %v377_v30  ;;  %v552_v33 = vsel %vm236_vm14, 1.0, %v672_v17 }
 0x2a7   :  { %597 = vmatmul.mubr.msk.f32.gmra.mrb[2].mxu1 %vm152_vm2, %v552_v33  ;;  %v380_v34 = vsel %vm152_vm2, %v552_v33, 0.0 }
 0x2a8   :  { %v381_v35 = vadd.f32 %v380_v34, %v379_v32 }
 0x2aa   :  { %v382_v36 = vrot.slane %v381_v35, 4 }
 0x2ac   :  { %v383_v37 = vadd.f32 %v382_v36, %v381_v35 }
 0x2ae   :  { %v384_v38 = vrot.slane %v383_v37, 2 }
 0x2b0   :  { %v385_v39 = vadd.f32 %v384_v38, %v383_v37 }
 0x2b2   :  { %v386_v40 = vrot.slane %v385_v39, 1 }
 0x2b4   :  { %v387_v41 = vadd.f32 %v386_v40, %v385_v39 }
 0x2b6   :  { %v388_v42 = vmul.f32 0.03125, %v387_v41 }
 0x2b8   :  { %v389_v43 = vadd.f32 1e-10, %v388_v42 }
 0x2ba   :  { %620 = vlog2.f32 %v389_v43 }
 0x2c4   :  { %v621_v47 = vpop.eup %620 }
 0x376   :  { %v595_v44 = vpop.f32.mrb[0].mxu1 }
 0x377   :  { %v343_v45 = vsub.f32 %v595_v44, %v733_v4  ;;  %v323_v25 = vpop.f32.mrb[1].mxu1  ;;  %v391_v4 = vmul.f32 0.6931472, %v621_v47 }
 0x378   :  { %v342_v46 = vsub.f32 %v323_v25, %v724_v2  ;;  %601 = vmatprep.mubr.msk.f32.mxu1 %vm31_vm0, %v323_v25 }
 0x379   :  { %v347_v48 = vmul.f32 %v343_v45, %v343_v45  ;;  %602 = vmatmul.mubr.msk.f32.vlgmr.msra.gmra.mrb[4].mxu1 %vm31_vm0, %v595_v44  ;;  %v392_v58 = vmul.f32 %v391_v4, %v388_v42 }
 0x37a   :  { %v346_v49 = vmul.f32 %v342_v46, %v342_v46  ;;  %v598_v50 = vpop.f32.mrb[2].mxu1 }
 0x37b   :  { %v345_v51 = vsub.f32 %v598_v50, %v747_v6  ;;  %v333_v52 = vpop.f32.mrb[3].mxu1  ;;  %v353_v53 = vsel %vm31_vm0, %v347_v48, 0.0 }
 0x37c   :  { %v344_v54 = vsub.f32 %v333_v52, %v738_v5  ;;  %354 = vadd.xlane.f32.xlu1 %v353_v53  ;;  %604 = vmatprep.mubr.msk.f32.mxu1 %vm31_vm0, %v333_v52  ;;  %v350_v2 = vsel %vm31_vm0, %v346_v49, 0.0  ;;  %v393_v5 = vsel %vm152_vm2, %v392_v58, 0.0 }
 0x37d   :  { %v349_v55 = vmul.f32 %v345_v51, %v345_v51  ;;  %351 = vadd.xlane.f32.xlu0 %v350_v2  ;;  %605 = vmatmul.mubr.msk.f32.gmra.mrb[6].mxu1 %vm31_vm0, %v598_v50 }
 0x37e   :  { %v348_v56 = vmul.f32 %v344_v54, %v344_v54 }
 0x37f   :  { %v359_v57 = vsel %vm31_vm0, %v349_v55, 0.0 }
 0x380   :  { %360 = vadd.xlane.f32.xlu1 %v359_v57  ;;  %v356_v6 = vsel %vm31_vm0, %v348_v56, 0.0 }
 0x381   :  { %357 = vadd.xlane.f32.xlu0 %v356_v6 }
 0x385   :  { %394 = vadd.xlane.f32.xlu0 %v393_v5 }
 0x409   :  { %v355_v59 = vpop.xlane.xlu1 %354 }
 0x40a   :  { %v352_v60 = vpop.xlane.xlu0 %351 }
 0x40b   :  { %v362_v61 = vadd.f32 %v355_v59, %v352_v60 }
 0x40d   :  { %v361_v0 = vpop.xlane.xlu1 %360 }
 0x40e   :  { %v358_v62 = vpop.xlane.xlu0 %357 }
 0x40f   :  { %v363_v63 = vadd.f32 %v362_v61, %v358_v62 }
 0x411   :  { %v364_v1 = vadd.f32 %v363_v63, %v361_v0 }
 0x412   :  { %v395_v3 = vpop.xlane.xlu0 %394 }
 0x413   :  { %v365_v7 = vrot.slane %v364_v1, 4  ;;  %v396_v8 = vsub.f32 0.0, %v395_v3 }
 0x415   :  { %v366_v9 = vadd.f32 %v365_v7, %v364_v1  ;;  %v397_v10 = vmul.f32 1.442695, %v396_v8 }
 0x417   :  { %v367_v11 = vrot.slane %v366_v9, 2  ;;  %622 = vpow2.f32 %v397_v10 }
 0x419   :  { %v368_v12 = vadd.f32 %v367_v11, %v366_v9 }
 0x41b   :  { %v369_v13 = vrot.slane %v368_v12, 1 }
 0x41d   :  { %v370_v14 = vadd.f32 %v369_v13, %v368_v12 }
 0x41f   :  { %v371_v15 = vmul.f32 1.25, %v370_v14 }
 0x421   :  { %v623_v16 = vpop.eup %622  ;;  %v372_v17 = vmul.f32 0.00390625, %v371_v15 }
 0x422   :  { %399 = vst.msk [vmem:[#allocation4] sm:$0x1] %vm373_vm15, %v623_v16 }
 0x423   :  { %374 = vst.msk [vmem:[#allocation2] sm:$0x1] %vm373_vm15, %v372_v17 }
 0x424   :  { %635 = shalt.err (!%p632_p4)
}
 0x425   :  { %s636_s21 = scalar_lea.hbm %s850_s7, 16 }
 0x426   :  { %p637_p5 = scmp.ne.s32.totalorder %s850_s7, %s636_s21  ;;  %p640_p6 = scmp.lt.u32.totalorder %s636_s21, %s850_s7 }
 0x428   :  { %p642_p7 = pnand %p640_p6, %p637_p5 }
 0x42a   :  { %645 = shalt.err (!%p642_p7)
}
 0x42b   :  { %531 = dma.vmem_to_hbm [thread:$0]  %s529_s14, 16, %s850_s7, [#allocation5]  }
 0x42c   :  { %s646_s28 = scalar_lea.vmem %s796_s16, 16  ;;  %s650_s29 = scalar_lea.vmem %s796_s16, 32 }
 0x42d   :  { %p647_p8 = scmp.ne.s32.totalorder %s796_s16, %s646_s28  ;;  %p651_p9 = scmp.lt.s32.totalorder %s796_s16, %s796_s16 }
 0x42e   :  { %p652_p10 = scmp.lt.s32.totalorder %s650_s29, %s646_s28 }
 0x430   :  { %p653_p11 = por %p652_p10, %p651_p9 }
 0x432   :  { %p654_p12 = pnand %p653_p11, %p647_p8 }
 0x434   :  { %657 = shalt.err (!%p654_p12)
}
 0x435   :  { %s658_s8 = scalar_lea.hbm %s849_s6, 16 }
 0x436   :  { %p659_p13 = scmp.ne.s32.totalorder %s849_s6, %s658_s8  ;;  %p662_p0 = scmp.lt.u32.totalorder %s658_s8, %s849_s6 }
 0x438   :  { %p664_p1 = pnand %p662_p0, %p659_p13 }
 0x43a   :  { %667 = shalt.err (!%p664_p1)
}
 0x43b   :  { %521 = dma.vmem_to_hbm [thread:$0]  %s796_s16, 16, %s849_s6, [#allocation3]   ;;  %v557_v18 = vld [vmem:[%s847_s4] ss:$0 sm:$0xff]  ;;  %vm505_vm0 = vcmask 261120  }
 0x44c   :  { %v603_v19 = vpop.f32.mrb[4].mxu1 }
 0x44d   :  { %v492_v20 = vadd.f32 %v603_v19, %v557_v18  ;;  %v486_v21 = vpop.f32.mrb[5].mxu1 }
 0x44e   :  { %v487_v22 = vadd.f32 %v557_v18, %v486_v21 }
 0x44f   :  { %507 = vst.msk [vmem:[%s848_s5 + $0x8] sm:$0xff] %vm505_vm0, %v492_v20 }
 0x450   :  { %506 = vst.msk [vmem:[%s848_s5] sm:$0xff] %vm505_vm0, %v487_v22  ;;  %v606_v23 = vpop.f32.mrb[6].mxu1 }
 0x451   :  { %v502_v24 = vadd.f32 %v606_v23, %v557_v18  ;;  %v496_v26 = vpop.f32.mrb[7].mxu1 }
 0x452   :  { %v497_v27 = vadd.f32 %v557_v18, %v496_v26 }
 0x453   :  { %509 = vst.msk [vmem:[%s848_s5 + $0x18] sm:$0xff] %vm505_vm0, %v502_v24 }
 0x454   :  { %508 = vst.msk [vmem:[%s848_s5 + $0x10] sm:$0xff] %vm505_vm0, %v497_v27 }
 0x455   :  { %668 = dma.done.wait [#allocation3], 16  }
 0x456   :  { %669 = vsyncadd [#allocation3], 4294967280 }
 0x457   :  { %670 = dma.done.wait [#allocation5], 16  }
 0x458   :  { %671 = vsyncadd [#allocation5], 4294967280 }
 0x459   :  { %540 = vsyncpa [#allocation3], 1 }
 0x45a   :  { %541 = vsyncpa [#allocation5], 1 }

// kernel: a_call__.3
= control target key start
LH: loop header
LB: loop body
LE: loop exit
PB: predicated region body
PF: predicated region fallthrough
CT: control target
= control target key end

     0   :  { %s6643_s0 = inlined_call_operand.vmem [shape: f32[2,12,48], index: 0, kind: input, shape index: {}]   ;;  %s6644_s1 = inlined_call_operand.vmem [shape: bf16[432,48], index: 1, kind: input, shape index: {}]   ;;  %s6645_s2 = inlined_call_operand.vmem [shape: bf16[432,48], index: 2, kind: input, shape index: {}]   ;;  %s6646_s3 = inlined_call_operand.hbm [shape: f32[1,48], index: 3, kind: input, shape index: {}]   ;;  %s6647_s4 = inlined_call_operand.hbm [shape: f32[1,48], index: 4, kind: input, shape index: {}]   ;;  %s6648_s5 = inlined_call_operand.vmem [shape: f32[1,48], index: 5, kind: input, shape index: {}]   ;;  %s6649_s6 = inlined_call_operand.vmem [shape: f32[1,48], index: 6, kind: input, shape index: {}]   ;;  %s6650_s7 = inlined_call_operand.hbm [shape: bf16[144,128], index: 7, kind: input, shape index: {}]   ;;  %s6651_s8 = inlined_call_operand.vmem [shape: f32[1,128], index: 8, kind: input, shape index: {}]   ;;  %s6652_s9 = inlined_call_operand.vmem [shape: f32[1,128], index: 9, kind: input, shape index: {}]   ;;  %s6653_s10 = inlined_call_operand.hbm [shape: bf16[1152,128], index: 10, kind: input, shape index: {}]   ;;  %s6654_s11 = inlined_call_operand.hbm [shape: bf16[1152,128], index: 11, kind: input, shape index: {}]   ;;  %s6655_s12 = inlined_call_operand.vmem [shape: f32[1,128], index: 12, kind: input, shape index: {}]   ;;  %s6656_s13 = inlined_call_operand.vmem [shape: f32[1,128], index: 13, kind: input, shape index: {}]   ;;  %s6657_s14 = inlined_call_operand.vmem [shape: f32[1,128], index: 14, kind: input, shape index: {}]   ;;  %s6658_s15 = inlined_call_operand.vmem [shape: f32[1,128], index: 15, kind: input, shape index: {}]   ;;  %s6659_s16 = inlined_call_operand.hbm [shape: bf16[1152,32], index: 16, kind: input, shape index: {}]   ;;  %s6660_s17 = inlined_call_operand.vmem [shape: f32[1,32], index: 17, kind: input, shape index: {}]   ;;  %s6661_s18 = inlined_call_operand.vmem [shape: f32[2,4,32], index: 18, kind: output, shape index: {}]  }
   0x1   :  { %6672 = sst [smem:[#allocation17_spill]] %s6643_s0 }
   0x2   :  { %6673 = sst [smem:[#allocation18_spill]] %s6644_s1 }
   0x3   :  { %6674 = sst [smem:[#allocation19_spill]] %s6645_s2 }
   0x4   :  { %6675 = sst [smem:[#allocation20_spill]] %s6646_s3 }
   0x5   :  { %6676 = sst [smem:[#allocation21_spill]] %s6647_s4 }
   0x6   :  { %6677 = sst [smem:[#allocation22_spill]] %s6660_s17 }
   0x7   :  { %6678 = sst [smem:[#allocation23_spill]] %s6661_s18 }
   0x8   :  { %23 = vsyncpa [#allocation3], 0 }
   0x9   :  { %24 = vsyncpa [#allocation5], 0 }
   0xa   :  { %25 = vsyncpa [#allocation8], 0 }
   0xb   :  { %26 = vsyncpa [#allocation11], 0  ;;  %s6001_s27 = smov 0  }
   0xc LB: > { %6679 = sst [smem:[#allocation16_spill]] %s5879_s27  ;;  %s5881_s28 = smov [#allocation4]   ;;  %s5879_s27 = sphi %s6001_s27, %s32_s27  }
   0xd   : > { %s476_s29 = sshll.u32 %s5881_s28, 4  ;;  %s6007_s30 = sadd.s32 4294967295, %s5879_s27   ;;  %s6012_s29 = int_to_ptr.vmem [resolvable:$true] %s476_s29 }
   0xe   : > { %p4541_p0 = scmp.ge.s32.totalorder %s5879_s27, 1  ;;  %p446_p1 = scmp.lt.s32.totalorder %s5879_s27, 3 }
   0xf   : > { %p6665_p2 = scmp.eq.s32.totalorder %s6007_s30, 0  ;;  %s5882_s19 = smov [#allocation7]  }
  0x10   : > { %p6014_p3 = pnand %p4541_p0, %p446_p1  ;;  %s511_s1 = sshll.u32 %s5882_s19, 4  ;;  %s6020_s1 = int_to_ptr.vmem [resolvable:$true] %s511_s1 }
  0x11   : > { %s5883_s21 = smov [#allocation2]   ;;  %s5884_s2 = smov [#allocation6]  }
  0x12   : > { %s6680_s0 = scalar_select %p6014_p3, 1, 0 }
  0x13   : > { %p5334_p4 = pneg %p6014_p3  ;;  %s465_s22 = sshll.u32 %s5883_s21, 4  ;;  %s6028_s22 = int_to_ptr.vmem [resolvable:$true] %s465_s22 }
  0x14   : > { %s6030_s23 = sshll.u32 %s5884_s2, 4  ;;  %s6682_s4 = sld [smem:[#allocation21_spill]]  ;;  %s493_s23 = int_to_ptr.vmem [resolvable:$true] %s6030_s23 }
  0x15   : > { %p6024_p5 = pnand %p6665_p2, %p5334_p4 }
  0x17   : > { %p6040_p7 = pneg %p6024_p5 }
  0x1a   : > { %s5689_s26 = scalar_lea.hbm %s6682_s4, 16 }
  0x1b   : > { %p5690_p6 = scmp.ne.s32.totalorder %s6682_s4, %s5689_s26  ;;  %p5696_p10 = scmp.lt.u32.totalorder %s5689_s26, %s6682_s4 }
  0x1d   : > { %p5692_p8 = pnand %p6040_p7, %p5690_p6 }
  0x1f   : > { %p5693_p9 = pneg %p5692_p8 }
  0x21   : > { %p5698_p11 = pnand %p5696_p10, %p5693_p9 }
  0x23   : > { %5701 = shalt.err (!%p5698_p11)
}
  0x24   : > { %s5702_s24 = scalar_lea.vmem %s6012_s29, 16  ;;  %s5709_s25 = scalar_lea.vmem %s6012_s29, 32 }
  0x25   : > { %p5703_p12 = scmp.ne.s32.totalorder %s6012_s29, %s5702_s24  ;;  %p5710_p1 = scmp.lt.s32.totalorder %s6012_s29, %s6012_s29 }
  0x26   : > { %p5711_p4 = scmp.lt.s32.totalorder %s5709_s25, %s5702_s24 }
  0x27   : > { %p5705_p13 = pnand %p5703_p12, %p6040_p7 }
  0x28   : > { %p5712_p6 = por %p5711_p4, %p5710_p1 }
  0x29   : > { %p5706_p0 = pneg %p5705_p13 }
  0x2b   : > { %p5713_p8 = pnand %p5712_p6, %p5706_p0 }
  0x2d   : > { %5716 = shalt.err (!%p5713_p8)
}
  0x2e   : > { %5340 = dma.hbm_to_vmem [thread:$0]  (!%p6024_p5), %s6682_s4, 16, %s6012_s29, [#allocation5]  }
  0x2f   : > { %s5717_s2 = scalar_lea.hbm %s6653_s10, 9216 }
  0x30   : > { %p5718_p9 = scmp.ne.s32.totalorder %s6653_s10, %s5717_s2  ;;  %p5724_p12 = scmp.lt.u32.totalorder %s5717_s2, %s6653_s10 }
  0x32   : > { %p5720_p10 = pnand %p5718_p9, %p6040_p7 }
  0x34   : > { %p5721_p11 = pneg %p5720_p10 }
  0x36   : > { %p5726_p13 = pnand %p5724_p12, %p5721_p11 }
  0x38   : > { %5729 = shalt.err (!%p5726_p13)
}
  0x39   : > { %s5730_s29 = scalar_lea.vmem %s6020_s1, 9216  ;;  %p5738_p6 = scmp.lt.s32.totalorder %s6020_s1, %s6020_s1 }
  0x3a   : > { %p5731_p0 = scmp.ne.s32.totalorder %s6020_s1, %s5730_s29  ;;  %p5739_p8 = scmp.lt.s32.totalorder %s5730_s29, %s5730_s29 }
  0x3c   : > { %p5733_p1 = pnand %p5731_p0, %p6040_p7  ;;  %p5740_p9 = por %p5739_p8, %p5738_p6 }
  0x3e   : > { %p5734_p4 = pneg %p5733_p1 }
  0x40   : > { %p5741_p10 = pnand %p5740_p9, %p5734_p4 }
  0x42   : > { %5744 = shalt.err (!%p5741_p10)
}
  0x43   : > { %s5885_s17 = smov 64   ;;  %s5886_s18 = smov 4  }
  0x44   : > { %5346 = dma.hbm_to_vmem [thread:$0]  (!%p6024_p5), %s6653_s10, 9216, %s6020_s1, [#allocation8], %s5885_s17, %s5885_s17, %s5886_s18  }
  0x45   : > { %s6684_s3 = sld [smem:[#allocation20_spill]] }
  0x4b   : > { %s5745_s2 = scalar_lea.hbm %s6684_s3, 16 }
  0x4c   : > { %p5746_p11 = scmp.ne.s32.totalorder %s6684_s3, %s5745_s2  ;;  %p5752_p0 = scmp.lt.u32.totalorder %s5745_s2, %s6684_s3 }
  0x4e   : > { %p5748_p12 = pnand %p5746_p11, %p6040_p7 }
  0x50   : > { %p5749_p13 = pneg %p5748_p12 }
  0x52   : > { %p5754_p1 = pnand %p5752_p0, %p5749_p13 }
  0x54   : > { %5757 = shalt.err (!%p5754_p1)
}
  0x55   : > { %s5758_s1 = scalar_lea.vmem %s6028_s22, 16  ;;  %s5765_s26 = scalar_lea.vmem %s6028_s22, 32 }
  0x56   : > { %p5759_p4 = scmp.ne.s32.totalorder %s6028_s22, %s5758_s1  ;;  %p5766_p9 = scmp.lt.s32.totalorder %s6028_s22, %s6028_s22 }
  0x57   : > { %p5767_p10 = scmp.lt.s32.totalorder %s5765_s26, %s5758_s1 }
  0x58   : > { %p5761_p6 = pnand %p5759_p4, %p6040_p7 }
  0x59   : > { %p5768_p11 = por %p5767_p10, %p5766_p9 }
  0x5a   : > { %p5762_p8 = pneg %p5761_p6 }
  0x5c   : > { %p5769_p12 = pnand %p5768_p11, %p5762_p8 }
  0x5e   : > { %5772 = shalt.err (!%p5769_p12)
}
  0x5f   : > { %5337 = dma.hbm_to_vmem [thread:$0]  (!%p6024_p5), %s6684_s3, 16, %s6028_s22, [#allocation3]  }
  0x60   : > { %s5773_s2 = scalar_lea.hbm %s6650_s7, 1152 }
  0x61   : > { %p5774_p13 = scmp.ne.s32.totalorder %s6650_s7, %s5773_s2  ;;  %p5780_p4 = scmp.lt.u32.totalorder %s5773_s2, %s6650_s7 }
  0x63   : > { %p5776_p0 = pnand %p5774_p13, %p6040_p7 }
  0x65   : > { %p5777_p1 = pneg %p5776_p0 }
  0x67   : > { %p5782_p6 = pnand %p5780_p4, %p5777_p1 }
  0x69   : > { %5785 = shalt.err (!%p5782_p6)
}
  0x6a   : > { %s5786_s26 = scalar_lea.vmem %s493_s23, 1152  ;;  %p5794_p11 = scmp.lt.s32.totalorder %s493_s23, %s493_s23 }
  0x6b   : > { %p5787_p8 = scmp.ne.s32.totalorder %s493_s23, %s5786_s26  ;;  %p5795_p12 = scmp.lt.s32.totalorder %s5786_s26, %s5786_s26 }
  0x6d   : > { %p5789_p9 = pnand %p5787_p8, %p6040_p7  ;;  %p5796_p2 = por %p5795_p12, %p5794_p11 }
  0x6f   : > { %p5790_p10 = pneg %p5789_p9 }
  0x71   : > { %p5797_p3 = pnand %p5796_p2, %p5790_p10 }
  0x73   : > { %5800 = shalt.err (!%p5797_p3)
}
  0x74   : > { %5343 = dma.hbm_to_vmem [thread:$0]  (!%p6024_p5), %s6650_s7, 1152, %s493_s23, [#allocation5], %s5885_s17, %s5885_s17, %s5886_s18  }
  0x75   : > { %s5887_s28 = smov [#allocation9]   ;;  %s5888_s21 = smov [#allocation10]  }
  0x76   : > { %s524_s19 = sshll.u32 %s5887_s28, 4  ;;  %s549_s2 = sshll.u32 %s5888_s21, 4  ;;  %s525_s19 = int_to_ptr.vmem [resolvable:$true] %s524_s19  ;;  %s550_s2 = int_to_ptr.vmem [resolvable:$true] %s549_s2 }
  0x77   : > { %s5801_s29 = scalar_lea.hbm %s6654_s11, 9216 }
  0x78   : > { %p5802_p2 = scmp.ne.s32.totalorder %s6654_s11, %s5801_s29  ;;  %p5808_p0 = scmp.lt.u32.totalorder %s5801_s29, %s6654_s11 }
  0x7a   : > { %p5804_p3 = pnand %p5802_p2, %p6040_p7 }
  0x7c   : > { %p5805_p13 = pneg %p5804_p3 }
  0x7e   : > { %p5810_p1 = pnand %p5808_p0, %p5805_p13 }
  0x80   : > { %5813 = shalt.err (!%p5810_p1)
}
  0x81   : > { %s5814_s23 = scalar_lea.vmem %s525_s19, 9216  ;;  %p5822_p9 = scmp.lt.s32.totalorder %s525_s19, %s525_s19 }
  0x82   : > { %p5815_p4 = scmp.ne.s32.totalorder %s525_s19, %s5814_s23  ;;  %p5823_p10 = scmp.lt.s32.totalorder %s5814_s23, %s5814_s23 }
  0x84   : > { %p5817_p6 = pnand %p5815_p4, %p6040_p7  ;;  %p5824_p11 = por %p5823_p10, %p5822_p9 }
  0x86   : > { %p5818_p8 = pneg %p5817_p6 }
  0x88   : > { %p5825_p12 = pnand %p5824_p11, %p5818_p8 }
  0x8a   : > { %5828 = shalt.err (!%p5825_p12)
}
  0x8b   : > { %5349 = dma.hbm_to_vmem [thread:$0]  (!%p6024_p5), %s6654_s11, 9216, %s525_s19, [#allocation8], %s5885_s17, %s5885_s17, %s5886_s18  }
  0x8c   : > { %s5829_s24 = scalar_lea.hbm %s6659_s16, 9216 }
  0x8d   : > { %p5830_p2 = scmp.ne.s32.totalorder %s6659_s16, %s5829_s24  ;;  %p5836_p0 = scmp.lt.u32.totalorder %s5829_s24, %s6659_s16 }
  0x8f   : > { %p5832_p3 = pnand %p5830_p2, %p6040_p7 }
  0x91   : > { %p5833_p13 = pneg %p5832_p3 }
  0x93   : > { %p5838_p1 = pnand %p5836_p0, %p5833_p13 }
  0x95   : > { %5841 = shalt.err (!%p5838_p1)
}
  0x96   : > { %s5842_s22 = scalar_lea.vmem %s550_s2, 9216  ;;  %p5850_p9 = scmp.lt.s32.totalorder %s550_s2, %s550_s2 }
  0x97   : > { %p5843_p4 = scmp.ne.s32.totalorder %s550_s2, %s5842_s22  ;;  %p5851_p10 = scmp.lt.s32.totalorder %s5842_s22, %s5842_s22 }
  0x99   : > { %p5845_p6 = pnand %p5843_p4, %p6040_p7  ;;  %p5852_p11 = por %p5851_p10, %p5850_p9 }
  0x9b   : > { %p5846_p8 = pneg %p5845_p6 }
  0x9d   : > { %p5853_p12 = pnand %p5852_p11, %p5846_p8 }
  0x9f   : > { %5856 = shalt.err (!%p5853_p12)
}
  0xa0   : > { %5352 = dma.hbm_to_vmem [thread:$0]  (!%p6024_p5), %s6659_s16, 9216, %s550_s2, [#allocation11], %s5885_s17, %s5885_s17, %s5886_s18  }
  0xa1   : > { %p6685_p2 = scmp.ne.s32.totalorder %s6680_s0, 0 }
  0xa2   : > { %p6686_p7 = scmp.eq.s32.totalorder (!%p6685_p2), %s6007_s30, 0 }
  0xa3   : > { %576 = sbr.rel (%p6685_p2) target bundleno = 3282 (0xcd2), region = 92 }
  0xaa   : > { %5862 = dma.done.wait (%p6686_p7), [#allocation3], 16   ;;  %p6687_p3 = pmov %p6686_p7 }
  0xac   : > { %5864 = vsyncadd (%p6687_p3), [#allocation3], 4294967280  ;;  %p6688_p13 = pmov %p6687_p3 }
  0xad   : > { %p6689_p0 = pmov %p6687_p3 }
  0xae   : > { %5866 = dma.done.wait (%p6688_p13), [#allocation5], 1168  }
  0xaf   : > { %5868 = vsyncadd (%p6689_p0), [#allocation5], 4294966128  ;;  %p6690_p1 = pmov %p6689_p0 }
  0xb0   : > { %p6691_p5 = pmov %p6689_p0 }
  0xb1   : > { %5870 = dma.done.wait (%p6690_p1), [#allocation8], 18432  }
  0xb2   : > { %5872 = vsyncadd (%p6691_p5), [#allocation8], 4294948864  ;;  %p6692_p4 = pmov %p6689_p0 }
  0xb3   : > { %p6693_p6 = pmov %p6689_p0 }
  0xb4   : > { %5874 = dma.done.wait (%p6692_p4), [#allocation11], 9216  }
  0xb5   : > { %5876 = vsyncadd (%p6693_p6), [#allocation11], 4294958080  ;;  %p649_p8 = scmp.lt.s32.totalorder %s6007_s30, 1  ;;  %s6694_s17 = sld [smem:[#allocation17_spill]]  ;;  %v5890_v5 = vmov 0   ;;  %vm781_vm0 = vcmask 31744  }
  0xb6   : > { %s5889_s2 = smov 4   ;;  %s6695_s28 = sld [smem:[#allocation18_spill]]  ;;  %1054 = vmatprep.subr.bf16.mxu1 %v5890_v5  ;;  %vm784_vm1 = vcmask 424960   ;;  %vm789_vm2 = vcmask 1040384   ;;  %vm796_vm3 = vcmask 1044480   ;;  %vm824_vm4 = vcmask 392192  }
  0xb7   : > { %s6709_s30 = smov (!%p649_p8, %s6007_s30), 1  ;;  %s5891_s26 = smov 88   ;;  %vm831_vm5 = vcmask 130048   ;;  %vm834_vm6 = vcmask 523264   ;;  %vm837_vm7 = vcmask 916480   ;;  %vm827_vm8 = vcmask 785408  }
  0xb8   : > { %s4872_s27 = sshll.u32 %s6709_s30, 4  ;;  %s5892_s23 = smov 44   ;;  %vm841_vm9 = vcmask 261120   ;;  %vm844_vm10 = vcmask 654336   ;;  %vm5900_vm11 = vmmov 0   ;;  %vm1458_vm12 = vcmask 1043456  }
  0xb9   : > { %s6669_s0 = smov 32   ;;  %s5895_s20 = smov 60   ;;  %vm5902_vm13 = vmmov 1  }
  0xba   : > { %s6671_s3 = smov 104   ;;  %s6668_s4 = smov 76   ;;  %vm6448_vm14 = vmpackc.low %vm1458_vm12, %vm5902_vm13 }
  0xbb   : > { %s6202_s18 = scalar_lea.vmem %s6694_s17, %s4872_s27  ;;  %s5893_s27 = smov 16  }
  0xbc   : > { %v659_v0 = vld [vmem:[%s6202_s18] sm:$0xff]  ;;  %v660_v1 = vld [vmem:[%s6202_s18 + $0x8] sm:$0xf]  ;;  %v5411_v10 = vld [vmem:[%s6695_s28 + $0x90] sm:$0xff]   ;;  %s6667_s17 = smov 120   ;;  %s6696_s25 = sld [smem:[#allocation19_spill]] }
  0xbd   : > { %v5398_v2 = vpack.i.bf16 %v660_v1, %v659_v0  ;;  %v5408_v3 = vld [vmem:[%s6695_s28 + $0x80] sm:$0xff]   ;;  %v5413_v7 = vld [vmem:[%s6695_s28 + $0x48] sm:$0xff]   ;;  %v5416_v11 = vld [vmem:[%s6695_s28 + $0x50] sm:$0xff]   ;;  %s6698_s21 = smov 32   ;;  %s6699_s24 = smov 76  }
  0xbe   : > { %v5410_v4 = vld [vmem:[%s6695_s28 + $0x40] sm:$0xff]   ;;  %1055 = vmatpush1.bf16.msra.mxu1 %v5408_v3  ;;  %v5409_v8 = vld [vmem:[%s6695_s28 + $0x88] sm:$0xff]   ;;  %v5418_v12 = vld [vmem:[%s6695_s28 + $0x10] sm:$0xff]   ;;  %s6700_s29 = smov 120   ;;  %s5905_s22 = smov 64  }
  0xbf   : > { %5399 = vrot.lane.b32.xlu0 %v5398_v2, %s5889_s2  ;;  %v5412_v6 = vld [vmem:[%s6695_s28] sm:$0xff]   ;;  %4873 = vmatprep.subr.bf16.mxu0 %v5410_v4  ;;  %v5415_v9 = vld [vmem:[%s6695_s28 + $0x8] sm:$0xff]   ;;  %v5419_v13 = vld [vmem:[%s6695_s28 + $0x58] sm:$0xff]   ;;  %s6706_s1 = sld [smem:[#allocation23_spill]] }
  0xc0   : > { %1056 = vmatprep.subr.bf16.mxu1 %v5890_v5  ;;  %4874 = vmatpush3.bf16.msra.mxu0 %v5412_v6  ;;  %v5414_v14 = vld [vmem:[%s6695_s28 + $0x98] sm:$0xff]   ;;  %v5417_v16 = vld [vmem:[%s6695_s28 + $0xa0] sm:$0xff]   ;;  %v5420_v17 = vld [vmem:[%s6695_s28 + $0xa8] sm:$0xff]  }
  0xc1   : > { %4875 = vmatprep.subr.bf16.mxu0 %v5413_v7  ;;  %v5421_v15 = vld [vmem:[%s6695_s28 + $0x18] sm:$0xff]   ;;  %v5422_v18 = vld [vmem:[%s6695_s28 + $0x60] sm:$0xff]   ;;  %v5423_v19 = vld [vmem:[%s6695_s28 + $0xb0] sm:$0xff]  }
  0xc2   : > { %1057 = vmatpush1.bf16.msra.mxu1 %v5409_v8  ;;  %v5424_v20 = vld [vmem:[%s6695_s28 + $0x20] sm:$0xff]   ;;  %v5425_v22 = vld [vmem:[%s6695_s28 + $0x68] sm:$0xff]   ;;  %v5426_v23 = vld [vmem:[%s6695_s28 + $0xb8] sm:$0xff]  }
  0xc3   : > { %1058 = vmatprep.subr.bf16.mxu1 %v5890_v5  ;;  %v5427_v26 = vld [vmem:[%s6695_s28 + $0x28] sm:$0xff]   ;;  %v5428_v31 = vld [vmem:[%s6695_s28 + $0x70] sm:$0xff]   ;;  %v5429_v32 = vld [vmem:[%s6695_s28 + $0xc0] sm:$0xff]  }
  0xc4   : > { %4876 = vmatpush3.bf16.msra.mxu0 %v5415_v9  ;;  %v5430_v35 = vld [vmem:[%s6695_s28 + $0x30] sm:$0xff]   ;;  %v5431_v39 = vld [vmem:[%s6695_s28 + $0x78] sm:$0xff]   ;;  %v5432_v40 = vld [vmem:[%s6695_s28 + $0xc8] sm:$0xff]  }
  0xc5   : > { %4877 = vmatprep.subr.bf16.mxu0 %v5416_v11  ;;  %v5433_v42 = vld [vmem:[%s6695_s28 + $0x38] sm:$0xff]   ;;  %v5434_v44 = vld [vmem:[%s6695_s28 + $0xd0] sm:$0xff]   ;;  %v4587_v6 = vld [vmem:[#allocation2] ss:$0 sm:$0xff] }
  0xc6   : > { %1059 = vmatpush1.bf16.msra.mxu1 %v5411_v10  ;;  %v4588_v11 = vld [vmem:[#allocation4] ss:$0 sm:$0xff] }
  0xc7   : > { %1060 = vmatprep.subr.bf16.mxu1 %v5890_v5 }
  0xc8   : > { %4878 = vmatpush3.bf16.msra.mxu0 %v5418_v12 }
  0xc9   : > { %4879 = vmatprep.subr.bf16.mxu0 %v5419_v13 }
  0xca   : > { %1061 = vmatpush1.bf16.msra.mxu1 %v5414_v14 }
  0xcb   : > { %1062 = vmatprep.subr.bf16.mxu1 %v5890_v5 }
  0xcc   : > { %4880 = vmatpush3.bf16.msra.mxu0 %v5421_v15 }
  0xcd   : > { %4881 = vmatprep.subr.bf16.mxu0 %v5422_v18 }
  0xce   : > { %1063 = vmatpush1.bf16.msra.mxu1 %v5417_v16 }
  0xcf   : > { %1064 = vmatprep.subr.bf16.mxu1 %v5890_v5 }
  0xd0   : > { %4882 = vmatpush3.bf16.msra.mxu0 %v5424_v20 }
  0xd1   : > { %4883 = vmatprep.subr.bf16.mxu0 %v5425_v22  ;;  %v5435_v22 = vld [vmem:[%s6696_s25 + $0x80] sm:$0xff]  }
  0xd2   : > { %1065 = vmatpush1.bf16.msra.mxu1 %v5420_v17 }
  0xd3   : > { %1066 = vmatprep.subr.bf16.mxu1 %v5890_v5 }
  0xd4   : > { %4884 = vmatpush3.bf16.msra.mxu0 %v5427_v26  ;;  %v5436_v26 = vld [vmem:[%s6696_s25 + $0x88] sm:$0xff]  }
  0xd5   : > { %4885 = vmatprep.subr.bf16.mxu0 %v5428_v31  ;;  %v5446_v31 = vld [vmem:[%s6696_s25 + $0x58] sm:$0xff]  }
  0xd6   : > { %1067 = vmatpush1.bf16.msra.mxu1 %v5423_v19 }
  0xd7   : > { %1068 = vmatprep.subr.bf16.mxu1 %v5890_v5 }
  0xd8   : > { %4886 = vmatpush3.bf16.msra.mxu0 %v5430_v35  ;;  %v5444_v35 = vld [vmem:[%s6696_s25 + $0xa0] sm:$0xff]  }
  0xd9   : > { %4887 = vmatprep.subr.bf16.mxu0 %v5431_v39  ;;  %v5452_v39 = vld [vmem:[%s6696_s25 + $0x68] sm:$0xff]  }
  0xda   : > { %1069 = vmatpush1.bf16.msra.mxu1 %v5426_v23  ;;  %v5437_v23 = vld [vmem:[%s6696_s25 + $0x40] sm:$0xff]  }
  0xdb   : > { %1070 = vmatprep.subr.bf16.mxu1 %v5890_v5 }
  0xdc   : > { %4888 = vmatpush3.bf16.msra.mxu0 %v5433_v42  ;;  %v5455_v42 = vld [vmem:[%s6696_s25 + $0x70] sm:$0xff]  }
  0xdd   : > { %4895 = vmatprep.subr.bf16.mxu0 %v5437_v23 }
  0xde   : > { %1071 = vmatpush1.bf16.msra.mxu1 %v5429_v32  ;;  %v5441_v32 = vld [vmem:[%s6696_s25 + $0x98] sm:$0xff]  }
  0xdf   : > { %1072 = vmatprep.subr.bf16.mxu1 %v5890_v5 }
  0xe2   : > { %1073 = vmatpush1.bf16.msra.mxu1 %v5432_v40  ;;  %v5453_v40 = vld [vmem:[%s6696_s25 + $0xb8] sm:$0xff]  }
  0xe3   : > { %1074 = vmatprep.subr.bf16.mxu1 %v5890_v5 }
  0xe6   : > { %1075 = vmatpush1.bf16.msra.mxu1 %v5434_v44  ;;  %v5457_v44 = vld [vmem:[%s6696_s25 + $0x30] sm:$0xff]  }
  0xe7   : > { %1383 = vmatprep.subr.bf16.mxu1 %v5890_v5 }
 0x131   : > { %v5400_v21 = vpop.permute.xlu0 %5399 }
 0x132   : > { %v5402_v24 = vunpack.i.h.bf16 %v5400_v21  ;;  %v5401_v25 = vunpack.i.l.bf16 %v5400_v21 }
 0x134   : > { %v783_v27 = vsel %vm781_vm0, 0.0, %v5402_v24  ;;  %v782_v28 = vsel %vm781_vm0, 0.0, %v5401_v25  ;;  %v5439_v24 = vld [vmem:[%s6696_s25] sm:$0xff]   ;;  %v5440_v25 = vld [vmem:[%s6696_s25 + $0x48] sm:$0xff]  }
 0x135   : > { %v786_v29 = vsel %vm784_vm1, %v783_v27, 0.0  ;;  %v785_v30 = vsel %vm784_vm1, %v782_v28, 0.0  ;;  %v5442_v27 = vld [vmem:[%s6696_s25 + $0x8] sm:$0xff]   ;;  %v5443_v28 = vld [vmem:[%s6696_s25 + $0x50] sm:$0xff]  }
 0x136   : > { %v791_v33 = vrot.slane %v786_v29, 7  ;;  %v790_v34 = vrot.slane %v785_v30, 7  ;;  %v5438_v29 = vld [vmem:[%s6696_s25 + $0x90] sm:$0xff]  }
 0x137   : > { %v5445_v30 = vld [vmem:[%s6696_s25 + $0x10] sm:$0xff]  }
 0x138   : > { %v792_v36 = vsel %vm789_vm2, %v790_v34, %v791_v33  ;;  %v795_v37 = vsel %vm789_vm2, 0.0, %v790_v34  ;;  %v5448_v33 = vld [vmem:[%s6696_s25 + $0x18] sm:$0xff]   ;;  %v5449_v34 = vld [vmem:[%s6696_s25 + $0x60] sm:$0xff]  }
 0x139   : > { %v797_v38 = vsel %vm796_vm3, %v792_v36, 0.0  ;;  %v5451_v36 = vld [vmem:[%s6696_s25 + $0x20] sm:$0xff]  }
 0x13a   : > { %v798_v41 = vpack.c.bf16 %v797_v38, %v795_v37  ;;  %v5447_v37 = vld [vmem:[%s6696_s25 + $0xa8] sm:$0xff]   ;;  %v5450_v38 = vld [vmem:[%s6696_s25 + $0xb0] sm:$0xff]  }
 0x13c   : > { %802 = vrot.lane.b32.xlu0 %v798_v41, %s5891_s26  ;;  %v807_v43 = vshll.u32 %v798_v41, 16  ;;  %v805_v45 = vshrl.u32 %v798_v41, 16  ;;  %v817_v48 = vrot.slane %v798_v41, 1 }
 0x13e   : > { %v809_v46 = vrot.slane %v807_v43, 1  ;;  %v5456_v43 = vld [vmem:[%s6696_s25 + $0xc0] sm:$0xff]  }
 0x140   : > { %800 = vrot.lane.b32.xlu0 %v798_v41, %s5892_s23  ;;  %v810_v47 = vor.u32 %v809_v46, %v805_v45 }
 0x142   : > { %811 = vrot.lane.b32.xlu1 %v810_v47, %s5893_s27 }
 0x144   : > { %818 = vrot.lane.b32.xlu0 %v817_v48, %s6669_s0 }
 0x146   : > { %813 = vrot.lane.b32.xlu1 %v810_v47, %s5895_s20 }
 0x148   : > { %822 = vrot.lane.b32.xlu0 %v817_v48, %s6667_s17  ;;  %s5904_s17 = smov 96  }
 0x14a   : > { %815 = vrot.lane.b32.xlu1 %v810_v47, %s6671_s3 }
 0x14e   : > { %820 = vrot.lane.b32.xlu1 %v817_v48, %s6668_s4  ;;  %s4558_s4 = sshll.u32 %s6709_s30, 2 }
 0x1ae   : > { %v803_v49 = vpop.permute.xlu0 %802 }
 0x1b2   : > { %v801_v50 = vpop.permute.xlu0 %800 }
 0x1b3   : > { %v826_v55 = vsel %vm824_vm4, %v798_v41, %v801_v50  ;;  %v5454_v41 = vld [vmem:[%s6696_s25 + $0x28] sm:$0xff]  }
 0x1b4   : > { %v812_v51 = vpop.permute.xlu1 %811  ;;  %v829_v60 = vsel %vm827_vm8, %v826_v55, %v803_v49 }
 0x1b5   : > { %v833_v56 = vsel %vm831_vm5, %v803_v49, %v812_v51 }
 0x1b6   : > { %v819_v52 = vpop.permute.xlu0 %818 }
 0x1b8   : > { %v814_v53 = vpop.permute.xlu1 %813 }
 0x1b9   : > { %v836_v57 = vsel %vm834_vm6, %v833_v56, %v814_v53  ;;  %v5459_v53 = vld [vmem:[%s6696_s25 + $0xc8] sm:$0xff]  }
 0x1ba   : > { %v823_v54 = vpop.permute.xlu0 %822 }
 0x1bb   : > { %4586 = vmatprep.mubr.msk.bf16.mxu1 %vm824_vm4, %v823_v54  ;;  %v5460_v54 = vld [vmem:[%s6696_s25 + $0x38] sm:$0xff]  }
 0x1bc   : > { %v816_v58 = vpop.permute.xlu1 %815 }
 0x1bd   : > { %v839_v59 = vsel %vm837_vm7, %v836_v57, %v816_v58  ;;  %v843_v61 = vsel %vm841_vm9, %v816_v58, %v819_v52  ;;  %v5458_v52 = vld [vmem:[%s6696_s25 + $0x78] sm:$0xff]  }
 0x1be   : > { %1045 = vmatprep.mubr.bf16.mxu0 %v839_v59 }
 0x1bf   : > { %1046 = vmatmul.mubr.bf16.vlgmr.msra.gmra.mrb[0].mxu0 %v829_v60  ;;  %v5461_v60 = vld [vmem:[%s6696_s25 + $0xd0] sm:$0xff]  }
 0x1c0   : > { %v821_v62 = vpop.permute.xlu1 %820  ;;  %4896 = vmatpush3.bf16.msra.mxu0 %v5439_v24 }
 0x1c1   : > { %v846_v63 = vsel %vm844_vm10, %v843_v61, %v821_v62  ;;  %4897 = vmatprep.subr.bf16.mxu0 %v5440_v25 }
 0x1c2   : > { %1087 = vmatmul.mubr.bf16.vlgmr.msra.gmra.mrb[0].mxu1 %v846_v63 }
 0x1c3   : > { %1384 = vmatpush1.bf16.msra.mxu1 %v5435_v22 }
 0x1c4   : > { %1385 = vmatprep.subr.bf16.mxu1 %v5890_v5  ;;  %4898 = vmatpush3.bf16.msra.mxu0 %v5442_v27 }
 0x1c5   : > { %4899 = vmatprep.subr.bf16.mxu0 %v5443_v28 }
 0x1c7   : > { %1386 = vmatpush1.bf16.msra.mxu1 %v5436_v26  ;;  %v4617_v26 = vld [vmem:[%s6648_s5] ss:$0 sm:$0xff] }
 0x1c8   : > { %1387 = vmatprep.subr.bf16.mxu1 %v5890_v5  ;;  %4900 = vmatpush3.bf16.msra.mxu0 %v5445_v30 }
 0x1c9   : > { %4901 = vmatprep.subr.bf16.mxu0 %v5446_v31  ;;  %v4618_v31 = vld [vmem:[%s6649_s6] ss:$0 sm:$0xff] }
 0x1cb   : > { %1388 = vmatpush1.bf16.msra.mxu1 %v5438_v29 }
 0x1cc   : > { %1389 = vmatprep.subr.bf16.mxu1 %v5890_v5  ;;  %4902 = vmatpush3.bf16.msra.mxu0 %v5448_v33  ;;  %v1446_v33 = vlaneseq }
 0x1cd   : > { %4903 = vmatprep.subr.bf16.mxu0 %v5449_v34 }
 0x1cf   : > { %1390 = vmatpush1.bf16.msra.mxu1 %v5441_v32 }
 0x1d0   : > { %1391 = vmatprep.subr.bf16.mxu1 %v5890_v5  ;;  %4904 = vmatpush3.bf16.msra.mxu0 %v5451_v36 }
 0x1d1   : > { %4905 = vmatprep.subr.bf16.mxu0 %v5452_v39  ;;  %v1447_v39 = vshrl.u32 %v1446_v33, 7 }
 0x1d3   : > { %1392 = vmatpush1.bf16.msra.mxu1 %v5444_v35 }
 0x1d4   : > { %1393 = vmatprep.subr.bf16.mxu1 %v5890_v5  ;;  %4906 = vmatpush3.bf16.msra.mxu0 %v5454_v41 }
 0x1d5   : > { %4907 = vmatprep.subr.bf16.mxu0 %v5455_v42 }
 0x1d7   : > { %1394 = vmatpush1.bf16.msra.mxu1 %v5447_v37 }
 0x1d8   : > { %1395 = vmatprep.subr.bf16.mxu1 %v5890_v5  ;;  %4908 = vmatpush3.bf16.msra.mxu0 %v5457_v44  ;;  %v5688_v44 = vld [vmem:[%s6202_s18 + $0x8] sm:$0xf] }
 0x1d9   : > { %4909 = vmatprep.subr.bf16.mxu0 %v5458_v52 }
 0x1db   : > { %1396 = vmatpush1.bf16.msra.mxu1 %v5450_v38 }
 0x1dc   : > { %1397 = vmatprep.subr.bf16.mxu1 %v5890_v5  ;;  %4910 = vmatpush3.bf16.msra.mxu0 %v5460_v54 }
 0x1df   : > { %1398 = vmatpush1.bf16.msra.mxu1 %v5453_v40  ;;  %v5687_v40 = vld [vmem:[%s6202_s18] sm:$0xff]  ;;  %s5903_s18 = smov 48  }
 0x1e0   : > { %1399 = vmatprep.subr.bf16.mxu1 %v5890_v5 }
 0x1e3   : > { %1400 = vmatpush1.bf16.msra.mxu1 %v5456_v43 }
 0x1e4   : > { %1401 = vmatprep.subr.bf16.mxu1 %v5890_v5 }
 0x1e7   : > { %1402 = vmatpush1.bf16.msra.mxu1 %v5459_v53 }
 0x1e8   : > { %1403 = vmatprep.subr.bf16.mxu1 %v5890_v5 }
 0x1eb   : > { %1404 = vmatpush1.bf16.msra.mxu1 %v5461_v60  ;;  %v5464_v60 = vld [vmem:[#allocation6 + $0x10] sm:$0xff]  }
 0x292   : > { %v4889_v0 = vpop.f32.mrb[0].mxu0 }
 0x293   : > { %v4890_v1 = vpop.f32.mrb[1].mxu0 }
 0x294   : > { %v4891_v2 = vadd.f32 %v4890_v1, %v4889_v0  ;;  %v4892_v3 = vpop.f32.mrb[2].mxu0 }
 0x295   : > { %v4893_v4 = vpop.f32.mrb[3].mxu0  ;;  %v1088_v7 = vpop.f32.mrb[0].mxu1 }
 0x296   : > { %v4894_v8 = vadd.f32 %v4893_v4, %v4892_v3  ;;  %v1089_v9 = vadd.f32 %v4891_v2, %v1088_v7  ;;  %v1090_v10 = vpop.f32.mrb[1].mxu1 }
 0x297   : > { %v1091_v12 = vpop.f32.mrb[2].mxu1 }
 0x298   : > { %v1101_v13 = vmul.f32 %v4587_v6, %v1089_v9  ;;  %v1092_v14 = vadd.f32 %v4894_v8, %v1091_v12  ;;  %v1093_v15 = vpop.f32.mrb[3].mxu1 }
 0x29a   : > { %v1109_v16 = vadd.f32 %v4588_v11, %v1101_v13  ;;  %v1102_v17 = vmul.f32 %v4587_v6, %v1092_v14 }
 0x29c   : > { %v1110_v18 = vadd.f32 %v4588_v11, %v1102_v17  ;;  %v1111_v19 = vmax.f32 %v1109_v16, 0.0 }
 0x29e   : > { %v1112_v20 = vmax.f32 %v1110_v18, 0.0 }
 0x2a0   : > { %v5403_v21 = vpack.i.bf16 %v1112_v20, %v1111_v19  ;;  %v5899_v19 = vmov 0.0|0.0   ;;  %v5901_v20 = vmov 0.0  }
 0x2a1   : > { %5298 = vmatprep.subr.bf16.mxu0 %v5899_v19 }
 0x2a2   : > { %5404 = vrot.lane.b32.xlu1 %v5403_v21, %s5889_s2  ;;  %s6697_s2 = smov 104  }
 0x314   : > { %v5405_v45 = vpop.permute.xlu1 %5404 }
 0x315   : > { %v5407_v46 = vunpack.i.h.bf16 %v5405_v45  ;;  %v5406_v47 = vunpack.i.l.bf16 %v5405_v45 }
 0x317   : > { %v1122_v48 = vsel %vm781_vm0, 0.0, %v5407_v46  ;;  %v1121_v49 = vsel %vm781_vm0, 0.0, %v5406_v47  ;;  %v1449_v46 = vand.u32 127, %v1446_v33  ;;  %v1450_v47 = vmul.u32 3, %v1447_v39  ;;  %v5481_v33 = vld [vmem:[#allocation7 + $0xd0] sm:$0xff]   ;;  %v5487_v39 = vld [vmem:[#allocation7 + $0x98] sm:$0xff]  }
 0x318   : > { %v1124_v50 = vsel %vm784_vm1, %v1122_v48, 0.0  ;;  %v1123_v51 = vsel %vm784_vm1, %v1121_v49, 0.0  ;;  %vm1454_vm0 = vcmask 97280  }
 0x319   : > { %v1128_v55 = vrot.slane %v1124_v50, 7  ;;  %v1127_v56 = vrot.slane %v1123_v51, 7  ;;  %vm1451_vm15 = vcmp.eq.s32.totalorder %v1449_v46, %v1450_v47  ;;  %v1532_v52 = vadd.s32 1, %v1450_v47  ;;  %v5499_v51 = vld [vmem:[#allocation7 + $0xb0] sm:$0xff]  }
 0x31a   : > { %v4619_v54 = vsel %vm1451_vm15, 1.0, %v5901_v20 }
 0x31b   : > { %v1129_v57 = vsel %vm789_vm2, %v1127_v56, %v1128_v55  ;;  %v1132_v58 = vsel %vm789_vm2, 0.0, %v1127_v56  ;;  %vm1533_vm1 = vcmp.eq.s32.totalorder %v1449_v46, %v1532_v52  ;;  %v1609_v55 = vadd.s32 2, %v1450_v47  ;;  %v5495_v47 = vld [vmem:[#allocation7 + $0xa8] sm:$0xff]   ;;  %v5498_v52 = vld [vmem:[#allocation7 + $0x78] sm:$0xff]  }
 0x31c   : > { %v1133_v59 = vsel %vm796_vm3, %v1129_v57, 0.0  ;;  %v4622_v56 = vsel %vm1533_vm1, 1.0, %v5901_v20 }
 0x31d   : > { %v1134_v61 = vpack.c.bf16 %v1133_v59, %v1132_v58  ;;  %v5462_v58 = vld [vmem:[#allocation6] sm:$0xff]   ;;  %v5463_v59 = vld [vmem:[#allocation6 + $0x8] sm:$0xff]  }
 0x31f   : > { %1136 = vrot.lane.b32.xlu1 %v1134_v61, %s5892_s23  ;;  %1138 = vrot.lane.b32.xlu0 %v1134_v61, %s5891_s26  ;;  %v1143_v62 = vshll.u32 %v1134_v61, 16  ;;  %v1141_v63 = vshrl.u32 %v1134_v61, 16  ;;  %v1153_v2 = vrot.slane %v1134_v61, 1 }
 0x321   : > { %v1145_v0 = vrot.slane %v1143_v62, 1  ;;  %v5466_v62 = vld [vmem:[#allocation6 + $0x20] sm:$0xff]  }
 0x323   : > { %v1146_v1 = vor.u32 %v1145_v0, %v1141_v63  ;;  %v5467_v63 = vld [vmem:[#allocation6 + $0x28] sm:$0xff]   ;;  %v5468_v0 = vld [vmem:[#allocation6 + $0x30] sm:$0xff]  }
 0x325   : > { %1149 = vrot.lane.b32.xlu0 %v1146_v1, %s5895_s20  ;;  %1147 = vrot.lane.b32.xlu1 %v1146_v1, %s5893_s27 }
 0x329   : > { %1151 = vrot.lane.b32.xlu0 %v1146_v1, %s6697_s2  ;;  %1154 = vrot.lane.b32.xlu1 %v1153_v2, %s6698_s21  ;;  %v5469_v1 = vld [vmem:[#allocation6 + $0x38] sm:$0xff]  }
 0x32d   : > { %1156 = vrot.lane.b32.xlu0 %v1153_v2, %s6699_s24  ;;  %1158 = vrot.lane.b32.xlu1 %v1153_v2, %s6700_s29  ;;  %v5470_v2 = vld [vmem:[#allocation6 + $0x40] sm:$0xff]  }
 0x391   : > { %v1137_v3 = vpop.permute.xlu1 %1136  ;;  %v1139_v4 = vpop.permute.xlu0 %1138 }
 0x392   : > { %v1161_v9 = vsel %vm824_vm4, %v1134_v61, %v1137_v3  ;;  %v5465_v61 = vld [vmem:[#allocation6 + $0x18] sm:$0xff]  }
 0x393   : > { %v1163_v14 = vsel %vm827_vm8, %v1161_v9, %v1139_v4 }
 0x397   : > { %v1150_v6 = vpop.permute.xlu0 %1149  ;;  %v1148_v7 = vpop.permute.xlu1 %1147 }
 0x398   : > { %v1166_v8 = vsel %vm831_vm5, %v1139_v4, %v1148_v7 }
 0x399   : > { %v1168_v12 = vsel %vm834_vm6, %v1166_v8, %v1150_v6 }
 0x39b   : > { %v1152_v10 = vpop.permute.xlu0 %1151  ;;  %v1155_v11 = vpop.permute.xlu1 %1154 }
 0x39c   : > { %v1170_v13 = vsel %vm837_vm7, %v1168_v12, %v1152_v10  ;;  %v1173_v15 = vsel %vm841_vm9, %v1152_v10, %v1155_v11  ;;  %vm1610_vm7 = vcmp.eq.s32.totalorder %v1449_v46, %v1609_v55  ;;  %v5492_v46 = vld [vmem:[#allocation7 + $0x28] sm:$0xff]   ;;  %v5502_v55 = vld [vmem:[#allocation7 + $0xb8] sm:$0xff]  }
 0x39d   : > { %1374 = vmatprep.mubr.bf16.mxu0 %v1170_v13  ;;  %v4625_v57 = vsel %vm1610_vm7, 1.0, %v5901_v20 }
 0x39e   : > { %1375 = vmatmul.mubr.bf16.vlgmr.msra.gmra.mrb[4].mxu0 %v1163_v14 }
 0x39f   : > { %v1157_v16 = vpop.permute.xlu0 %1156  ;;  %v1159_v17 = vpop.permute.xlu1 %1158  ;;  %5221 = vmatprep.mubr.msk.f32.mxu0 %vm5900_vm11, %v5901_v20 }
 0x3a0   : > { %v1175_v18 = vsel %vm844_vm10, %v1173_v15, %v1157_v16  ;;  %4616 = vmatprep.mubr.msk.bf16.mxu1 %vm824_vm4, %v1159_v17  ;;  %v4638_v15 = vld [vmem:[%s6651_s8] ss:$0 sm:$0xff] }
 0x3a1   : > { %1416 = vmatmul.mubr.bf16.vlgmr.msra.gmra.mrb[4].mxu1 %v1175_v18  ;;  %v4639_v17 = vld [vmem:[%s6652_s9] ss:$0 sm:$0xff] }
 0x471   : > { %v4911_v21 = vpop.f32.mrb[4].mxu0 }
 0x472   : > { %v4912_v22 = vpop.f32.mrb[5].mxu0 }
 0x473   : > { %v4913_v23 = vadd.f32 %v4912_v22, %v4911_v21  ;;  %v4914_v24 = vpop.f32.mrb[6].mxu0 }
 0x474   : > { %v4915_v25 = vpop.f32.mrb[7].mxu0  ;;  %v1417_v27 = vpop.f32.mrb[4].mxu1 }
 0x475   : > { %v4916_v28 = vadd.f32 %v4915_v25, %v4914_v24  ;;  %v1418_v29 = vadd.f32 %v4913_v23, %v1417_v27  ;;  %v1419_v30 = vpop.f32.mrb[5].mxu1  ;;  %v5471_v24 = vld [vmem:[#allocation7 + $0x40] sm:$0xff]   ;;  %v5474_v27 = vld [vmem:[#allocation7 + $0x48] sm:$0xff]  }
 0x476   : > { %v1420_v32 = vpop.f32.mrb[6].mxu1  ;;  %v5472_v25 = vld [vmem:[#allocation7] sm:$0xff]   ;;  %4926 = vmatprep.subr.bf16.mxu1 %v5471_v24  ;;  %v5476_v30 = vld [vmem:[#allocation7 + $0x8] sm:$0xff]  }
 0x477   : > { %v1430_v34 = vmul.f32 %v4617_v26, %v1418_v29  ;;  %v1421_v35 = vadd.f32 %v4916_v28, %v1420_v32  ;;  %v1422_v36 = vpop.f32.mrb[7].mxu1  ;;  %v5475_v28 = vld [vmem:[#allocation7 + $0x80] sm:$0xff]   ;;  %v5477_v29 = vld [vmem:[#allocation7 + $0xc8] sm:$0xff]   ;;  %4927 = vmatpush3.bf16.msra.mxu1 %v5472_v25  ;;  %v5478_v32 = vld [vmem:[#allocation7 + $0x50] sm:$0xff]  }
 0x478   : > { %4928 = vmatprep.subr.bf16.mxu1 %v5474_v27  ;;  %v5482_v36 = vld [vmem:[#allocation7 + $0x58] sm:$0xff]   ;;  %v5507_v24 = vld [vmem:[#allocation7 + $0x180] sm:$0xff]   ;;  %v5508_v27 = vld [vmem:[#allocation7 + $0x108] sm:$0xff]  }
 0x479   : > { %v1438_v37 = vadd.f32 %v4618_v31, %v1430_v34  ;;  %v1431_v38 = vmul.f32 %v4617_v26, %v1421_v35  ;;  %v5473_v26 = vld [vmem:[#allocation7 + $0xc0] sm:$0xff]   ;;  %v5480_v34 = vld [vmem:[#allocation7 + $0x10] sm:$0xff]  }
 0x47a   : > { %v5483_v35 = vld [vmem:[#allocation7 + $0x90] sm:$0xff]  }
 0x47b   : > { %v1440_v41 = vadd.f32 %v5687_v40, %v1438_v37  ;;  %v1439_v42 = vadd.f32 %v4618_v31, %v1431_v38  ;;  %v5479_v31 = vld [vmem:[#allocation7 + $0x88] sm:$0xff]   ;;  %4929 = vmatpush3.bf16.msra.mxu1 %v5476_v30  ;;  %v5485_v37 = vld [vmem:[#allocation7 + $0xd8] sm:$0xff]   ;;  %v5510_v30 = vld [vmem:[#allocation7 + $0x150] sm:$0xff]  }
 0x47c   : > { %4930 = vmatprep.subr.bf16.mxu1 %v5478_v32  ;;  %v5484_v38 = vld [vmem:[#allocation7 + $0x18] sm:$0xff]  }
 0x47d   : > { %v1442_v43 = vmax.f32 %v1440_v41, 0.0  ;;  %v1441_v45 = vadd.f32 %v5688_v44, %v1439_v42  ;;  %v5489_v41 = vld [vmem:[#allocation7 + $0xe0] sm:$0xff]  }
 0x47e   : > { %v5488_v42 = vld [vmem:[#allocation7 + $0x20] sm:$0xff]  }
 0x47f   : > { %v1443_v48 = vmax.f32 %v1441_v45, 0.0  ;;  %v1444_v49 = vadd.f32 %v5687_v40, %v1442_v43  ;;  %4931 = vmatpush3.bf16.msra.mxu1 %v5480_v34  ;;  %v5486_v40 = vld [vmem:[#allocation7 + $0x60] sm:$0xff]   ;;  %v5493_v45 = vld [vmem:[#allocation7 + $0xe8] sm:$0xff]   ;;  %v5512_v34 = vld [vmem:[#allocation7 + $0x110] sm:$0xff]  }
 0x480   : > { %4932 = vmatprep.subr.bf16.mxu1 %v5482_v36  ;;  %v5491_v43 = vld [vmem:[#allocation7 + $0xa0] sm:$0xff]  }
 0x481   : > { %v1445_v50 = vadd.f32 %v5688_v44, %v1443_v48  ;;  %v5490_v44 = vld [vmem:[#allocation7 + $0x68] sm:$0xff]   ;;  %v5494_v48 = vld [vmem:[#allocation7 + $0x70] sm:$0xff]  }
 0x483   : > { %v5299_v53 = vpack.c.bf16 %v1445_v50, %v1444_v49  ;;  %4933 = vmatpush3.bf16.msra.mxu1 %v5484_v38  ;;  %v5497_v49 = vld [vmem:[#allocation7 + $0xf0] sm:$0xff]  }
 0x484   : > { %4934 = vmatprep.subr.bf16.mxu1 %v5486_v40  ;;  %v5496_v50 = vld [vmem:[#allocation7 + $0x30] sm:$0xff]  }
 0x485   : > { %5301 = vmatpush3.bf16.msk.msra.mxu0 %vm6448_vm14, %v5299_v53  ;;  %v5515_v38 = vld [vmem:[#allocation7 + $0x190] sm:$0xff]  }
 0x486   : > { %5302 = vmatprep.subr.bf16.mxu0 %v5899_v19 }
 0x487   : > { %4935 = vmatpush3.bf16.msra.mxu1 %v5488_v42  ;;  %v5517_v42 = vld [vmem:[#allocation7 + $0x1d8] sm:$0xff]  }
 0x488   : > { %5222 = vmatmul.mubr.msk.f32.vlgmr.msra.gmra.mrb[8].mxu0 %vm1454_vm0, %v4619_v54  ;;  %4936 = vmatprep.subr.bf16.mxu1 %v5490_v44  ;;  %v5501_v54 = vld [vmem:[#allocation7 + $0xf8] sm:$0xff]  }
 0x489   : > { %5305 = vmatpush3.bf16.msk.msra.mxu0 %vm6448_vm14, %v5299_v53  ;;  %5228 = vmatprep.mubr.msk.f32.mxu0 %vm5900_vm11, %v5901_v20  ;;  %v5519_v44 = vld [vmem:[#allocation7 + $0x198] sm:$0xff]  }
 0x48a   : > { %5306 = vmatprep.subr.bf16.mxu0 %v5899_v19 }
 0x48b   : > { %4937 = vmatpush3.bf16.msra.mxu1 %v5492_v46 }
 0x48c   : > { %5229 = vmatmul.mubr.msk.f32.vlgmr.msra.gmra.mrb[10].mxu0 %vm1454_vm0, %v4622_v56  ;;  %4938 = vmatprep.subr.bf16.mxu1 %v5494_v48  ;;  %v5503_v56 = vld [vmem:[#allocation7 + $0x140] sm:$0xff]  }
 0x48d   : > { %5309 = vmatpush3.bf16.msk.msra.mxu0 %vm6448_vm14, %v5299_v53  ;;  %5235 = vmatprep.mubr.msk.f32.mxu0 %vm5900_vm11, %v5901_v20  ;;  %v5500_v53 = vld [vmem:[#allocation7 + $0x38] sm:$0xff]   ;;  %v5521_v48 = vld [vmem:[#allocation7 + $0x1e0] sm:$0xff]  }
 0x48e   : > { %1773 = vmatprep.subr.bf16.mxu0 %v5890_v5 }
 0x48f   : > { %4939 = vmatpush3.bf16.msra.mxu1 %v5496_v50  ;;  %v5522_v50 = vld [vmem:[#allocation7 + $0x168] sm:$0xff]  }
 0x490   : > { %5236 = vmatmul.mubr.msk.f32.vlgmr.msra.gmra.mrb[12].mxu0 %vm1454_vm0, %v4625_v57  ;;  %4940 = vmatprep.subr.bf16.mxu1 %v5498_v52  ;;  %v5505_v57 = vld [vmem:[#allocation7 + $0x1c0] sm:$0xff]   ;;  %v5524_v52 = vld [vmem:[#allocation7 + $0x128] sm:$0xff]  }
 0x491   : > { %1774 = vmatpush1.bf16.msra.mxu0 %v5462_v58 }
 0x492   : > { %1775 = vmatprep.subr.bf16.mxu0 %v5890_v5 }
 0x493   : > { %4941 = vmatpush3.bf16.msra.mxu1 %v5500_v53  ;;  %v5525_v53 = vld [vmem:[#allocation7 + $0x1e8] sm:$0xff]  }
 0x494   : > { %4970 = vmatprep.subr.bf16.mxu1 %v5503_v56  ;;  %v5528_v56 = vld [vmem:[#allocation7 + $0x130] sm:$0xff]  }
 0x495   : > { %1776 = vmatpush1.bf16.msra.mxu0 %v5463_v59 }
 0x496   : > { %1777 = vmatprep.subr.bf16.mxu0 %v5890_v5 }
 0x499   : > { %1778 = vmatpush1.bf16.msra.mxu0 %v5464_v60 }
 0x49a   : > { %1779 = vmatprep.subr.bf16.mxu0 %v5890_v5 }
 0x49d   : > { %1780 = vmatpush1.bf16.msra.mxu0 %v5465_v61 }
 0x49e   : > { %1781 = vmatprep.subr.bf16.mxu0 %v5890_v5 }
 0x4a1   : > { %1782 = vmatpush1.bf16.msra.mxu0 %v5466_v62 }
 0x4a2   : > { %1783 = vmatprep.subr.bf16.mxu0 %v5890_v5 }
 0x4a5   : > { %1784 = vmatpush1.bf16.msra.mxu0 %v5467_v63 }
 0x4a6   : > { %1785 = vmatprep.subr.bf16.mxu0 %v5890_v5 }
 0x4a9   : > { %1786 = vmatpush1.bf16.msra.mxu0 %v5468_v0 }
 0x4aa   : > { %1787 = vmatprep.subr.bf16.mxu0 %v5890_v5 }
 0x4ad   : > { %1788 = vmatpush1.bf16.msra.mxu0 %v5469_v1 }
 0x4ae   : > { %1789 = vmatprep.subr.bf16.mxu0 %v5890_v5 }
 0x4b1   : > { %1790 = vmatpush1.bf16.msra.mxu0 %v5470_v2 }
 0x4b2   : > { %4948 = vmatprep.subr.bf16.mxu0 %v5473_v26 }
 0x55b   : > { %v1528_v3 = vpop.f32.mrb[8].mxu0 }
 0x55c   : > { %v5223_v4 = vpop.f32.mrb[9].mxu0 }
 0x55f   : > { %v1605_v6 = vpop.f32.mrb[10].mxu0 }
 0x560   : > { %1687 = vrot.lane.b32.xlu0 %v1605_v6, %s5903_s18  ;;  %v5230_v7 = vpop.f32.mrb[11].mxu0 }
 0x563   : > { %v1682_v8 = vpop.f32.mrb[12].mxu0 }
 0x564   : > { %1691 = vrot.lane.b32.xlu1 %v1682_v8, %s5904_s17  ;;  %v5237_v9 = vpop.f32.mrb[13].mxu0 }
 0x5d2   : > { %v1688_v10 = vpop.permute.xlu0 %1687 }
 0x5d3   : > { %v1694_v11 = vsel %vm824_vm4, %v1528_v3, %v1688_v10  ;;  %vm6512_vm4 = vmpackc.low %vm796_vm3, %vm796_vm3 }
 0x5d6   : > { %v1692_v12 = vpop.permute.xlu1 %1691 }
 0x5d7   : > { %v1695_v13 = vsel %vm827_vm8, %v1694_v11, %v1692_v12  ;;  %v1697_v5 = vpack.c.bf16 %v1692_v12, %v1692_v12 }
 0x5d8   : > { %v1696_v14 = vpack.c.bf16 %v1695_v13, %v1695_v13 }
 0x5d9   : > { %4637 = vmatprep.mubr.msk.bf16.mxu0 %vm831_vm5, %v1697_v5 }
 0x5da   : > { %1806 = vmatmul.mubr.bf16.vlgmr.msra.gmra.mrb[16].mxu0 %v1696_v14 }
 0x5db   : > { %4949 = vmatpush3.bf16.msra.mxu0 %v5475_v28  ;;  %v5509_v28 = vld [vmem:[#allocation7 + $0x1c8] sm:$0xff]  }
 0x5dc   : > { %4950 = vmatprep.subr.bf16.mxu0 %v5477_v29 }
 0x5df   : > { %4951 = vmatpush3.bf16.msra.mxu0 %v5479_v31  ;;  %v5511_v31 = vld [vmem:[#allocation7 + $0x188] sm:$0xff]  }
 0x5e0   : > { %4952 = vmatprep.subr.bf16.mxu0 %v5481_v33 }
 0x5e3   : > { %4953 = vmatpush3.bf16.msra.mxu0 %v5483_v35  ;;  %v5513_v35 = vld [vmem:[#allocation7 + $0x1d0] sm:$0xff]  }
 0x5e4   : > { %4954 = vmatprep.subr.bf16.mxu0 %v5485_v37  ;;  %v5514_v37 = vld [vmem:[#allocation7 + $0x158] sm:$0xff]  }
 0x5e7   : > { %4955 = vmatpush3.bf16.msra.mxu0 %v5487_v39 }
 0x5e8   : > { %4956 = vmatprep.subr.bf16.mxu0 %v5489_v41  ;;  %v5516_v41 = vld [vmem:[#allocation7 + $0x118] sm:$0xff]  }
 0x5eb   : > { %4957 = vmatpush3.bf16.msra.mxu0 %v5491_v43  ;;  %v5518_v43 = vld [vmem:[#allocation7 + $0x160] sm:$0xff]  }
 0x5ec   : > { %4958 = vmatprep.subr.bf16.mxu0 %v5493_v45 }
 0x5ef   : > { %4959 = vmatpush3.bf16.msra.mxu0 %v5495_v47  ;;  %v5520_v47 = vld [vmem:[#allocation7 + $0x120] sm:$0xff]  }
 0x5f0   : > { %4960 = vmatprep.subr.bf16.mxu0 %v5497_v49 }
 0x5f3   : > { %4961 = vmatpush3.bf16.msra.mxu0 %v5499_v51  ;;  %v5523_v51 = vld [vmem:[#allocation7 + $0x1a0] sm:$0xff]  }
 0x5f4   : > { %4962 = vmatprep.subr.bf16.mxu0 %v5501_v54  ;;  %v5526_v54 = vld [vmem:[#allocation7 + $0x170] sm:$0xff]  }
 0x5f7   : > { %4963 = vmatpush3.bf16.msra.mxu0 %v5502_v55  ;;  %v5527_v55 = vld [vmem:[#allocation7 + $0x1a8] sm:$0xff]  }
 0x5f8   : > { %4992 = vmatprep.subr.bf16.mxu0 %v5505_v57  ;;  %v5529_v57 = vld [vmem:[#allocation7 + $0x1f0] sm:$0xff]  }
 0x6ad   : > { %v1807_v16 = vpop.f32.mrb[16].mxu0 }
 0x6ae   : > { %v1820_v18 = vmul.f32 %v4638_v15, %v1807_v16  ;;  %v1809_v19 = vpop.f32.mrb[17].mxu0 }
 0x6af   : > { %v1810_v21 = vpop.f32.mrb[18].mxu0 }
 0x6b0   : > { %v6484_v22 = vadd.f32 %v4639_v17, %v1820_v18  ;;  %v1811_v23 = vpop.f32.mrb[19].mxu0  ;;  %v5504_v18 = vld [vmem:[#allocation7 + $0x100] sm:$0xff]   ;;  %v5657_v17 = vld [vmem:[#allocation10 + $0x1d0] sm:$0xff]  }
 0x6b1   : > { %v5506_v23 = vld [vmem:[#allocation7 + $0x148] sm:$0xff]  }
 0x6b2   : > { %2122 = vrot.lane.b32.xlu0 %v6484_v22, %s6698_s21 }
 0x724   : > { %v2123_v58 = vpop.permute.xlu0 %2122 }
 0x725   : > { %v2125_v59 = vsel %vm841_vm9, 0.0, %v2123_v58  ;;  %v2126_v60 = vsel %vm841_vm9, %v2123_v58, 0.0  ;;  %v5530_v58 = vld [vmem:[#allocation7 + $0x178] sm:$0xff]  }
 0x726   : > { %v2129_v61 = vrot.slane %v2125_v59, 7  ;;  %v2130_v62 = vrot.slane %v2126_v60, 7  ;;  %v5531_v59 = vld [vmem:[#allocation7 + $0x1b0] sm:$0xff]   ;;  %v5532_v60 = vld [vmem:[#allocation7 + $0x138] sm:$0xff]  }
 0x728   : > { %v2133_v63 = vsel %vm789_vm2, 0.0, %v2129_v61  ;;  %v2134_v0 = vsel %vm789_vm2, 0.0, %v2130_v62  ;;  %v5533_v61 = vld [vmem:[#allocation7 + $0x1f8] sm:$0xff]  }
 0x729   : > { %v2135_v1 = vsel %vm796_vm3, %v2133_v63, 0.0  ;;  %v2136_v2 = vsel %vm796_vm3, %v2134_v0, 0.0  ;;  %v4713_v19 = vpack.c.bf16 %v2133_v63, %v2133_v63  ;;  %v5534_v62 = vld [vmem:[#allocation7 + $0x1b8] sm:$0xff]   ;;  %v5535_v63 = vld [vmem:[#allocation7 + $0x200] sm:$0xff]  }
 0x72a   : > { %v2137_v3 = vpack.c.bf16 %v2135_v1, %v2135_v1  ;;  %v2138_v4 = vpack.c.bf16 %v2136_v2, %v2136_v2  ;;  %v5536_v1 = vld [vmem:[#allocation7 + $0x208] sm:$0xff]   ;;  %v5537_v2 = vld [vmem:[#allocation7 + $0x210] sm:$0xff]  }
 0x72c   : > { %2143 = vrot.lane.b32.xlu0 %v2138_v4, %s5904_s17  ;;  %2141 = vrot.lane.b32.xlu1 %v2137_v3, %s5904_s17  ;;  %v2158_v6 = vshll.u32 %v2137_v3, 16  ;;  %v2166_v7 = vshll.u32 %v2138_v4, 16  ;;  %v2156_v8 = vshrl.u32 %v2137_v3, 16  ;;  %v2164_v12 = vshrl.u32 %v2138_v4, 16 }
 0x72d   : > { %v2184_v5 = vrot.slane %v2138_v4, 1  ;;  %v6502_v14 = vrot.slane %v2137_v3, 1 }
 0x72e   : > { %v2160_v9 = vrot.slane %v2158_v6, 1  ;;  %v2168_v10 = vrot.slane %v2166_v7, 1  ;;  %v5540_v6 = vld [vmem:[#allocation7 + $0x228] sm:$0xff]   ;;  %v5541_v7 = vld [vmem:[#allocation7 + $0x230] sm:$0xff]  }
 0x730   : > { %2150 = vrot.lane.b32.xlu0 %v2138_v4, %s5905_s22  ;;  %2148 = vrot.lane.b32.xlu1 %v2137_v3, %s5905_s22  ;;  %v2161_v11 = vor.u32 %v2160_v9, %v2156_v8  ;;  %v2169_v13 = vor.u32 %v2168_v10, %v2164_v12  ;;  %v5538_v3 = vld [vmem:[#allocation7 + $0x218] sm:$0xff]   ;;  %v5539_v4 = vld [vmem:[#allocation7 + $0x220] sm:$0xff]  }
 0x731   : > { %v5542_v8 = vld [vmem:[#allocation7 + $0x238] sm:$0xff]  }
 0x732   : > { %2701 = vmatprep.mubr.bf16.mxu0 %v2161_v11 }
 0x734   : > { %2178 = vrot.lane.b32.xlu0 %v2169_v13, %s5905_s22  ;;  %2176 = vrot.lane.b32.xlu1 %v2161_v11, %s5905_s22 }
 0x738   : > { %2172 = vrot.lane.b32.xlu0 %v2169_v13, %s5904_s17  ;;  %2170 = vrot.lane.b32.xlu1 %v2161_v11, %s5904_s17 }
 0x73c   : > { %2187 = vrot.lane.b32.xlu0 %v2184_v5, %s5904_s17  ;;  %2185 = vrot.lane.b32.xlu1 %v6502_v14, %s5904_s17 }
 0x740   : > { %2193 = vrot.lane.b32.xlu0 %v2184_v5, %s5905_s22  ;;  %2191 = vrot.lane.b32.xlu1 %v6502_v14, %s5905_s22 }
 0x79e   : > { %v2144_v15 = vpop.permute.xlu0 %2143  ;;  %v2142_v16 = vpop.permute.xlu1 %2141 }
 0x79f   : > { %v2146_v21 = vsel %vm827_vm8, %v2142_v16, %v2144_v15 }
 0x7a0   : > { %2661 = vmatprep.mubr.bf16.mxu1 %v2146_v21 }
 0x7a1   : > { %4714 = vmatmul.mubr.msk.bf16.vlgmr.msra.gmra.mrb[8].mxu1 %vm6512_vm4, %v4713_v19 }
 0x7a2   : > { %4971 = vmatpush3.bf16.msra.mxu1 %v5504_v18  ;;  %v2151_v25 = vpop.permute.xlu0 %2150  ;;  %v2149_v26 = vpop.permute.xlu1 %2148 }
 0x7a3   : > { %v2153_v29 = vsel %vm834_vm6, %v2149_v26, %v2151_v25  ;;  %4972 = vmatprep.subr.bf16.mxu1 %v5506_v23 }
 0x7a4   : > { %2702 = vmatmul.mubr.bf16.vlgmr.msra.gmra.mrb[20].mxu0 %v2153_v29 }
 0x7a5   : > { %4993 = vmatpush3.bf16.msra.mxu0 %v5507_v24 }
 0x7a6   : > { %4973 = vmatpush3.bf16.msra.mxu1 %v5508_v27  ;;  %v2179_v32 = vpop.permute.xlu0 %2178  ;;  %v2177_v33 = vpop.permute.xlu1 %2176  ;;  %4994 = vmatprep.subr.bf16.mxu0 %v5509_v28 }
 0x7a7   : > { %4974 = vmatprep.subr.bf16.mxu1 %v5510_v30  ;;  %v2180_v36 = vsel %vm834_vm6, %v2177_v33, %v2179_v32 }
 0x7a8   : > { %2741 = vmatprep.mubr.bf16.mxu1 %v2180_v36 }
 0x7a9   : > { %4995 = vmatpush3.bf16.msra.mxu0 %v5511_v31 }
 0x7aa   : > { %4975 = vmatpush3.bf16.msra.mxu1 %v5512_v34  ;;  %v2173_v39 = vpop.permute.xlu0 %2172  ;;  %v2171_v40 = vpop.permute.xlu1 %2170  ;;  %4996 = vmatprep.subr.bf16.mxu0 %v5513_v35 }
 0x7ab   : > { %4976 = vmatprep.subr.bf16.mxu1 %v5514_v37  ;;  %v2174_v0 = vsel %vm827_vm8, %v2171_v40, %v2173_v39  ;;  %v4715_v37 = vld [vmem:[%s6655_s12] ss:$0 sm:$0xff] }
 0x7ad   : > { %4997 = vmatpush3.bf16.msra.mxu0 %v5515_v38 }
 0x7ae   : > { %4977 = vmatpush3.bf16.msra.mxu1 %v5516_v41  ;;  %v2188_v45 = vpop.permute.xlu0 %2187  ;;  %v2186_v46 = vpop.permute.xlu1 %2185  ;;  %4998 = vmatprep.subr.bf16.mxu0 %v5517_v42  ;;  %v4716_v42 = vld [vmem:[%s6656_s13] ss:$0 sm:$0xff] }
 0x7af   : > { %4978 = vmatprep.subr.bf16.mxu1 %v5518_v43  ;;  %v2189_v49 = vsel %vm827_vm8, %v2186_v46, %v2188_v45 }
 0x7b0   : > { %2781 = vmatprep.mubr.bf16.mxu0 %v2189_v49  ;;  %v5545_v49 = vld [vmem:[#allocation9 + $0xc0] sm:$0xff]  }
 0x7b1   : > { %4999 = vmatpush3.bf16.msra.mxu0 %v5519_v44 }
 0x7b2   : > { %4979 = vmatpush3.bf16.msra.mxu1 %v5520_v47  ;;  %5000 = vmatprep.subr.bf16.mxu0 %v5521_v48  ;;  %v2194_v9 = vpop.permute.xlu0 %2193  ;;  %v2192_v10 = vpop.permute.xlu1 %2191  ;;  %v5543_v47 = vld [vmem:[#allocation9 + $0x40] sm:$0xff]  }
 0x7b3   : > { %4980 = vmatprep.subr.bf16.mxu1 %v5522_v50  ;;  %v2195_v11 = vsel %vm834_vm6, %v2192_v10, %v2194_v9  ;;  %v5544_v48 = vld [vmem:[#allocation9] sm:$0xff]   ;;  %v5546_v50 = vld [vmem:[#allocation9 + $0x48] sm:$0xff]   ;;  %v5569_v9 = vld [vmem:[#allocation9 + $0xf0] sm:$0xff]  }
 0x7b4   : > { %v5568_v10 = vld [vmem:[#allocation9 + $0x30] sm:$0xff]  }
 0x7b5   : > { %5001 = vmatpush3.bf16.msra.mxu0 %v5523_v51  ;;  %v5547_v51 = vld [vmem:[#allocation9 + $0x80] sm:$0xff]  }
 0x7b6   : > { %4981 = vmatpush3.bf16.msra.mxu1 %v5524_v52  ;;  %5002 = vmatprep.subr.bf16.mxu0 %v5525_v53  ;;  %v5549_v52 = vld [vmem:[#allocation9 + $0xc8] sm:$0xff]  }
 0x7b7   : > { %4982 = vmatprep.subr.bf16.mxu1 %v5526_v54  ;;  %v5548_v53 = vld [vmem:[#allocation9 + $0x8] sm:$0xff]  }
 0x7b8   : > { %v5551_v54 = vld [vmem:[#allocation9 + $0x88] sm:$0xff]  }
 0x7b9   : > { %5003 = vmatpush3.bf16.msra.mxu0 %v5527_v55  ;;  %v5550_v55 = vld [vmem:[#allocation9 + $0x50] sm:$0xff]  }
 0x7ba   : > { %4983 = vmatpush3.bf16.msra.mxu1 %v5528_v56  ;;  %5004 = vmatprep.subr.bf16.mxu0 %v5529_v57  ;;  %v5553_v56 = vld [vmem:[#allocation9 + $0xd0] sm:$0xff]  }
 0x7bb   : > { %4984 = vmatprep.subr.bf16.mxu1 %v5530_v58  ;;  %v5552_v57 = vld [vmem:[#allocation9 + $0x10] sm:$0xff]  }
 0x7bc   : > { %v5555_v58 = vld [vmem:[#allocation9 + $0x90] sm:$0xff]  }
 0x7bd   : > { %5005 = vmatpush3.bf16.msra.mxu0 %v5531_v59  ;;  %v5554_v59 = vld [vmem:[#allocation9 + $0x58] sm:$0xff]  }
 0x7be   : > { %4985 = vmatpush3.bf16.msra.mxu1 %v5532_v60  ;;  %5006 = vmatprep.subr.bf16.mxu0 %v5533_v61  ;;  %v5557_v60 = vld [vmem:[#allocation9 + $0xd8] sm:$0xff]  }
 0x7bf   : > { %5238 = vmatprep.subr.bf16.mxu1 %v5901_v20  ;;  %v5556_v61 = vld [vmem:[#allocation9 + $0x18] sm:$0xff]  }
 0x7c1   : > { %2742 = vmatmul.mubr.bf16.vlgmr.msra.gmra.mrb[12].mxu1 %v2174_v0  ;;  %5007 = vmatpush3.bf16.msra.mxu0 %v5534_v62  ;;  %v5559_v62 = vld [vmem:[#allocation9 + $0x98] sm:$0xff]   ;;  %v5561_v0 = vld [vmem:[#allocation9 + $0xe0] sm:$0xff]  }
 0x7c2   : > { %5239 = vmatpush3.bf16.msra.mxu1 %v5535_v63  ;;  %5254 = vmatprep.mubr.msk.bf16.mxu1 %vm5900_vm11, %v5901_v20  ;;  %v5558_v63 = vld [vmem:[#allocation9 + $0x60] sm:$0xff]  }
 0x7c3   : > { %5240 = vmatprep.subr.bf16.mxu1 %v5901_v20  ;;  %5023 = vmatprep.subr.bf16.mxu0 %v5543_v47  ;;  %v5579_v47 = vld [vmem:[#allocation9 + $0x180] sm:$0xff]  }
 0x7c4   : > { %2782 = vmatmul.mubr.bf16.vlgmr.msra.gmra.mrb[24].mxu0 %v6502_v14 }
 0x7c5   : > { %5024 = vmatpush3.bf16.msra.mxu0 %v5544_v48 }
 0x7c6   : > { %5241 = vmatpush3.bf16.msra.mxu1 %v5536_v1  ;;  %5025 = vmatprep.subr.bf16.mxu0 %v5546_v50  ;;  %v5560_v1 = vld [vmem:[#allocation9 + $0x20] sm:$0xff]   ;;  %v5580_v50 = vld [vmem:[#allocation9 + $0x108] sm:$0xff]  }
 0x7c7   : > { %5242 = vmatprep.subr.bf16.mxu1 %v5901_v20 }
 0x7c9   : > { %5026 = vmatpush3.bf16.msra.mxu0 %v5548_v53  ;;  %v5582_v53 = vld [vmem:[#allocation9 + $0x150] sm:$0xff]  }
 0x7ca   : > { %5243 = vmatpush3.bf16.msra.mxu1 %v5537_v2  ;;  %5027 = vmatprep.subr.bf16.mxu0 %v5550_v55  ;;  %v5563_v2 = vld [vmem:[#allocation9 + $0xa0] sm:$0xff]  }
 0x7cb   : > { %5244 = vmatprep.subr.bf16.mxu1 %v5901_v20 }
 0x7cd   : > { %5028 = vmatpush3.bf16.msra.mxu0 %v5552_v57  ;;  %v5584_v57 = vld [vmem:[#allocation9 + $0x110] sm:$0xff]  }
 0x7ce   : > { %5245 = vmatpush3.bf16.msra.mxu1 %v5538_v3  ;;  %5029 = vmatprep.subr.bf16.mxu0 %v5554_v59  ;;  %v5562_v3 = vld [vmem:[#allocation9 + $0x68] sm:$0xff]  }
 0x7cf   : > { %5246 = vmatprep.subr.bf16.mxu1 %v5901_v20 }
 0x7d1   : > { %5030 = vmatpush3.bf16.msra.mxu0 %v5556_v61  ;;  %v5587_v61 = vld [vmem:[#allocation9 + $0x190] sm:$0xff]  }
 0x7d2   : > { %5247 = vmatpush3.bf16.msra.mxu1 %v5539_v4  ;;  %5031 = vmatprep.subr.bf16.mxu0 %v5558_v63  ;;  %v5565_v4 = vld [vmem:[#allocation9 + $0xe8] sm:$0xff]  }
 0x7d3   : > { %5248 = vmatprep.subr.bf16.mxu1 %v5901_v20 }
 0x7d5   : > { %5032 = vmatpush3.bf16.msra.mxu0 %v5560_v1  ;;  %v5589_v1 = vld [vmem:[#allocation9 + $0x1d8] sm:$0xff]  }
 0x7d6   : > { %5249 = vmatpush3.bf16.msra.mxu1 %v5540_v6  ;;  %v5564_v6 = vld [vmem:[#allocation9 + $0x28] sm:$0xff]   ;;  %5033 = vmatprep.subr.bf16.mxu0 %v5562_v3  ;;  %v5591_v3 = vld [vmem:[#allocation9 + $0x198] sm:$0xff]  }
 0x7d7   : > { %5250 = vmatprep.subr.bf16.mxu1 %v5901_v20 }
 0x7d9   : > { %5034 = vmatpush3.bf16.msra.mxu0 %v5564_v6 }
 0x7da   : > { %5251 = vmatpush3.bf16.msra.mxu1 %v5541_v7  ;;  %v5567_v7 = vld [vmem:[#allocation9 + $0xa8] sm:$0xff]  }
 0x7db   : > { %5252 = vmatprep.subr.bf16.mxu1 %v5901_v20 }
 0x7de   : > { %5253 = vmatpush3.bf16.msra.mxu1 %v5542_v8  ;;  %v5566_v8 = vld [vmem:[#allocation9 + $0x70] sm:$0xff]  }
 0x7df   : > { %5045 = vmatprep.subr.bf16.mxu1 %v5545_v49  ;;  %5035 = vmatprep.subr.bf16.mxu0 %v5566_v8  ;;  %v5593_v8 = vld [vmem:[#allocation9 + $0x1e0] sm:$0xff]  }
 0x7e0   : > { %5036 = vmatpush3.bf16.msra.mxu0 %v5568_v10  ;;  %v5594_v10 = vld [vmem:[#allocation9 + $0x168] sm:$0xff]  }
 0x7e1   : > { %5255 = vmatmul.mubr.bf16.vlgmr.msra.gmra.mrb[16].mxu1 %v2195_v11  ;;  %v5571_v11 = vld [vmem:[#allocation9 + $0xb0] sm:$0xff]  }
 0x7e2   : > { %5046 = vmatpush3.bf16.msra.mxu1 %v5547_v51  ;;  %v5581_v51 = vld [vmem:[#allocation9 + $0x1c8] sm:$0xff]  }
 0x7e3   : > { %5047 = vmatprep.subr.bf16.mxu1 %v5549_v52 }
 0x7e6   : > { %5048 = vmatpush3.bf16.msra.mxu1 %v5551_v54  ;;  %v5583_v54 = vld [vmem:[#allocation9 + $0x188] sm:$0xff]  }
 0x7e7   : > { %5049 = vmatprep.subr.bf16.mxu1 %v5553_v56 }
 0x7ea   : > { %5050 = vmatpush3.bf16.msra.mxu1 %v5555_v58  ;;  %v5585_v58 = vld [vmem:[#allocation9 + $0x1d0] sm:$0xff]  }
 0x7eb   : > { %5051 = vmatprep.subr.bf16.mxu1 %v5557_v60  ;;  %v5586_v60 = vld [vmem:[#allocation9 + $0x158] sm:$0xff]  }
 0x7ee   : > { %5052 = vmatpush3.bf16.msra.mxu1 %v5559_v62 }
 0x7ef   : > { %5053 = vmatprep.subr.bf16.mxu1 %v5561_v0  ;;  %v5588_v0 = vld [vmem:[#allocation9 + $0x118] sm:$0xff]  }
 0x7f2   : > { %5054 = vmatpush3.bf16.msra.mxu1 %v5563_v2  ;;  %v5590_v2 = vld [vmem:[#allocation9 + $0x160] sm:$0xff]  }
 0x7f3   : > { %5055 = vmatprep.subr.bf16.mxu1 %v5565_v4 }
 0x7f6   : > { %5056 = vmatpush3.bf16.msra.mxu1 %v5567_v7  ;;  %v5592_v7 = vld [vmem:[#allocation9 + $0x120] sm:$0xff]  }
 0x7f7   : > { %5057 = vmatprep.subr.bf16.mxu1 %v5569_v9 }
 0x7fa   : > { %5058 = vmatpush3.bf16.msra.mxu1 %v5571_v11  ;;  %v5595_v11 = vld [vmem:[#allocation9 + $0x1a0] sm:$0xff]  }
 0x874   : > { %v4942_v12 = vpop.f32.mrb[8].mxu1 }
 0x875   : > { %v4943_v13 = vpop.f32.mrb[9].mxu1 }
 0x876   : > { %v4944_v5 = vadd.f32 %v4943_v13, %v4942_v12  ;;  %v4945_v14 = vpop.f32.mrb[10].mxu1  ;;  %v5570_v12 = vld [vmem:[#allocation9 + $0x78] sm:$0xff]  }
 0x877   : > { %v4946_v15 = vpop.f32.mrb[11].mxu1  ;;  %v4964_v16 = vpop.f32.mrb[20].mxu0  ;;  %v5572_v13 = vld [vmem:[#allocation9 + $0x38] sm:$0xff]   ;;  %5037 = vmatprep.subr.bf16.mxu0 %v5570_v12  ;;  %v5596_v12 = vld [vmem:[#allocation9 + $0x128] sm:$0xff]  }
 0x878   : > { %v4965_v18 = vpop.f32.mrb[21].mxu0  ;;  %5038 = vmatpush3.bf16.msra.mxu0 %v5572_v13  ;;  %v5574_v14 = vld [vmem:[#allocation9 + $0xb8] sm:$0xff]   ;;  %v5575_v15 = vld [vmem:[#allocation9 + $0x140] sm:$0xff]   ;;  %v5597_v13 = vld [vmem:[#allocation9 + $0x1e8] sm:$0xff]  }
 0x879   : > { %v4966_v19 = vadd.f32 %v4965_v18, %v4964_v16  ;;  %v4967_v21 = vpop.f32.mrb[22].mxu0  ;;  %5067 = vmatprep.subr.bf16.mxu0 %v5575_v15  ;;  %v5577_v16 = vld [vmem:[#allocation9 + $0x1c0] sm:$0xff]   ;;  %v5600_v15 = vld [vmem:[#allocation9 + $0x130] sm:$0xff]  }
 0x87a   : > { %v4968_v23 = vpop.f32.mrb[23].mxu0 }
 0x87b   : > { %v2704_v24 = vadd.f32 %v4966_v19, %v4944_v5  ;;  %v5573_v5 = vld [vmem:[#allocation9 + $0xf8] sm:$0xff]  }
 0x87c   : > { %5059 = vmatprep.subr.bf16.mxu1 %v5573_v5  ;;  %v5598_v5 = vld [vmem:[#allocation9 + $0x170] sm:$0xff]  }
 0x87d   : > { %5060 = vmatpush3.bf16.msra.mxu1 %v5574_v14  ;;  %v5599_v14 = vld [vmem:[#allocation9 + $0x1a8] sm:$0xff]  }
 0x87e   : > { %5089 = vmatprep.subr.bf16.mxu1 %v5577_v16  ;;  %v5601_v16 = vld [vmem:[#allocation9 + $0x1f0] sm:$0xff]  }
 0x894   : > { %v4986_v25 = vpop.f32.mrb[12].mxu1 }
 0x895   : > { %v4987_v26 = vpop.f32.mrb[13].mxu1 }
 0x896   : > { %v4988_v27 = vadd.f32 %v4987_v26, %v4986_v25  ;;  %v4989_v28 = vpop.f32.mrb[14].mxu1 }
 0x897   : > { %v4990_v29 = vpop.f32.mrb[15].mxu1  ;;  %v5008_v30 = vpop.f32.mrb[24].mxu0 }
 0x898   : > { %v2744_v31 = vadd.f32 %v4988_v27, %v2704_v24  ;;  %v5009_v32 = vpop.f32.mrb[25].mxu0 }
 0x899   : > { %v5010_v33 = vadd.f32 %v5009_v32, %v5008_v30  ;;  %v5011_v34 = vpop.f32.mrb[26].mxu0 }
 0x89a   : > { %v5012_v35 = vpop.f32.mrb[27].mxu0 }
 0x89b   : > { %v2784_v36 = vadd.f32 %v5010_v33, %v2744_v31 }
 0x8b4   : > { %v2823_v38 = vpop.f32.mrb[16].mxu1 }
 0x8b5   : > { %v2824_v39 = vadd.f32 %v2823_v38, %v2784_v36  ;;  %v5256_v40 = vpop.f32.mrb[17].mxu1 }
 0x8b6   : > { %v2826_v41 = vpop.f32.mrb[18].mxu1 }
 0x8b7   : > { %v2835_v43 = vmul.f32 %v4715_v37, %v2824_v39  ;;  %v5257_v44 = vpop.f32.mrb[19].mxu1 }
 0x8b9   : > { %v2842_v45 = vadd.f32 %v4716_v42, %v2835_v43  ;;  %v5576_v43 = vld [vmem:[#allocation9 + $0x100] sm:$0xff]  }
 0x8bb   : > { %v2843_v46 = vmax.f32 %v2842_v45, 0.0 }
 0x8bd   : > { %2845 = vrot.lane.b32.xlu1 %v2843_v46, %s6698_s21  ;;  %v5578_v46 = vld [vmem:[#allocation9 + $0x148] sm:$0xff]  }
 0x92f   : > { %v2846_v18 = vpop.permute.xlu1 %2845 }
 0x930   : > { %v2848_v19 = vsel %vm841_vm9, 0.0, %v2846_v18  ;;  %v2849_v21 = vsel %vm841_vm9, %v2846_v18, 0.0  ;;  %v5602_v18 = vld [vmem:[#allocation9 + $0x178] sm:$0xff]  }
 0x931   : > { %v2852_v23 = vrot.slane %v2848_v19, 7  ;;  %v2853_v24 = vrot.slane %v2849_v21, 7  ;;  %v5603_v19 = vld [vmem:[#allocation9 + $0x1b0] sm:$0xff]   ;;  %v5604_v21 = vld [vmem:[#allocation9 + $0x138] sm:$0xff]  }
 0x933   : > { %v2856_v25 = vsel %vm789_vm2, 0.0, %v2852_v23  ;;  %v2857_v26 = vsel %vm789_vm2, 0.0, %v2853_v24  ;;  %v5605_v23 = vld [vmem:[#allocation9 + $0x1f8] sm:$0xff]  }
 0x934   : > { %v2858_v27 = vsel %vm796_vm3, %v2856_v25, 0.0  ;;  %v2859_v28 = vsel %vm796_vm3, %v2857_v26, 0.0  ;;  %v4790_v44 = vpack.c.bf16 %v2856_v25, %v2856_v25  ;;  %v5606_v24 = vld [vmem:[#allocation9 + $0x1b8] sm:$0xff]   ;;  %v5607_v25 = vld [vmem:[#allocation9 + $0x200] sm:$0xff]  }
 0x935   : > { %v2860_v29 = vpack.c.bf16 %v2858_v27, %v2858_v27  ;;  %v2861_v30 = vpack.c.bf16 %v2859_v28, %v2859_v28  ;;  %v5608_v27 = vld [vmem:[#allocation9 + $0x208] sm:$0xff]   ;;  %v5609_v28 = vld [vmem:[#allocation9 + $0x210] sm:$0xff]  }
 0x937   : > { %2866 = vrot.lane.b32.xlu1 %v2861_v30, %s5904_s17  ;;  %2864 = vrot.lane.b32.xlu0 %v2860_v29, %s5904_s17  ;;  %v2879_v31 = vshll.u32 %v2860_v29, 16  ;;  %v2887_v32 = vshll.u32 %v2861_v30, 16  ;;  %v2877_v33 = vshrl.u32 %v2860_v29, 16  ;;  %v2885_v37 = vshrl.u32 %v2861_v30, 16 }
 0x938   : > { %v2905_v39 = vrot.slane %v2861_v30, 1  ;;  %v6556_v40 = vrot.slane %v2860_v29, 1 }
 0x939   : > { %v2881_v34 = vrot.slane %v2879_v31, 1  ;;  %v2889_v35 = vrot.slane %v2887_v32, 1  ;;  %v5612_v31 = vld [vmem:[#allocation9 + $0x228] sm:$0xff]   ;;  %v5613_v32 = vld [vmem:[#allocation9 + $0x230] sm:$0xff]  }
 0x93b   : > { %2872 = vrot.lane.b32.xlu1 %v2861_v30, %s5905_s22  ;;  %2870 = vrot.lane.b32.xlu0 %v2860_v29, %s5905_s22  ;;  %v2882_v36 = vor.u32 %v2881_v34, %v2877_v33  ;;  %v2890_v38 = vor.u32 %v2889_v35, %v2885_v37  ;;  %v5610_v29 = vld [vmem:[#allocation9 + $0x218] sm:$0xff]   ;;  %v5611_v30 = vld [vmem:[#allocation9 + $0x220] sm:$0xff]  }
 0x93c   : > { %v5614_v33 = vld [vmem:[#allocation9 + $0x238] sm:$0xff]  }
 0x93d   : > { %3422 = vmatprep.mubr.bf16.mxu1 %v2882_v36 }
 0x93f   : > { %2899 = vrot.lane.b32.xlu1 %v2890_v38, %s5905_s22  ;;  %2897 = vrot.lane.b32.xlu0 %v2882_v36, %s5905_s22 }
 0x943   : > { %2893 = vrot.lane.b32.xlu1 %v2890_v38, %s5904_s17  ;;  %2891 = vrot.lane.b32.xlu0 %v2882_v36, %s5904_s17 }
 0x947   : > { %2908 = vrot.lane.b32.xlu1 %v2905_v39, %s5904_s17  ;;  %2906 = vrot.lane.b32.xlu0 %v6556_v40, %s5904_s17 }
 0x94b   : > { %2914 = vrot.lane.b32.xlu1 %v2905_v39, %s5905_s22  ;;  %2912 = vrot.lane.b32.xlu0 %v6556_v40, %s5905_s22 }
 0x9a9   : > { %v2867_v41 = vpop.permute.xlu1 %2866  ;;  %v2865_v42 = vpop.permute.xlu0 %2864 }
 0x9aa   : > { %v2868_v45 = vsel %vm827_vm8, %v2865_v42, %v2867_v41 }
 0x9ab   : > { %3382 = vmatprep.mubr.bf16.mxu0 %v2868_v45 }
 0x9ac   : > { %4791 = vmatmul.mubr.msk.bf16.vlgmr.msra.gmra.mrb[28].mxu0 %vm6512_vm4, %v4790_v44 }
 0x9ad   : > { %5068 = vmatpush3.bf16.msra.mxu0 %v5576_v43  ;;  %v2873_v48 = vpop.permute.xlu1 %2872  ;;  %v2871_v49 = vpop.permute.xlu0 %2870 }
 0x9ae   : > { %v2874_v52 = vsel %vm834_vm6, %v2871_v49, %v2873_v48  ;;  %5069 = vmatprep.subr.bf16.mxu0 %v5578_v46 }
 0x9af   : > { %3423 = vmatmul.mubr.bf16.vlgmr.msra.gmra.mrb[20].mxu1 %v2874_v52 }
 0x9b0   : > { %5090 = vmatpush3.bf16.msra.mxu1 %v5579_v47 }
 0x9b1   : > { %5070 = vmatpush3.bf16.msra.mxu0 %v5580_v50  ;;  %v2900_v55 = vpop.permute.xlu1 %2899  ;;  %v2898_v56 = vpop.permute.xlu0 %2897  ;;  %5091 = vmatprep.subr.bf16.mxu1 %v5581_v51 }
 0x9b2   : > { %5071 = vmatprep.subr.bf16.mxu0 %v5582_v53  ;;  %v2901_v59 = vsel %vm834_vm6, %v2898_v56, %v2900_v55 }
 0x9b3   : > { %3462 = vmatprep.mubr.bf16.mxu0 %v2901_v59 }
 0x9b4   : > { %5092 = vmatpush3.bf16.msra.mxu1 %v5583_v54 }
 0x9b5   : > { %5072 = vmatpush3.bf16.msra.mxu0 %v5584_v57  ;;  %v2894_v62 = vpop.permute.xlu1 %2893  ;;  %v2892_v63 = vpop.permute.xlu0 %2891  ;;  %5093 = vmatprep.subr.bf16.mxu1 %v5585_v58 }
 0x9b6   : > { %5073 = vmatprep.subr.bf16.mxu0 %v5586_v60  ;;  %v2895_v26 = vsel %vm827_vm8, %v2892_v63, %v2894_v62  ;;  %v4792_v60 = vld [vmem:[%s6657_s14] ss:$0 sm:$0xff] }
 0x9b8   : > { %5094 = vmatpush3.bf16.msra.mxu1 %v5587_v61 }
 0x9b9   : > { %5074 = vmatpush3.bf16.msra.mxu0 %v5588_v0  ;;  %v2909_v4 = vpop.permute.xlu1 %2908  ;;  %v2907_v6 = vpop.permute.xlu0 %2906  ;;  %5095 = vmatprep.subr.bf16.mxu1 %v5589_v1  ;;  %v4793_v0 = vld [vmem:[%s6658_s15] ss:$0 sm:$0xff] }
 0x9ba   : > { %5075 = vmatprep.subr.bf16.mxu0 %v5590_v2  ;;  %v2910_v9 = vsel %vm827_vm8, %v2907_v6, %v2909_v4 }
 0x9bb   : > { %3502 = vmatprep.mubr.bf16.mxu1 %v2910_v9  ;;  %v5615_v9 = vld [vmem:[#allocation10 + $0x40] sm:$0xff]  }
 0x9bc   : > { %5096 = vmatpush3.bf16.msra.mxu1 %v5591_v3 }
 0x9bd   : > { %5076 = vmatpush3.bf16.msra.mxu0 %v5592_v7  ;;  %5097 = vmatprep.subr.bf16.mxu1 %v5593_v8  ;;  %v2915_v34 = vpop.permute.xlu1 %2914  ;;  %v2913_v35 = vpop.permute.xlu0 %2912 }
 0x9be   : > { %5077 = vmatprep.subr.bf16.mxu0 %v5594_v10  ;;  %v2916_v36 = vsel %vm834_vm6, %v2913_v35, %v2915_v34  ;;  %v5616_v10 = vld [vmem:[#allocation10] sm:$0xff]   ;;  %v5638_v34 = vld [vmem:[#allocation10 + $0x70] sm:$0xff]  }
 0x9bf   : > { %v5641_v35 = vld [vmem:[#allocation10 + $0xf0] sm:$0xff]  }
 0x9c0   : > { %5098 = vmatpush3.bf16.msra.mxu1 %v5595_v11  ;;  %v5617_v11 = vld [vmem:[#allocation10 + $0xc0] sm:$0xff]  }
 0x9c1   : > { %5078 = vmatpush3.bf16.msra.mxu0 %v5596_v12  ;;  %5099 = vmatprep.subr.bf16.mxu1 %v5597_v13  ;;  %v5618_v12 = vld [vmem:[#allocation10 + $0x48] sm:$0xff]   ;;  %v5619_v13 = vld [vmem:[#allocation10 + $0x80] sm:$0xff]  }
 0x9c2   : > { %5079 = vmatprep.subr.bf16.mxu0 %v5598_v5  ;;  %v5621_v5 = vld [vmem:[#allocation10 + $0xc8] sm:$0xff]  }
 0x9c4   : > { %5100 = vmatpush3.bf16.msra.mxu1 %v5599_v14  ;;  %v5620_v14 = vld [vmem:[#allocation10 + $0x8] sm:$0xff]  }
 0x9c5   : > { %5080 = vmatpush3.bf16.msra.mxu0 %v5600_v15  ;;  %5101 = vmatprep.subr.bf16.mxu1 %v5601_v16  ;;  %v5623_v15 = vld [vmem:[#allocation10 + $0x88] sm:$0xff]   ;;  %v5622_v16 = vld [vmem:[#allocation10 + $0x50] sm:$0xff]  }
 0x9c6   : > { %5081 = vmatprep.subr.bf16.mxu0 %v5602_v18  ;;  %v5625_v18 = vld [vmem:[#allocation10 + $0xd0] sm:$0xff]  }
 0x9c8   : > { %5102 = vmatpush3.bf16.msra.mxu1 %v5603_v19  ;;  %v5627_v19 = vld [vmem:[#allocation10 + $0x90] sm:$0xff]  }
 0x9c9   : > { %5082 = vmatpush3.bf16.msra.mxu0 %v5604_v21  ;;  %5103 = vmatprep.subr.bf16.mxu1 %v5605_v23  ;;  %v5626_v21 = vld [vmem:[#allocation10 + $0x58] sm:$0xff]  }
 0x9ca   : > { %5258 = vmatprep.subr.bf16.mxu0 %v5901_v20  ;;  %v5629_v23 = vld [vmem:[#allocation10 + $0xd8] sm:$0xff]  }
 0x9cc   : > { %3463 = vmatmul.mubr.bf16.vlgmr.msra.gmra.mrb[32].mxu0 %v2895_v26  ;;  %5104 = vmatpush3.bf16.msra.mxu1 %v5606_v24  ;;  %v5628_v24 = vld [vmem:[#allocation10 + $0x18] sm:$0xff]   ;;  %v5630_v26 = vld [vmem:[#allocation10 + $0x60] sm:$0xff]  }
 0x9cd   : > { %5259 = vmatpush3.bf16.msra.mxu0 %v5607_v25  ;;  %5274 = vmatprep.mubr.msk.bf16.mxu0 %vm5900_vm11, %v5901_v20  ;;  %v5631_v25 = vld [vmem:[#allocation10 + $0x98] sm:$0xff]  }
 0x9ce   : > { %5260 = vmatprep.subr.bf16.mxu0 %v5901_v20  ;;  %5120 = vmatprep.subr.bf16.mxu1 %v5615_v9 }
 0x9cf   : > { %3503 = vmatmul.mubr.bf16.vlgmr.msra.gmra.mrb[24].mxu1 %v6556_v40 }
 0x9d0   : > { %5121 = vmatpush3.bf16.msra.mxu1 %v5616_v10 }
 0x9d1   : > { %5261 = vmatpush3.bf16.msra.mxu0 %v5608_v27  ;;  %5122 = vmatprep.subr.bf16.mxu1 %v5618_v12  ;;  %v5633_v27 = vld [vmem:[#allocation10 + $0xe0] sm:$0xff]   ;;  %v5653_v12 = vld [vmem:[#allocation10 + $0x1c8] sm:$0xff]  }
 0x9d2   : > { %5262 = vmatprep.subr.bf16.mxu0 %v5901_v20 }
 0x9d4   : > { %5123 = vmatpush3.bf16.msra.mxu1 %v5620_v14  ;;  %v5655_v14 = vld [vmem:[#allocation10 + $0x188] sm:$0xff]  }
 0x9d5   : > { %5263 = vmatpush3.bf16.msra.mxu0 %v5609_v28  ;;  %5124 = vmatprep.subr.bf16.mxu1 %v5622_v16  ;;  %v5632_v28 = vld [vmem:[#allocation10 + $0x20] sm:$0xff]  }
 0x9d6   : > { %5264 = vmatprep.subr.bf16.mxu0 %v5901_v20 }
 0x9d9   : > { %5265 = vmatpush3.bf16.msra.mxu0 %v5610_v29  ;;  %v5635_v29 = vld [vmem:[#allocation10 + $0xa0] sm:$0xff]  }
 0x9da   : > { %5266 = vmatprep.subr.bf16.mxu0 %v5901_v20 }
 0x9dd   : > { %5267 = vmatpush3.bf16.msra.mxu0 %v5611_v30  ;;  %v5634_v30 = vld [vmem:[#allocation10 + $0x68] sm:$0xff]  }
 0x9de   : > { %5268 = vmatprep.subr.bf16.mxu0 %v5901_v20 }
 0x9e1   : > { %5269 = vmatpush3.bf16.msra.mxu0 %v5612_v31  ;;  %v5637_v31 = vld [vmem:[#allocation10 + $0xe8] sm:$0xff]  }
 0x9e2   : > { %5270 = vmatprep.subr.bf16.mxu0 %v5901_v20 }
 0x9e5   : > { %5271 = vmatpush3.bf16.msra.mxu0 %v5613_v32  ;;  %v5636_v32 = vld [vmem:[#allocation10 + $0x28] sm:$0xff]  }
 0x9e6   : > { %5272 = vmatprep.subr.bf16.mxu0 %v5901_v20 }
 0x9e9   : > { %5273 = vmatpush3.bf16.msra.mxu0 %v5614_v33  ;;  %v5639_v33 = vld [vmem:[#allocation10 + $0xa8] sm:$0xff]  }
 0x9ea   : > { %5142 = vmatprep.subr.bf16.mxu0 %v5617_v11  ;;  %v5652_v11 = vld [vmem:[#allocation10 + $0x108] sm:$0xff]  }
 0x9ec   : > { %5275 = vmatmul.mubr.bf16.vlgmr.msra.gmra.mrb[36].mxu0 %v2916_v36  ;;  %v5640_v36 = vld [vmem:[#allocation10 + $0x30] sm:$0xff]  }
 0x9ed   : > { %5143 = vmatpush3.bf16.msra.mxu0 %v5619_v13 }
 0x9ee   : > { %5144 = vmatprep.subr.bf16.mxu0 %v5621_v5  ;;  %v5654_v5 = vld [vmem:[#allocation10 + $0x150] sm:$0xff]  }
 0x9f1   : > { %5145 = vmatpush3.bf16.msra.mxu0 %v5623_v15 }
 0x9f2   : > { %5146 = vmatprep.subr.bf16.mxu0 %v5625_v18  ;;  %v5656_v18 = vld [vmem:[#allocation10 + $0x110] sm:$0xff]  }
 0x9f5   : > { %5147 = vmatpush3.bf16.msra.mxu0 %v5627_v19  ;;  %v5658_v19 = vld [vmem:[#allocation10 + $0x158] sm:$0xff]  }
 0x9f6   : > { %5148 = vmatprep.subr.bf16.mxu0 %v5629_v23 }
 0x9f9   : > { %5149 = vmatpush3.bf16.msra.mxu0 %v5631_v25  ;;  %v5660_v25 = vld [vmem:[#allocation10 + $0x118] sm:$0xff]  }
 0x9fa   : > { %5150 = vmatprep.subr.bf16.mxu0 %v5633_v27  ;;  %v5662_v27 = vld [vmem:[#allocation10 + $0x160] sm:$0xff]  }
 0x9fd   : > { %5151 = vmatpush3.bf16.msra.mxu0 %v5635_v29 }
 0x9fe   : > { %5152 = vmatprep.subr.bf16.mxu0 %v5637_v31  ;;  %v5664_v31 = vld [vmem:[#allocation10 + $0x120] sm:$0xff]  }
 0xa01   : > { %5153 = vmatpush3.bf16.msra.mxu0 %v5639_v33 }
 0xa02   : > { %5154 = vmatprep.subr.bf16.mxu0 %v5641_v35  ;;  %v5667_v35 = vld [vmem:[#allocation10 + $0x1a0] sm:$0xff]  }
 0xa7f   : > { %v5039_v37 = vpop.f32.mrb[28].mxu0 }
 0xa80   : > { %v5040_v38 = vpop.f32.mrb[29].mxu0 }
 0xa81   : > { %v5041_v39 = vadd.f32 %v5040_v38, %v5039_v37  ;;  %v5042_v40 = vpop.f32.mrb[30].mxu0  ;;  %v5643_v37 = vld [vmem:[#allocation10 + $0xb0] sm:$0xff]   ;;  %v5642_v38 = vld [vmem:[#allocation10 + $0x78] sm:$0xff]  }
 0xa82   : > { %v5043_v41 = vpop.f32.mrb[31].mxu0  ;;  %v5061_v42 = vpop.f32.mrb[20].mxu1  ;;  %5155 = vmatpush3.bf16.msra.mxu0 %v5643_v37  ;;  %v5645_v40 = vld [vmem:[#allocation10 + $0xf8] sm:$0xff]   ;;  %v5669_v37 = vld [vmem:[#allocation10 + $0x1e8] sm:$0xff]  }
 0xa83   : > { %v5062_v43 = vpop.f32.mrb[21].mxu1  ;;  %v5646_v41 = vld [vmem:[#allocation10 + $0xb8] sm:$0xff]   ;;  %5156 = vmatprep.subr.bf16.mxu0 %v5645_v40  ;;  %v5672_v40 = vld [vmem:[#allocation10 + $0x130] sm:$0xff]  }
 0xa84   : > { %v5063_v44 = vadd.f32 %v5062_v43, %v5061_v42  ;;  %v5064_v45 = vpop.f32.mrb[22].mxu1  ;;  %v5647_v42 = vld [vmem:[#allocation10 + $0x140] sm:$0xff]  }
 0xa85   : > { %v5065_v46 = vpop.f32.mrb[23].mxu1  ;;  %v5649_v43 = vld [vmem:[#allocation10 + $0x1c0] sm:$0xff]  }
 0xa86   : > { %v3425_v47 = vadd.f32 %v5063_v44, %v5041_v39  ;;  %v5644_v39 = vld [vmem:[#allocation10 + $0x38] sm:$0xff]   ;;  %5157 = vmatpush3.bf16.msra.mxu0 %v5646_v41  ;;  %v5673_v41 = vld [vmem:[#allocation10 + $0x1f0] sm:$0xff]  }
 0xa87   : > { %5186 = vmatprep.subr.bf16.mxu0 %v5649_v43  ;;  %v5675_v43 = vld [vmem:[#allocation10 + $0x1b0] sm:$0xff]  }
 0xa9f   : > { %v5083_v48 = vpop.f32.mrb[32].mxu0 }
 0xaa0   : > { %v5084_v49 = vpop.f32.mrb[33].mxu0 }
 0xaa1   : > { %v5085_v50 = vadd.f32 %v5084_v49, %v5083_v48  ;;  %v5086_v51 = vpop.f32.mrb[34].mxu0 }
 0xaa2   : > { %v5087_v52 = vpop.f32.mrb[35].mxu0  ;;  %v5105_v53 = vpop.f32.mrb[24].mxu1 }
 0xaa3   : > { %v3465_v54 = vadd.f32 %v5085_v50, %v3425_v47  ;;  %v5106_v55 = vpop.f32.mrb[25].mxu1 }
 0xaa4   : > { %v5107_v56 = vadd.f32 %v5106_v55, %v5105_v53  ;;  %v5108_v57 = vpop.f32.mrb[26].mxu1 }
 0xaa5   : > { %v5109_v58 = vpop.f32.mrb[27].mxu1 }
 0xaa6   : > { %v3505_v59 = vadd.f32 %v5107_v56, %v3465_v54 }
 0xabf   : > { %v3544_v61 = vpop.f32.mrb[36].mxu0 }
 0xac0   : > { %v3545_v62 = vadd.f32 %v3544_v61, %v3505_v59  ;;  %v5276_v63 = vpop.f32.mrb[37].mxu0 }
 0xac1   : > { %v3547_v1 = vpop.f32.mrb[38].mxu0 }
 0xac2   : > { %v3556_v2 = vmul.f32 %v4792_v60, %v3545_v62  ;;  %v5277_v3 = vpop.f32.mrb[39].mxu0 }
 0xac3   : > { %v5648_v3 = vld [vmem:[#allocation10 + $0x100] sm:$0xff]  }
 0xac4   : > { %v3563_v4 = vadd.f32 %v4793_v0, %v3556_v2 }
 0xac6   : > { %v3564_v6 = vadd.f32 %v3563_v4, %v6484_v22 }
 0xac8   : > { %v3565_v7 = vmax.f32 %v3564_v6, 0.0 }
 0xaca   : > { %v3566_v8 = vadd.f32 %v3565_v7, %v6484_v22  ;;  %v5624_v22 = vld [vmem:[#allocation10 + $0x10] sm:$0xff]   ;;  %v5650_v7 = vld [vmem:[#allocation10 + $0x148] sm:$0xff]  }
 0xacb   : > { %5125 = vmatpush3.bf16.msra.mxu1 %v5624_v22 }
 0xacc   : > { %3568 = vrot.lane.b32.xlu0 %v3566_v8, %s6698_s21  ;;  %5126 = vmatprep.subr.bf16.mxu1 %v5626_v21  ;;  %v5651_v8 = vld [vmem:[#allocation10 + $0x180] sm:$0xff]   ;;  %v5659_v21 = vld [vmem:[#allocation10 + $0x190] sm:$0xff]  }
 0xacf   : > { %5127 = vmatpush3.bf16.msra.mxu1 %v5628_v24 }
 0xad0   : > { %5128 = vmatprep.subr.bf16.mxu1 %v5630_v26  ;;  %v5661_v26 = vld [vmem:[#allocation10 + $0x1d8] sm:$0xff]  }
 0xad3   : > { %5129 = vmatpush3.bf16.msra.mxu1 %v5632_v28  ;;  %v5663_v28 = vld [vmem:[#allocation10 + $0x198] sm:$0xff]  }
 0xad4   : > { %5130 = vmatprep.subr.bf16.mxu1 %v5634_v30 }
 0xad7   : > { %5131 = vmatpush3.bf16.msra.mxu1 %v5636_v32  ;;  %v5665_v32 = vld [vmem:[#allocation10 + $0x1e0] sm:$0xff]  }
 0xad8   : > { %5132 = vmatprep.subr.bf16.mxu1 %v5638_v34  ;;  %v5666_v34 = vld [vmem:[#allocation10 + $0x168] sm:$0xff]  }
 0xadb   : > { %5133 = vmatpush3.bf16.msra.mxu1 %v5640_v36  ;;  %v5668_v36 = vld [vmem:[#allocation10 + $0x128] sm:$0xff]  }
 0xadc   : > { %5134 = vmatprep.subr.bf16.mxu1 %v5642_v38  ;;  %v5670_v38 = vld [vmem:[#allocation10 + $0x170] sm:$0xff]  }
 0xadf   : > { %5135 = vmatpush3.bf16.msra.mxu1 %v5644_v39  ;;  %v5671_v39 = vld [vmem:[#allocation10 + $0x1a8] sm:$0xff]  }
 0xae0   : > { %5164 = vmatprep.subr.bf16.mxu1 %v5647_v42  ;;  %v5674_v42 = vld [vmem:[#allocation10 + $0x178] sm:$0xff]  }
 0xb3e   : > { %v3569_v44 = vpop.permute.xlu0 %3568 }
 0xb3f   : > { %v3571_v45 = vsel %vm841_vm9, 0.0, %v3569_v44  ;;  %v3572_v46 = vsel %vm841_vm9, %v3569_v44, 0.0  ;;  %v5676_v44 = vld [vmem:[#allocation10 + $0x138] sm:$0xff]  }
 0xb40   : > { %v3575_v47 = vrot.slane %v3571_v45, 7  ;;  %v3576_v48 = vrot.slane %v3572_v46, 7  ;;  %v5677_v45 = vld [vmem:[#allocation10 + $0x1f8] sm:$0xff]  }
 0xb41   : > { %v5678_v46 = vld [vmem:[#allocation10 + $0x1b8] sm:$0xff]  }
 0xb42   : > { %v3579_v49 = vsel %vm789_vm2, 0.0, %v3575_v47  ;;  %v3580_v50 = vsel %vm789_vm2, 0.0, %v3576_v48  ;;  %v5679_v47 = vld [vmem:[#allocation10 + $0x200] sm:$0xff]   ;;  %vm4424_vm2 = vcmask 257024  }
 0xb43   : > { %v3581_v51 = vsel %vm796_vm3, %v3579_v49, 0.0  ;;  %v3582_v52 = vsel %vm796_vm3, %v3580_v50, 0.0  ;;  %v4868_v4 = vpack.c.bf16 %v3579_v49, %v3579_v49  ;;  %v5680_v49 = vld [vmem:[#allocation10 + $0x208] sm:$0xff]   ;;  %v5681_v50 = vld [vmem:[#allocation10 + $0x210] sm:$0xff]  }
 0xb44   : > { %v3583_v53 = vpack.c.bf16 %v3581_v51, %v3581_v51  ;;  %v3584_v54 = vpack.c.bf16 %v3582_v52, %v3582_v52  ;;  %v5682_v51 = vld [vmem:[#allocation10 + $0x218] sm:$0xff]   ;;  %v5683_v52 = vld [vmem:[#allocation10 + $0x220] sm:$0xff]  }
 0xb46   : > { %3589 = vrot.lane.b32.xlu0 %v3584_v54, %s5904_s17  ;;  %3587 = vrot.lane.b32.xlu1 %v3583_v53, %s5904_s17  ;;  %v3602_v55 = vshll.u32 %v3583_v53, 16  ;;  %v3610_v56 = vshll.u32 %v3584_v54, 16  ;;  %v3600_v57 = vshrl.u32 %v3583_v53, 16  ;;  %v3608_v61 = vshrl.u32 %v3584_v54, 16 }
 0xb47   : > { %v3628_v63 = vrot.slane %v3584_v54, 1  ;;  %v6606_v0 = vrot.slane %v3583_v53, 1 }
 0xb48   : > { %v3604_v58 = vrot.slane %v3602_v55, 1  ;;  %v3612_v59 = vrot.slane %v3610_v56, 1  ;;  %v5686_v55 = vld [vmem:[#allocation10 + $0x238] sm:$0xff]  }
 0xb4a   : > { %3595 = vrot.lane.b32.xlu0 %v3584_v54, %s5905_s22  ;;  %3593 = vrot.lane.b32.xlu1 %v3583_v53, %s5905_s22  ;;  %v3605_v60 = vor.u32 %v3604_v58, %v3600_v57  ;;  %v3613_v62 = vor.u32 %v3612_v59, %v3608_v61  ;;  %v5684_v53 = vld [vmem:[#allocation10 + $0x228] sm:$0xff]   ;;  %v5685_v54 = vld [vmem:[#allocation10 + $0x230] sm:$0xff]  }
 0xb4c   : > { %4296 = vmatprep.mubr.bf16.mxu0 %v3605_v60 }
 0xb4e   : > { %3622 = vrot.lane.b32.xlu0 %v3613_v62, %s5905_s22  ;;  %3620 = vrot.lane.b32.xlu1 %v3605_v60, %s5905_s22 }
 0xb52   : > { %3616 = vrot.lane.b32.xlu0 %v3613_v62, %s5904_s17  ;;  %3614 = vrot.lane.b32.xlu1 %v3605_v60, %s5904_s17 }
 0xb56   : > { %3631 = vrot.lane.b32.xlu0 %v3628_v63, %s5904_s17  ;;  %3629 = vrot.lane.b32.xlu1 %v6606_v0, %s5904_s17  ;;  %s6705_s17 = sld [smem:[#allocation22_spill]] }
 0xb5a   : > { %3637 = vrot.lane.b32.xlu0 %v3628_v63, %s5905_s22  ;;  %3635 = vrot.lane.b32.xlu1 %v6606_v0, %s5905_s22  ;;  %s657_s22 = scalar_lea.vmem %s6706_s1, %s4558_s4 }
 0xb5c   : > { %v4794_v60 = vld [vmem:[%s6705_s17] ss:$0 sm:$0xff] }
 0xbb8   : > { %v3590_v1 = vpop.permute.xlu0 %3589  ;;  %v3588_v2 = vpop.permute.xlu1 %3587 }
 0xbb9   : > { %v3591_v6 = vsel %vm827_vm8, %v3588_v2, %v3590_v1 }
 0xbba   : > { %4256 = vmatprep.mubr.bf16.mxu1 %v3591_v6 }
 0xbbb   : > { %4869 = vmatmul.mubr.msk.bf16.vlgmr.msra.gmra.mrb[28].mxu1 %vm6512_vm4, %v4868_v4 }
 0xbbc   : > { %5165 = vmatpush3.bf16.msra.mxu1 %v5648_v3  ;;  %v3596_v9 = vpop.permute.xlu0 %3595  ;;  %v3594_v10 = vpop.permute.xlu1 %3593 }
 0xbbd   : > { %v3597_v13 = vsel %vm834_vm6, %v3594_v10, %v3596_v9  ;;  %5166 = vmatprep.subr.bf16.mxu1 %v5650_v7 }
 0xbbe   : > { %4297 = vmatmul.mubr.bf16.vlgmr.msra.gmra.mrb[40].mxu0 %v3597_v13 }
 0xbbf   : > { %5187 = vmatpush3.bf16.msra.mxu0 %v5651_v8 }
 0xbc0   : > { %5167 = vmatpush3.bf16.msra.mxu1 %v5652_v11  ;;  %v3623_v15 = vpop.permute.xlu0 %3622  ;;  %v3621_v16 = vpop.permute.xlu1 %3620  ;;  %5188 = vmatprep.subr.bf16.mxu0 %v5653_v12 }
 0xbc1   : > { %5168 = vmatprep.subr.bf16.mxu1 %v5654_v5  ;;  %v3624_v22 = vsel %vm834_vm6, %v3621_v16, %v3623_v15 }
 0xbc2   : > { %4336 = vmatprep.mubr.bf16.mxu1 %v3624_v22 }
 0xbc3   : > { %5189 = vmatpush3.bf16.msra.mxu0 %v5655_v14 }
 0xbc4   : > { %5169 = vmatpush3.bf16.msra.mxu1 %v5656_v18  ;;  %v3617_v23 = vpop.permute.xlu0 %3616  ;;  %v3615_v24 = vpop.permute.xlu1 %3614  ;;  %5190 = vmatprep.subr.bf16.mxu0 %v5657_v17 }
 0xbc5   : > { %5170 = vmatprep.subr.bf16.mxu1 %v5658_v19  ;;  %v3618_v48 = vsel %vm827_vm8, %v3615_v24, %v3617_v23 }
 0xbc7   : > { %5191 = vmatpush3.bf16.msra.mxu0 %v5659_v21 }
 0xbc8   : > { %5171 = vmatpush3.bf16.msra.mxu1 %v5660_v25  ;;  %v3632_v29 = vpop.permute.xlu0 %3631  ;;  %v3630_v30 = vpop.permute.xlu1 %3629  ;;  %5192 = vmatprep.subr.bf16.mxu0 %v5661_v26 }
 0xbc9   : > { %5172 = vmatprep.subr.bf16.mxu1 %v5662_v27  ;;  %v3633_v33 = vsel %vm827_vm8, %v3630_v30, %v3632_v29 }
 0xbca   : > { %4376 = vmatprep.mubr.bf16.mxu0 %v3633_v33 }
 0xbcb   : > { %5193 = vmatpush3.bf16.msra.mxu0 %v5663_v28 }
 0xbcc   : > { %5173 = vmatpush3.bf16.msra.mxu1 %v5664_v31  ;;  %5194 = vmatprep.subr.bf16.mxu0 %v5665_v32  ;;  %v3638_v56 = vpop.permute.xlu0 %3637  ;;  %v3636_v57 = vpop.permute.xlu1 %3635 }
 0xbcd   : > { %5174 = vmatprep.subr.bf16.mxu1 %v5666_v34  ;;  %v3639_v58 = vsel %vm834_vm6, %v3636_v57, %v3638_v56 }
 0xbcf   : > { %5195 = vmatpush3.bf16.msra.mxu0 %v5667_v35 }
 0xbd0   : > { %5175 = vmatpush3.bf16.msra.mxu1 %v5668_v36  ;;  %5196 = vmatprep.subr.bf16.mxu0 %v5669_v37 }
 0xbd1   : > { %5176 = vmatprep.subr.bf16.mxu1 %v5670_v38 }
 0xbd3   : > { %5197 = vmatpush3.bf16.msra.mxu0 %v5671_v39 }
 0xbd4   : > { %5177 = vmatpush3.bf16.msra.mxu1 %v5672_v40  ;;  %5198 = vmatprep.subr.bf16.mxu0 %v5673_v41 }
 0xbd5   : > { %5178 = vmatprep.subr.bf16.mxu1 %v5674_v42 }
 0xbd7   : > { %5199 = vmatpush3.bf16.msra.mxu0 %v5675_v43 }
 0xbd8   : > { %5179 = vmatpush3.bf16.msra.mxu1 %v5676_v44  ;;  %5200 = vmatprep.subr.bf16.mxu0 %v5677_v45 }
 0xbd9   : > { %5278 = vmatprep.subr.bf16.mxu1 %v5901_v20 }
 0xbdb   : > { %4337 = vmatmul.mubr.bf16.vlgmr.msra.gmra.mrb[32].mxu1 %v3618_v48  ;;  %5201 = vmatpush3.bf16.msra.mxu0 %v5678_v46 }
 0xbdc   : > { %5279 = vmatpush3.bf16.msra.mxu1 %v5679_v47  ;;  %5294 = vmatprep.mubr.msk.bf16.mxu1 %vm5900_vm11, %v5901_v20 }
 0xbdd   : > { %5280 = vmatprep.subr.bf16.mxu1 %v5901_v20 }
 0xbde   : > { %4377 = vmatmul.mubr.bf16.vlgmr.msra.gmra.mrb[44].mxu0 %v6606_v0 }
 0xbe0   : > { %5281 = vmatpush3.bf16.msra.mxu1 %v5680_v49 }
 0xbe1   : > { %5282 = vmatprep.subr.bf16.mxu1 %v5901_v20 }
 0xbe4   : > { %5283 = vmatpush3.bf16.msra.mxu1 %v5681_v50 }
 0xbe5   : > { %5284 = vmatprep.subr.bf16.mxu1 %v5901_v20 }
 0xbe8   : > { %5285 = vmatpush3.bf16.msra.mxu1 %v5682_v51 }
 0xbe9   : > { %5286 = vmatprep.subr.bf16.mxu1 %v5901_v20 }
 0xbec   : > { %5287 = vmatpush3.bf16.msra.mxu1 %v5683_v52 }
 0xbed   : > { %5288 = vmatprep.subr.bf16.mxu1 %v5901_v20 }
 0xbf0   : > { %5289 = vmatpush3.bf16.msra.mxu1 %v5684_v53 }
 0xbf1   : > { %5290 = vmatprep.subr.bf16.mxu1 %v5901_v20 }
 0xbf4   : > { %5291 = vmatpush3.bf16.msra.mxu1 %v5685_v54 }
 0xbf5   : > { %5292 = vmatprep.subr.bf16.mxu1 %v5901_v20 }
 0xbf8   : > { %5293 = vmatpush3.bf16.msra.mxu1 %v5686_v55 }
 0xbfb   : > { %5295 = vmatmul.mubr.bf16.vlgmr.msra.gmra.mrb[36].mxu1 %v3639_v58 }
 0xc8e   : > { %v5136_v59 = vpop.f32.mrb[28].mxu1 }
 0xc8f   : > { %v5137_v61 = vpop.f32.mrb[29].mxu1 }
 0xc90   : > { %v5138_v62 = vadd.f32 %v5137_v61, %v5136_v59  ;;  %v5139_v63 = vpop.f32.mrb[30].mxu1 }
 0xc91   : > { %v5140_v0 = vpop.f32.mrb[31].mxu1  ;;  %v5158_v1 = vpop.f32.mrb[40].mxu0 }
 0xc92   : > { %v4259_v2 = vadd.f32 %v5138_v62, %v4794_v60  ;;  %v5159_v3 = vpop.f32.mrb[41].mxu0 }
 0xc93   : > { %v5160_v4 = vadd.f32 %v5159_v3, %v5158_v1  ;;  %v5161_v20 = vpop.f32.mrb[42].mxu0 }
 0xc94   : > { %v5162_v6 = vpop.f32.mrb[43].mxu0 }
 0xc95   : > { %v4299_v7 = vadd.f32 %v5160_v4, %v4259_v2 }
 0xcae   : > { %v5180_v8 = vpop.f32.mrb[32].mxu1 }
 0xcaf   : > { %v5181_v9 = vpop.f32.mrb[33].mxu1 }
 0xcb0   : > { %v5182_v10 = vadd.f32 %v5181_v9, %v5180_v8  ;;  %v5183_v11 = vpop.f32.mrb[34].mxu1 }
 0xcb1   : > { %v5184_v12 = vpop.f32.mrb[35].mxu1  ;;  %v5202_v13 = vpop.f32.mrb[44].mxu0 }
 0xcb2   : > { %v4339_v5 = vadd.f32 %v5182_v10, %v4299_v7  ;;  %v5203_v14 = vpop.f32.mrb[45].mxu0 }
 0xcb3   : > { %v5204_v15 = vadd.f32 %v5203_v14, %v5202_v13  ;;  %v5205_v16 = vpop.f32.mrb[46].mxu0 }
 0xcb4   : > { %v5206_v18 = vpop.f32.mrb[47].mxu0 }
 0xcb5   : > { %v4379_v17 = vadd.f32 %v5204_v15, %v4339_v5 }
 0xcce   : > { %v4418_v22 = vpop.f32.mrb[36].mxu1 }
 0xccf   : > { %v4419_v19 = vadd.f32 %v4418_v22, %v4379_v17  ;;  %v5296_v21 = vpop.f32.mrb[37].mxu1 }
 0xcd0   : > { %v4421_v23 = vpop.f32.mrb[38].mxu1 }
 0xcd1   : > { %4425 = vst.msk [vmem:[%s657_s22] sm:$0xf] %vm4424_vm2, %v4419_v19  ;;  %v5297_v24 = vpop.f32.mrb[39].mxu1 }
 0xcd2 PF: > { %s6707_s19 = sld [smem:[#allocation16_spill]] }
 0xcd8   : > { %s32_s27 = sadd.s32 1, %s6707_s19  }
 0xcd9   : > { %p29_p9 = scmp.ge.s32.totalorder %s32_s27, 4  }
 0xcdb   :  { %31 = sbr.rel (!%p29_p9) target bundleno = 12 (0xc), region = 147 }
 0xce2   :  { %4445 = vsyncpa [#allocation3], 1 }
 0xce3   :  { %4447 = vsyncpa [#allocation3 + $0x1], 1 }
 0xce4   :  { %4448 = vsyncpa [#allocation5], 1 }
 0xce5   :  { %4449 = vsyncpa [#allocation8], 1 }
 0xce6   :  { %4450 = vsyncpa [#allocation11], 1 }

// kernel: a_call__.5
= control target key start
LH: loop header
LB: loop body
LE: loop exit
PB: predicated region body
PF: predicated region fallthrough
CT: control target
= control target key end

     0   :  { %s6060_s0 = inlined_call_operand.vmem [shape: f32[2,4,128], index: 0, kind: input, shape index: {}]   ;;  %s6061_s1 = inlined_call_operand.vmem [shape: bf16[1152,128], index: 1, kind: input, shape index: {}]   ;;  %s6062_s2 = inlined_call_operand.vmem [shape: bf16[1152,128], index: 2, kind: input, shape index: {}]   ;;  %s6063_s3 = inlined_call_operand.vmem [shape: f32[1,128], index: 3, kind: input, shape index: {}]   ;;  %s6064_s4 = inlined_call_operand.vmem [shape: f32[1,128], index: 4, kind: input, shape index: {}]   ;;  %s6065_s5 = inlined_call_operand.vmem [shape: f32[1,128], index: 5, kind: input, shape index: {}]   ;;  %s6066_s6 = inlined_call_operand.vmem [shape: f32[1,128], index: 6, kind: input, shape index: {}]   ;;  %s6067_s7 = inlined_call_operand.vmem [shape: bf16[128,144], index: 7, kind: input, shape index: {}]   ;;  %s6068_s8 = inlined_call_operand.vmem [shape: f32[1,48], index: 8, kind: input, shape index: {}]   ;;  %s6069_s9 = inlined_call_operand.vmem [shape: f32[1,48], index: 9, kind: input, shape index: {}]   ;;  %s6070_s10 = inlined_call_operand.vmem [shape: bf16[432,48], index: 10, kind: input, shape index: {}]   ;;  %s6071_s11 = inlined_call_operand.vmem [shape: bf16[432,48], index: 11, kind: input, shape index: {}]   ;;  %s6072_s12 = inlined_call_operand.vmem [shape: f32[1,48], index: 12, kind: input, shape index: {}]   ;;  %s6073_s13 = inlined_call_operand.vmem [shape: f32[1,48], index: 13, kind: input, shape index: {}]   ;;  %s6074_s14 = inlined_call_operand.vmem [shape: f32[1,48], index: 14, kind: input, shape index: {}]   ;;  %s6075_s15 = inlined_call_operand.vmem [shape: f32[1,48], index: 15, kind: input, shape index: {}]   ;;  %s6076_s16 = inlined_call_operand.vmem [shape: bf16[432,48], index: 16, kind: input, shape index: {}]   ;;  %s6077_s17 = inlined_call_operand.vmem [shape: f32[1,48], index: 17, kind: input, shape index: {}]   ;;  %s6078_s18 = inlined_call_operand.vmem [shape: f32[1,48], index: 18, kind: input, shape index: {}]   ;;  %s6079_s19 = inlined_call_operand.vmem [shape: f32[2,12,48], index: 19, kind: output, shape index: {}]  }
   0x1   :  { %6102 = sst [smem:[#allocation2_spill]] %s6060_s0  ;;  %s5042_s0 = smov 0  }
   0x2   :  { %6103 = sst [smem:[#allocation3_spill]] %s6061_s1 }
   0x3   :  { %6104 = sst [smem:[#allocation4_spill]] %s6062_s2 }
   0x4   :  { %6105 = sst [smem:[#allocation5_spill]] %s6063_s3 }
   0x5   :  { %6106 = sst [smem:[#allocation6_spill]] %s6064_s4 }
   0x6   :  { %6107 = sst [smem:[#allocation7_spill]] %s6065_s5 }
   0x7   :  { %6108 = sst [smem:[#allocation8_spill]] %s6066_s6 }
   0x8   :  { %6109 = sst [smem:[#allocation9_spill]] %s6067_s7 }
   0x9   :  { %6110 = sst [smem:[#allocation10_spill]] %s6068_s8 }
   0xa LB: > { %s4011_s30 = sadd.s32 4294967295, %s4925_s0   ;;  %p4015_p0 = scmp.ge.s32.totalorder %s4925_s0, 1  ;;  %s4925_s0 = sphi %s5042_s0, %s29_s0  }
   0xb   : > { %p536_p1 = scmp.lt.s32.totalorder %s4925_s0, 3 }
   0xd   : > { %p537_p2 = pnand %p4015_p0, %p536_p1 }
   0xe   : > { %p591_p3 = scmp.lt.s32.totalorder (!%p537_p2), %s4011_s30, 1  ;;  %s6111_s22 = sld [smem:[#allocation2_spill]] (!%p537_p2)  ;;  %vm898_vm0 = vcmask (!%p537_p2), 261120   ;;  %vm907_vm1 = vcmask (!%p537_p2), 1040384   ;;  %vm910_vm2 = vcmask (!%p537_p2), 1044480   ;;  %vm921_vm3 = vcmask (!%p537_p2), 785408  }
   0xf   : > { %540 = sbr.rel (%p537_p2) target bundleno = 3164 (0xc5c), region = 96  ;;  %s6091_s23 = smov (!%p537_p2), 32   ;;  %vm5179_vm4 = vmpackc.low (!%p537_p2), %vm910_vm2, %vm910_vm2  ;;  %vm928_vm5 = vcmask (!%p537_p2), 523264   ;;  %vm4931_vm6 = vmmov (!%p537_p2), 0   ;;  %vm2503_vm8 = vcmask (!%p537_p2), 31744   ;;  %vm2510_vm14 = vcmask (!%p537_p2), 1043456  }
  0x10   : > { %s6112_s3 = sld [smem:[#allocation3_spill]] (!%p537_p2)  ;;  %s6084_s26 = smov (!%p537_p2), 96   ;;  %vm2909_vm15 = vcmask (!%p537_p2), 424960  }
  0x11   : > { %s6082_s21 = smov (!%p537_p2), 64   ;;  %s6115_s27 = sld [smem:[#allocation5_spill]] (!%p537_p2) }
  0x12   : > { %s6116_s4 = sld [smem:[#allocation6_spill]] (!%p537_p2)  ;;  %s6118_s28 = smov (!%p537_p2), 96  }
  0x13   : > { %s6119_s29 = smov (!%p537_p2), 64   ;;  %s6120_s7 = sld [smem:[#allocation9_spill]] (!%p537_p2) }
  0x14   : > { %s6121_s5 = sld [smem:[#allocation7_spill]] (!%p537_p2)  ;;  %s6122_s6 = sld [smem:[#allocation8_spill]] (!%p537_p2) }
  0x15   : > { %s6123_s8 = sld [smem:[#allocation10_spill]] (!%p537_p2)  ;;  %s6101_s1 = smov (!%p537_p2), 44  }
  0x16   : > { %s6133_s30 = smov (!%p591_p3, %s4011_s30), 1  ;;  %v4665_v1 = vld [vmem:[%s6112_s3 + $0x40] sm:$0xff]   ;;  %v4667_v3 = vld [vmem:[%s6112_s3 + $0x48] sm:$0xff]   ;;  %v4669_v7 = vld [vmem:[%s6112_s3 + $0x50] sm:$0xff]   ;;  %s6093_s24 = smov 104  }
  0x17   : > { %s4016_s20 = sshll.u32 %s6133_s30, 2  ;;  %v4666_v2 = vld [vmem:[%s6112_s3] sm:$0xff]   ;;  %4299 = vmatprep.subr.bf16.mxu0 %v4665_v1  ;;  %v4668_v4 = vld [vmem:[%s6112_s3 + $0x8] sm:$0xff]   ;;  %v4670_v10 = vld [vmem:[%s6112_s3 + $0x10] sm:$0xff]   ;;  %s6089_s25 = smov 76  }
  0x18   : > { %s5056_s2 = scalar_lea.vmem %s6111_s22, %s4016_s20  ;;  %4300 = vmatpush3.bf16.msra.mxu0 %v4666_v2  ;;  %v4675_v5 = vld [vmem:[%s6112_s3 + $0x1c0] sm:$0xff]   ;;  %v4679_v8 = vld [vmem:[%s6112_s3 + $0x1c8] sm:$0xff]   ;;  %v4671_v11 = vld [vmem:[%s6112_s3 + $0x58] sm:$0xff]   ;;  %s6117_s22 = sld [smem:[#allocation4_spill]] }
  0x19   : > { %v601_v0 = vld [vmem:[%s5056_s2] sm:$0xf]  ;;  %4301 = vmatprep.subr.bf16.mxu0 %v4667_v3  ;;  %4365 = vmatprep.subr.bf16.mxu1 %v4675_v5  ;;  %v4680_v9 = vld [vmem:[%s6112_s3 + $0x188] sm:$0xff]   ;;  %v4683_v12 = vld [vmem:[%s6112_s3 + $0x1d0] sm:$0xff]   ;;  %s6129_s20 = smov 76  }
  0x1a   : > { %895 = vrot.lane.b32.xlu0 %v601_v0, %s6091_s23  ;;  %v4676_v6 = vld [vmem:[%s6112_s3 + $0x180] sm:$0xff]   ;;  %v4684_v13 = vld [vmem:[%s6112_s3 + $0x190] sm:$0xff]   ;;  %v4672_v14 = vld [vmem:[%s6112_s3 + $0x18] sm:$0xff]  }
  0x1b   : > { %4366 = vmatpush3.bf16.msra.mxu1 %v4676_v6  ;;  %v4687_v15 = vld [vmem:[%s6112_s3 + $0x1d8] sm:$0xff]   ;;  %v4673_v16 = vld [vmem:[%s6112_s3 + $0x60] sm:$0xff]   ;;  %v4677_v19 = vld [vmem:[%s6112_s3 + $0x68] sm:$0xff]  }
  0x1c   : > { %4302 = vmatpush3.bf16.msra.mxu0 %v4668_v4  ;;  %4367 = vmatprep.subr.bf16.mxu1 %v4679_v8  ;;  %v4688_v17 = vld [vmem:[%s6112_s3 + $0x198] sm:$0xff]   ;;  %v4674_v18 = vld [vmem:[%s6112_s3 + $0x20] sm:$0xff]   ;;  %v4678_v20 = vld [vmem:[%s6112_s3 + $0x28] sm:$0xff]  }
  0x1d   : > { %4303 = vmatprep.subr.bf16.mxu0 %v4669_v7  ;;  %v4681_v21 = vld [vmem:[%s6112_s3 + $0x70] sm:$0xff]   ;;  %v4685_v23 = vld [vmem:[%s6112_s3 + $0x78] sm:$0xff]   ;;  %v4689_v25 = vld [vmem:[%s6112_s3 + $0xc0] sm:$0xff]  }
  0x1e   : > { %v4682_v22 = vld [vmem:[%s6112_s3 + $0x30] sm:$0xff]   ;;  %v4686_v24 = vld [vmem:[%s6112_s3 + $0x38] sm:$0xff]   ;;  %v4691_v26 = vld [vmem:[%s6112_s3 + $0x1e0] sm:$0xff]  }
  0x1f   : > { %4368 = vmatpush3.bf16.msra.mxu1 %v4680_v9  ;;  %v4692_v27 = vld [vmem:[%s6112_s3 + $0x1a0] sm:$0xff]   ;;  %v4695_v29 = vld [vmem:[%s6112_s3 + $0x1e8] sm:$0xff]   ;;  %v4699_v37 = vld [vmem:[%s6112_s3 + $0x1f0] sm:$0xff]  }
  0x20   : > { %4304 = vmatpush3.bf16.msra.mxu0 %v4670_v10  ;;  %4369 = vmatprep.subr.bf16.mxu1 %v4683_v12  ;;  %v4696_v32 = vld [vmem:[%s6112_s3 + $0x1a8] sm:$0xff]   ;;  %v4700_v40 = vld [vmem:[%s6112_s3 + $0x1b0] sm:$0xff]   ;;  %v4703_v45 = vld [vmem:[%s6112_s3 + $0x1f8] sm:$0xff]  }
  0x21   : > { %4305 = vmatprep.subr.bf16.mxu0 %v4671_v11  ;;  %v4704_v46 = vld [vmem:[%s6112_s3 + $0x1b8] sm:$0xff]   ;;  %v4690_v58 = vld [vmem:[%s6112_s3 + $0x80] sm:$0xff]   ;;  %v4693_v61 = vld [vmem:[%s6112_s3 + $0xc8] sm:$0xff]  }
  0x22   : > { %v4694_v0 = vld [vmem:[%s6112_s3 + $0x88] sm:$0xff]   ;;  %v4697_v1 = vld [vmem:[%s6112_s3 + $0xd0] sm:$0xff]   ;;  %v4701_v5 = vld [vmem:[%s6112_s3 + $0xd8] sm:$0xff]  }
  0x23   : > { %4370 = vmatpush3.bf16.msra.mxu1 %v4684_v13  ;;  %v4698_v4 = vld [vmem:[%s6112_s3 + $0x90] sm:$0xff]   ;;  %v4702_v8 = vld [vmem:[%s6112_s3 + $0x98] sm:$0xff]   ;;  %v4705_v9 = vld [vmem:[%s6112_s3 + $0xe0] sm:$0xff]  }
  0x24   : > { %4306 = vmatpush3.bf16.msra.mxu0 %v4672_v14  ;;  %4371 = vmatprep.subr.bf16.mxu1 %v4687_v15  ;;  %v4706_v12 = vld [vmem:[%s6112_s3 + $0xa0] sm:$0xff]   ;;  %v4707_v14 = vld [vmem:[%s6112_s3 + $0xe8] sm:$0xff]   ;;  %v4776_v57 = vld [vmem:[%s6117_s22 + $0x150] sm:$0xff]  }
  0x25   : > { %4307 = vmatprep.subr.bf16.mxu0 %v4673_v16  ;;  %v4708_v15 = vld [vmem:[%s6112_s3 + $0xa8] sm:$0xff]   ;;  %v4709_v16 = vld [vmem:[%s6112_s3 + $0xf0] sm:$0xff]  }
  0x27   : > { %4372 = vmatpush3.bf16.msra.mxu1 %v4688_v17  ;;  %v4710_v17 = vld [vmem:[%s6112_s3 + $0xb0] sm:$0xff]  }
  0x28   : > { %4308 = vmatpush3.bf16.msra.mxu0 %v4674_v18  ;;  %4373 = vmatprep.subr.bf16.mxu1 %v4691_v26  ;;  %v4711_v18 = vld [vmem:[%s6112_s3 + $0xf8] sm:$0xff]   ;;  %v4717_v26 = vld [vmem:[%s6112_s3 + $0x150] sm:$0xff]  }
  0x29   : > { %4309 = vmatprep.subr.bf16.mxu0 %v4677_v19  ;;  %v4712_v19 = vld [vmem:[%s6112_s3 + $0xb8] sm:$0xff]  }
  0x2b   : > { %4374 = vmatpush3.bf16.msra.mxu1 %v4692_v27  ;;  %v4718_v27 = vld [vmem:[%s6112_s3 + $0x110] sm:$0xff]  }
  0x2c   : > { %4310 = vmatpush3.bf16.msra.mxu0 %v4678_v20  ;;  %4375 = vmatprep.subr.bf16.mxu1 %v4695_v29  ;;  %v4713_v20 = vld [vmem:[%s6112_s3 + $0x140] sm:$0xff]   ;;  %v4720_v29 = vld [vmem:[%s6112_s3 + $0x118] sm:$0xff]  }
  0x2d   : > { %4311 = vmatprep.subr.bf16.mxu0 %v4681_v21  ;;  %v4714_v21 = vld [vmem:[%s6112_s3 + $0x100] sm:$0xff]  }
  0x2f   : > { %4376 = vmatpush3.bf16.msra.mxu1 %v4696_v32  ;;  %v4723_v32 = vld [vmem:[%s6112_s3 + $0x168] sm:$0xff]  }
  0x30   : > { %4312 = vmatpush3.bf16.msra.mxu0 %v4682_v22  ;;  %4377 = vmatprep.subr.bf16.mxu1 %v4699_v37  ;;  %v4715_v22 = vld [vmem:[%s6112_s3 + $0x148] sm:$0xff]   ;;  %v4728_v37 = vld [vmem:[%s6112_s3 + $0x138] sm:$0xff]  }
  0x31   : > { %4313 = vmatprep.subr.bf16.mxu0 %v4685_v23 }
  0x33   : > { %4378 = vmatpush3.bf16.msra.mxu1 %v4700_v40 }
  0x34   : > { %4314 = vmatpush3.bf16.msra.mxu0 %v4686_v24  ;;  %4379 = vmatprep.subr.bf16.mxu1 %v4703_v45  ;;  %v4734_v45 = vld [vmem:[%s6112_s3 + $0x228] sm:$0xff]  }
  0x35   : > { %4321 = vmatprep.subr.bf16.mxu0 %v4689_v25  ;;  %v4716_v25 = vld [vmem:[%s6112_s3 + $0x108] sm:$0xff]  }
  0x37   : > { %4380 = vmatpush3.bf16.msra.mxu1 %v4704_v46  ;;  %v4735_v46 = vld [vmem:[%s6112_s3 + $0x230] sm:$0xff]  }
  0x8c   : > { %v896_v28 = vpop.permute.xlu0 %895 }
  0x8d   : > { %v899_v30 = vsel %vm898_vm0, 0.0, %v896_v28  ;;  %v900_v31 = vsel %vm898_vm0, %v896_v28, 0.0  ;;  %v4719_v28 = vld [vmem:[%s6112_s3 + $0x158] sm:$0xff]  }
  0x8e   : > { %v903_v33 = vrot.slane %v899_v30, 7  ;;  %v904_v34 = vrot.slane %v900_v31, 7  ;;  %v4721_v30 = vld [vmem:[%s6112_s3 + $0x160] sm:$0xff]  }
  0x8f   : > { %v4722_v31 = vld [vmem:[%s6112_s3 + $0x120] sm:$0xff]  }
  0x90   : > { %v908_v35 = vsel %vm907_vm1, 0.0, %v903_v33  ;;  %v909_v36 = vsel %vm907_vm1, 0.0, %v904_v34  ;;  %v4724_v33 = vld [vmem:[%s6112_s3 + $0x128] sm:$0xff]   ;;  %v4725_v34 = vld [vmem:[%s6112_s3 + $0x170] sm:$0xff]  }
  0x91   : > { %v911_v38 = vsel %vm910_vm2, %v908_v35, 0.0  ;;  %v912_v39 = vsel %vm910_vm2, %v909_v36, 0.0  ;;  %v4092_v59 = vpack.c.bf16 %v908_v35, %v908_v35  ;;  %v4726_v35 = vld [vmem:[%s6112_s3 + $0x130] sm:$0xff]   ;;  %v4727_v36 = vld [vmem:[%s6112_s3 + $0x178] sm:$0xff]  }
  0x92   : > { %v913_v41 = vpack.c.bf16 %v911_v38, %v911_v38  ;;  %v914_v42 = vpack.c.bf16 %v912_v39, %v912_v39  ;;  %v4729_v38 = vld [vmem:[%s6112_s3 + $0x200] sm:$0xff]   ;;  %v4930_v39 = vmov 0.0  }
  0x94   : > { %919 = vrot.lane.b32.xlu1 %v914_v42, %s6084_s26  ;;  %917 = vrot.lane.b32.xlu0 %v913_v41, %s6084_s26  ;;  %v942_v43 = vshll.u32 %v914_v42, 16  ;;  %v934_v44 = vshll.u32 %v913_v41, 16  ;;  %v940_v49 = vshrl.u32 %v914_v42, 16  ;;  %v932_v50 = vshrl.u32 %v913_v41, 16 }
  0x95   : > { %v960_v53 = vrot.slane %v914_v42, 1  ;;  %v958_v54 = vrot.slane %v913_v41, 1 }
  0x96   : > { %v944_v47 = vrot.slane %v942_v43, 1  ;;  %v936_v48 = vrot.slane %v934_v44, 1  ;;  %v4732_v43 = vld [vmem:[%s6112_s3 + $0x218] sm:$0xff]   ;;  %v4733_v44 = vld [vmem:[%s6112_s3 + $0x220] sm:$0xff]  }
  0x98   : > { %924 = vrot.lane.b32.xlu1 %v913_v41, %s6082_s21  ;;  %926 = vrot.lane.b32.xlu0 %v914_v42, %s6082_s21  ;;  %v945_v51 = vor.u32 %v944_v47, %v940_v49  ;;  %v937_v52 = vor.u32 %v936_v48, %v932_v50  ;;  %v4730_v41 = vld [vmem:[%s6112_s3 + $0x208] sm:$0xff]   ;;  %v4731_v42 = vld [vmem:[%s6112_s3 + $0x210] sm:$0xff]  }
  0x99   : > { %v4736_v47 = vld [vmem:[%s6112_s3 + $0x238] sm:$0xff]   ;;  %s4934_s3 = smov 4  }
  0x9c   : > { %954 = vrot.lane.b32.xlu0 %v945_v51, %s6082_s21  ;;  %952 = vrot.lane.b32.xlu1 %v937_v52, %s6082_s21 }
  0xa0   : > { %948 = vrot.lane.b32.xlu0 %v945_v51, %s6084_s26  ;;  %946 = vrot.lane.b32.xlu1 %v937_v52, %s6084_s26 }
  0xa4   : > { %963 = vrot.lane.b32.xlu0 %v960_v53, %s6084_s26  ;;  %961 = vrot.lane.b32.xlu1 %v958_v54, %s6084_s26  ;;  %s6097_s26 = smov 60  }
  0xa8   : > { %969 = vrot.lane.b32.xlu0 %v960_v53, %s6082_s21  ;;  %967 = vrot.lane.b32.xlu1 %v958_v54, %s6082_s21  ;;  %s6095_s21 = smov 16  }
 0x106   : > { %v920_v55 = vpop.permute.xlu1 %919  ;;  %v918_v56 = vpop.permute.xlu0 %917 }
 0x107   : > { %v922_v60 = vsel %vm921_vm3, %v918_v56, %v920_v55 }
 0x108   : > { %1437 = vmatprep.mubr.bf16.mxu0 %v922_v60 }
 0x109   : > { %4093 = vmatmul.mubr.msk.bf16.vlgmr.msra.gmra.mrb[0].mxu0 %vm5179_vm4, %v4092_v59 }
 0x10a   : > { %4322 = vmatpush3.bf16.msra.mxu0 %v4690_v58  ;;  %v925_v62 = vpop.permute.xlu1 %924  ;;  %v927_v63 = vpop.permute.xlu0 %926  ;;  %1477 = vmatprep.mubr.bf16.mxu0 %v937_v52 }
 0x10b   : > { %4323 = vmatprep.subr.bf16.mxu0 %v4693_v61  ;;  %v929_v23 = vsel %vm928_vm5, %v925_v62, %v927_v63 }
 0x10e   : > { %4324 = vmatpush3.bf16.msra.mxu0 %v4694_v0  ;;  %v955_v2 = vpop.permute.xlu0 %954  ;;  %v953_v3 = vpop.permute.xlu1 %952 }
 0x10f   : > { %4325 = vmatprep.subr.bf16.mxu0 %v4697_v1  ;;  %v956_v24 = vsel %vm928_vm5, %v953_v3, %v955_v2 }
 0x112   : > { %4326 = vmatpush3.bf16.msra.mxu0 %v4698_v4  ;;  %v5204_v6 = vpop.permute.xlu0 %948  ;;  %v5206_v7 = vpop.permute.xlu1 %946 }
 0x113   : > { %4327 = vmatprep.subr.bf16.mxu0 %v4701_v5  ;;  %v950_v40 = vsel %vm921_vm3, %v5206_v7, %v5204_v6 }
 0x116   : > { %4328 = vmatpush3.bf16.msra.mxu0 %v4702_v8  ;;  %v964_v10 = vpop.permute.xlu0 %963  ;;  %v962_v11 = vpop.permute.xlu1 %961 }
 0x117   : > { %4329 = vmatprep.subr.bf16.mxu0 %v4705_v9  ;;  %v965_v13 = vsel %vm921_vm3, %v962_v11, %v964_v10  ;;  %v4094_v11 = vld [vmem:[%s6115_s27] ss:$0 sm:$0xff]  ;;  %s6087_s27 = smov 120  }
 0x118   : > { %1557 = vmatprep.mubr.bf16.mxu1 %v965_v13 }
 0x119   : > { %1558 = vmatmul.mubr.bf16.vlgmr.msra.gmra.mrb[0].mxu1 %v958_v54 }
 0x11a   : > { %4330 = vmatpush3.bf16.msra.mxu0 %v4706_v12  ;;  %v970_v48 = vpop.permute.xlu0 %969  ;;  %v968_v49 = vpop.permute.xlu1 %967 }
 0x11b   : > { %4331 = vmatprep.subr.bf16.mxu0 %v4707_v14  ;;  %v971_v50 = vsel %vm928_vm5, %v968_v49, %v970_v48  ;;  %v4762_v48 = vld [vmem:[%s6117_s22 + $0x30] sm:$0xff]  }
 0x11c   : > { %v4765_v49 = vld [vmem:[%s6117_s22 + $0xb0] sm:$0xff]  }
 0x11e   : > { %4332 = vmatpush3.bf16.msra.mxu0 %v4708_v15 }
 0x11f   : > { %4333 = vmatprep.subr.bf16.mxu0 %v4709_v16  ;;  %v4095_v16 = vld [vmem:[%s6116_s4] ss:$0 sm:$0xff] }
 0x122   : > { %4334 = vmatpush3.bf16.msra.mxu0 %v4710_v17 }
 0x123   : > { %4335 = vmatprep.subr.bf16.mxu0 %v4711_v18 }
 0x126   : > { %4336 = vmatpush3.bf16.msra.mxu0 %v4712_v19 }
 0x127   : > { %4343 = vmatprep.subr.bf16.mxu0 %v4713_v20 }
 0x129   : > { %1478 = vmatmul.mubr.bf16.vlgmr.msra.gmra.mrb[4].mxu0 %v929_v23  ;;  %v4739_v23 = vld [vmem:[%s6117_s22 + $0xc0] sm:$0xff]  }
 0x12a   : > { %4344 = vmatpush3.bf16.msra.mxu0 %v4714_v21  ;;  %1517 = vmatprep.mubr.bf16.mxu0 %v956_v24  ;;  %v4737_v21 = vld [vmem:[%s6117_s22 + $0x40] sm:$0xff]   ;;  %v4740_v24 = vld [vmem:[%s6117_s22 + $0x48] sm:$0xff]  }
 0x12b   : > { %4345 = vmatprep.subr.bf16.mxu0 %v4715_v22  ;;  %v4738_v22 = vld [vmem:[%s6117_s22] sm:$0xff]   ;;  %4396 = vmatprep.subr.bf16.mxu1 %v4737_v21 }
 0x12c   : > { %4397 = vmatpush3.bf16.msra.mxu1 %v4738_v22 }
 0x12d   : > { %4398 = vmatprep.subr.bf16.mxu1 %v4740_v24  ;;  %v4775_v24 = vld [vmem:[%s6117_s22 + $0x1c8] sm:$0xff]  }
 0x12e   : > { %4346 = vmatpush3.bf16.msra.mxu0 %v4716_v25  ;;  %v4741_v25 = vld [vmem:[%s6117_s22 + $0x80] sm:$0xff]  }
 0x12f   : > { %4347 = vmatprep.subr.bf16.mxu0 %v4717_v26  ;;  %v4743_v26 = vld [vmem:[%s6117_s22 + $0xc8] sm:$0xff]  }
 0x132   : > { %4348 = vmatpush3.bf16.msra.mxu0 %v4718_v27  ;;  %v4742_v27 = vld [vmem:[%s6117_s22 + $0x8] sm:$0xff]  }
 0x133   : > { %4349 = vmatprep.subr.bf16.mxu0 %v4719_v28  ;;  %v4745_v28 = vld [vmem:[%s6117_s22 + $0x88] sm:$0xff]   ;;  %4399 = vmatpush3.bf16.msra.mxu1 %v4742_v27 }
 0x136   : > { %4350 = vmatpush3.bf16.msra.mxu0 %v4720_v29  ;;  %v4744_v29 = vld [vmem:[%s6117_s22 + $0x50] sm:$0xff]  }
 0x137   : > { %4351 = vmatprep.subr.bf16.mxu0 %v4721_v30  ;;  %v4747_v30 = vld [vmem:[%s6117_s22 + $0xd0] sm:$0xff]   ;;  %4400 = vmatprep.subr.bf16.mxu1 %v4744_v29 }
 0x138   : > { %v4778_v29 = vld [vmem:[%s6117_s22 + $0x110] sm:$0xff]  }
 0x13a   : > { %4352 = vmatpush3.bf16.msra.mxu0 %v4722_v31  ;;  %v4746_v31 = vld [vmem:[%s6117_s22 + $0x10] sm:$0xff]  }
 0x13b   : > { %4353 = vmatprep.subr.bf16.mxu0 %v4723_v32  ;;  %v4749_v32 = vld [vmem:[%s6117_s22 + $0x90] sm:$0xff]   ;;  %4401 = vmatpush3.bf16.msra.mxu1 %v4746_v31 }
 0x13e   : > { %4354 = vmatpush3.bf16.msra.mxu0 %v4724_v33  ;;  %v4748_v33 = vld [vmem:[%s6117_s22 + $0x58] sm:$0xff]  }
 0x13f   : > { %4355 = vmatprep.subr.bf16.mxu0 %v4725_v34  ;;  %v4751_v34 = vld [vmem:[%s6117_s22 + $0xd8] sm:$0xff]   ;;  %4402 = vmatprep.subr.bf16.mxu1 %v4748_v33  ;;  %v4781_v33 = vld [vmem:[%s6117_s22 + $0x190] sm:$0xff]  }
 0x142   : > { %4356 = vmatpush3.bf16.msra.mxu0 %v4726_v35  ;;  %v4750_v35 = vld [vmem:[%s6117_s22 + $0x18] sm:$0xff]  }
 0x143   : > { %4357 = vmatprep.subr.bf16.mxu0 %v4727_v36  ;;  %v4753_v36 = vld [vmem:[%s6117_s22 + $0x98] sm:$0xff]   ;;  %4403 = vmatpush3.bf16.msra.mxu1 %v4750_v35 }
 0x146   : > { %4358 = vmatpush3.bf16.msra.mxu0 %v4728_v37  ;;  %v4752_v37 = vld [vmem:[%s6117_s22 + $0x60] sm:$0xff]  }
 0x147   : > { %4568 = vmatprep.subr.bf16.mxu0 %v4930_v39  ;;  %4404 = vmatprep.subr.bf16.mxu1 %v4752_v37  ;;  %v4783_v37 = vld [vmem:[%s6117_s22 + $0x1d8] sm:$0xff]  }
 0x149   : > { %1518 = vmatmul.mubr.bf16.vlgmr.msra.gmra.mrb[8].mxu0 %v950_v40  ;;  %v4754_v40 = vld [vmem:[%s6117_s22 + $0x20] sm:$0xff]  }
 0x14a   : > { %4569 = vmatpush3.bf16.msra.mxu0 %v4729_v38  ;;  %4584 = vmatprep.mubr.msk.bf16.mxu0 %vm4931_vm6, %v4930_v39  ;;  %v4755_v38 = vld [vmem:[%s6117_s22 + $0xe0] sm:$0xff]  }
 0x14b   : > { %4570 = vmatprep.subr.bf16.mxu0 %v4930_v39  ;;  %4405 = vmatpush3.bf16.msra.mxu1 %v4754_v40  ;;  %v4785_v40 = vld [vmem:[%s6117_s22 + $0x198] sm:$0xff]  }
 0x14e   : > { %4571 = vmatpush3.bf16.msra.mxu0 %v4730_v41  ;;  %v4757_v41 = vld [vmem:[%s6117_s22 + $0xa0] sm:$0xff]  }
 0x14f   : > { %4572 = vmatprep.subr.bf16.mxu0 %v4930_v39 }
 0x152   : > { %4573 = vmatpush3.bf16.msra.mxu0 %v4731_v42  ;;  %v4756_v42 = vld [vmem:[%s6117_s22 + $0x68] sm:$0xff]  }
 0x153   : > { %4574 = vmatprep.subr.bf16.mxu0 %v4930_v39  ;;  %4406 = vmatprep.subr.bf16.mxu1 %v4756_v42 }
 0x156   : > { %4575 = vmatpush3.bf16.msra.mxu0 %v4732_v43  ;;  %v4759_v43 = vld [vmem:[%s6117_s22 + $0xe8] sm:$0xff]  }
 0x157   : > { %4576 = vmatprep.subr.bf16.mxu0 %v4930_v39 }
 0x15a   : > { %4577 = vmatpush3.bf16.msra.mxu0 %v4733_v44  ;;  %v4758_v44 = vld [vmem:[%s6117_s22 + $0x28] sm:$0xff]  }
 0x15b   : > { %4578 = vmatprep.subr.bf16.mxu0 %v4930_v39  ;;  %4407 = vmatpush3.bf16.msra.mxu1 %v4758_v44  ;;  %v4787_v44 = vld [vmem:[%s6117_s22 + $0x1e0] sm:$0xff]  }
 0x15e   : > { %4579 = vmatpush3.bf16.msra.mxu0 %v4734_v45  ;;  %v4761_v45 = vld [vmem:[%s6117_s22 + $0xa8] sm:$0xff]  }
 0x15f   : > { %4580 = vmatprep.subr.bf16.mxu0 %v4930_v39 }
 0x162   : > { %4581 = vmatpush3.bf16.msra.mxu0 %v4735_v46  ;;  %v4760_v46 = vld [vmem:[%s6117_s22 + $0x70] sm:$0xff]  }
 0x163   : > { %4582 = vmatprep.subr.bf16.mxu0 %v4930_v39  ;;  %4408 = vmatprep.subr.bf16.mxu1 %v4760_v46  ;;  %v4788_v46 = vld [vmem:[%s6117_s22 + $0x168] sm:$0xff]  }
 0x164   : > { %4409 = vmatpush3.bf16.msra.mxu1 %v4762_v48  ;;  %v4790_v48 = vld [vmem:[%s6117_s22 + $0x128] sm:$0xff]  }
 0x166   : > { %4583 = vmatpush3.bf16.msra.mxu0 %v4736_v47  ;;  %v4763_v47 = vld [vmem:[%s6117_s22 + $0xf0] sm:$0xff]  }
 0x167   : > { %4418 = vmatprep.subr.bf16.mxu0 %v4739_v23  ;;  %v4774_v23 = vld [vmem:[%s6117_s22 + $0x108] sm:$0xff]  }
 0x169   : > { %4585 = vmatmul.mubr.bf16.vlgmr.msra.gmra.mrb[12].mxu0 %v971_v50  ;;  %v4764_v50 = vld [vmem:[%s6117_s22 + $0x78] sm:$0xff]  }
 0x16a   : > { %4419 = vmatpush3.bf16.msra.mxu0 %v4741_v25  ;;  %4410 = vmatprep.subr.bf16.mxu1 %v4764_v50  ;;  %v4792_v50 = vld [vmem:[%s6117_s22 + $0x170] sm:$0xff]  }
 0x16b   : > { %4420 = vmatprep.subr.bf16.mxu0 %v4743_v26  ;;  %v4777_v26 = vld [vmem:[%s6117_s22 + $0x188] sm:$0xff]  }
 0x16e   : > { %4421 = vmatpush3.bf16.msra.mxu0 %v4745_v28 }
 0x16f   : > { %4422 = vmatprep.subr.bf16.mxu0 %v4747_v30  ;;  %v4779_v30 = vld [vmem:[%s6117_s22 + $0x1d0] sm:$0xff]  }
 0x172   : > { %4423 = vmatpush3.bf16.msra.mxu0 %v4749_v32  ;;  %v4780_v32 = vld [vmem:[%s6117_s22 + $0x158] sm:$0xff]  }
 0x173   : > { %4424 = vmatprep.subr.bf16.mxu0 %v4751_v34 }
 0x176   : > { %4425 = vmatpush3.bf16.msra.mxu0 %v4753_v36  ;;  %v4782_v36 = vld [vmem:[%s6117_s22 + $0x118] sm:$0xff]  }
 0x177   : > { %4426 = vmatprep.subr.bf16.mxu0 %v4755_v38  ;;  %v4784_v38 = vld [vmem:[%s6117_s22 + $0x160] sm:$0xff]  }
 0x17a   : > { %4427 = vmatpush3.bf16.msra.mxu0 %v4757_v41 }
 0x17b   : > { %4428 = vmatprep.subr.bf16.mxu0 %v4759_v43  ;;  %v4786_v43 = vld [vmem:[%s6117_s22 + $0x120] sm:$0xff]  }
 0x17e   : > { %4429 = vmatpush3.bf16.msra.mxu0 %v4761_v45 }
 0x17f   : > { %4430 = vmatprep.subr.bf16.mxu0 %v4763_v47  ;;  %v4789_v47 = vld [vmem:[%s6117_s22 + $0x1a0] sm:$0xff]  }
 0x182   : > { %4431 = vmatpush3.bf16.msra.mxu0 %v4765_v49  ;;  %v4791_v49 = vld [vmem:[%s6117_s22 + $0x1e8] sm:$0xff]  }
 0x1dc   : > { %v4315_v51 = vpop.f32.mrb[0].mxu0 }
 0x1dd   : > { %v4316_v52 = vpop.f32.mrb[1].mxu0 }
 0x1de   : > { %v4317_v53 = vadd.f32 %v4316_v52, %v4315_v51  ;;  %v4318_v54 = vpop.f32.mrb[2].mxu0  ;;  %v4766_v51 = vld [vmem:[%s6117_s22 + $0x38] sm:$0xff]  }
 0x1df   : > { %v4319_v55 = vpop.f32.mrb[3].mxu0  ;;  %4411 = vmatpush3.bf16.msra.mxu1 %v4766_v51  ;;  %v4767_v52 = vld [vmem:[%s6117_s22 + $0xf8] sm:$0xff]   ;;  %v4769_v54 = vld [vmem:[%s6117_s22 + $0x140] sm:$0xff]   ;;  %v4793_v51 = vld [vmem:[%s6117_s22 + $0x1a8] sm:$0xff]  }
 0x1e0   : > { %4432 = vmatprep.subr.bf16.mxu0 %v4767_v52  ;;  %4440 = vmatprep.subr.bf16.mxu1 %v4769_v54  ;;  %v4771_v55 = vld [vmem:[%s6117_s22 + $0x1c0] sm:$0xff]   ;;  %v4794_v52 = vld [vmem:[%s6117_s22 + $0x130] sm:$0xff]   ;;  %v4796_v54 = vld [vmem:[%s6117_s22 + $0x178] sm:$0xff]  }
 0x1ec   : > { %v4381_v56 = vpop.f32.mrb[0].mxu1 }
 0x1ed   : > { %v4382_v58 = vpop.f32.mrb[1].mxu1 }
 0x1ee   : > { %v4383_v59 = vadd.f32 %v4382_v58, %v4381_v56  ;;  %v4384_v60 = vpop.f32.mrb[2].mxu1 }
 0x1ef   : > { %v4385_v61 = vpop.f32.mrb[3].mxu1 }
 0x1fc   : > { %v4337_v62 = vpop.f32.mrb[4].mxu0 }
 0x1fd   : > { %v4338_v63 = vpop.f32.mrb[5].mxu0 }
 0x1fe   : > { %v4339_v0 = vadd.f32 %v4338_v63, %v4337_v62  ;;  %v4340_v1 = vpop.f32.mrb[6].mxu0 }
 0x1ff   : > { %v4341_v2 = vpop.f32.mrb[7].mxu0 }
 0x200   : > { %v1480_v3 = vadd.f32 %v4339_v0, %v4317_v53  ;;  %v4768_v53 = vld [vmem:[%s6117_s22 + $0xb8] sm:$0xff]  }
 0x201   : > { %4433 = vmatpush3.bf16.msra.mxu0 %v4768_v53  ;;  %v4795_v53 = vld [vmem:[%s6117_s22 + $0x1f0] sm:$0xff]  }
 0x202   : > { %4462 = vmatprep.subr.bf16.mxu0 %v4771_v55  ;;  %v4797_v55 = vld [vmem:[%s6117_s22 + $0x1b0] sm:$0xff]  }
 0x21c   : > { %v4359_v4 = vpop.f32.mrb[8].mxu0 }
 0x21d   : > { %v4360_v5 = vpop.f32.mrb[9].mxu0 }
 0x21e   : > { %v4361_v6 = vadd.f32 %v4360_v5, %v4359_v4  ;;  %v4362_v7 = vpop.f32.mrb[10].mxu0 }
 0x21f   : > { %v4363_v8 = vpop.f32.mrb[11].mxu0 }
 0x220   : > { %v1520_v9 = vadd.f32 %v4361_v6, %v1480_v3 }
 0x222   : > { %v1560_v10 = vadd.f32 %v4383_v59, %v1520_v9 }
 0x23c   : > { %v1599_v12 = vpop.f32.mrb[12].mxu0 }
 0x23d   : > { %v1600_v13 = vadd.f32 %v1599_v12, %v1560_v10  ;;  %v4586_v14 = vpop.f32.mrb[13].mxu0 }
 0x23e   : > { %v1602_v15 = vpop.f32.mrb[14].mxu0 }
 0x23f   : > { %v1611_v17 = vmul.f32 %v4094_v11, %v1600_v13  ;;  %v4587_v18 = vpop.f32.mrb[15].mxu0 }
 0x241   : > { %v1618_v19 = vadd.f32 %v4095_v16, %v1611_v17  ;;  %v4770_v16 = vld [vmem:[%s6117_s22 + $0x100] sm:$0xff]  }
 0x243   : > { %v1619_v20 = vmax.f32 %v1618_v19, 0.0  ;;  %v4772_v19 = vld [vmem:[%s6117_s22 + $0x148] sm:$0xff]  }
 0x245   : > { %1621 = vrot.lane.b32.xlu1 %v1619_v20, %s6091_s23  ;;  %v4773_v20 = vld [vmem:[%s6117_s22 + $0x180] sm:$0xff]  }
 0x2b7   : > { %v1622_v56 = vpop.permute.xlu1 %1621 }
 0x2b8   : > { %v1624_v58 = vsel %vm898_vm0, 0.0, %v1622_v56  ;;  %v1625_v59 = vsel %vm898_vm0, %v1622_v56, 0.0  ;;  %v4798_v56 = vld [vmem:[%s6117_s22 + $0x138] sm:$0xff]  }
 0x2b9   : > { %v1628_v60 = vrot.slane %v1624_v58, 7  ;;  %v1629_v61 = vrot.slane %v1625_v59, 7  ;;  %v4799_v58 = vld [vmem:[%s6117_s22 + $0x1f8] sm:$0xff]  }
 0x2ba   : > { %v4800_v59 = vld [vmem:[%s6117_s22 + $0x1b8] sm:$0xff]  }
 0x2bb   : > { %v1632_v62 = vsel %vm907_vm1, 0.0, %v1628_v60  ;;  %v1633_v63 = vsel %vm907_vm1, 0.0, %v1629_v61  ;;  %v4801_v60 = vld [vmem:[%s6117_s22 + $0x200] sm:$0xff]  }
 0x2bc   : > { %v1634_v0 = vsel %vm910_vm2, %v1632_v62, 0.0  ;;  %v1635_v1 = vsel %vm910_vm2, %v1633_v63, 0.0  ;;  %v4169_v17 = vpack.c.bf16 %v1632_v62, %v1632_v62  ;;  %v4802_v62 = vld [vmem:[%s6117_s22 + $0x208] sm:$0xff]   ;;  %v4803_v63 = vld [vmem:[%s6117_s22 + $0x210] sm:$0xff]  }
 0x2bd   : > { %v1636_v2 = vpack.c.bf16 %v1634_v0, %v1634_v0  ;;  %v1637_v3 = vpack.c.bf16 %v1635_v1, %v1635_v1  ;;  %v4804_v0 = vld [vmem:[%s6117_s22 + $0x218] sm:$0xff]   ;;  %v4805_v1 = vld [vmem:[%s6117_s22 + $0x220] sm:$0xff]  }
 0x2bf   : > { %1642 = vrot.lane.b32.xlu1 %v1637_v3, %s6118_s28  ;;  %1640 = vrot.lane.b32.xlu0 %v1636_v2, %s6118_s28  ;;  %v1655_v4 = vshll.u32 %v1636_v2, 16  ;;  %v1663_v5 = vshll.u32 %v1637_v3, 16  ;;  %v1653_v6 = vshrl.u32 %v1636_v2, 16  ;;  %v1661_v10 = vshrl.u32 %v1637_v3, 16 }
 0x2c0   : > { %v1681_v12 = vrot.slane %v1637_v3, 1  ;;  %v5447_v13 = vrot.slane %v1636_v2, 1 }
 0x2c1   : > { %v1657_v7 = vrot.slane %v1655_v4, 1  ;;  %v1665_v8 = vrot.slane %v1663_v5, 1  ;;  %v4808_v4 = vld [vmem:[%s6117_s22 + $0x238] sm:$0xff]  }
 0x2c3   : > { %1648 = vrot.lane.b32.xlu1 %v1637_v3, %s6119_s29  ;;  %1646 = vrot.lane.b32.xlu0 %v1636_v2, %s6119_s29  ;;  %v1658_v9 = vor.u32 %v1657_v7, %v1653_v6  ;;  %v1666_v11 = vor.u32 %v1665_v8, %v1661_v10  ;;  %v4806_v2 = vld [vmem:[%s6117_s22 + $0x228] sm:$0xff]   ;;  %v4807_v3 = vld [vmem:[%s6117_s22 + $0x230] sm:$0xff]  }
 0x2c4   : > { %v4809_v8 = vld [vmem:[%s6120_s7] ss:$8 sps:$4 sm:$0xff]   ;;  %v4814_v10 = vld [vmem:[%s6120_s7 + $0x14] ss:$8 sps:$4 sm:$0xff]  }
 0x2c5   : > { %2198 = vmatprep.mubr.bf16.mxu0 %v1658_v9 }
 0x2c7   : > { %1675 = vrot.lane.b32.xlu1 %v1666_v11, %s6119_s29  ;;  %1673 = vrot.lane.b32.xlu0 %v1658_v9, %s6119_s29 }
 0x2cb   : > { %1669 = vrot.lane.b32.xlu1 %v1666_v11, %s6118_s28  ;;  %1667 = vrot.lane.b32.xlu0 %v1658_v9, %s6118_s28  ;;  %v4811_v9 = vld [vmem:[%s6120_s7 + $0x4] ss:$8 sps:$4 sm:$0xff]   ;;  %v4812_v11 = vld [vmem:[%s6120_s7 + $0x10] ss:$8 sps:$4 sm:$0xff]  }
 0x2cf   : > { %1684 = vrot.lane.b32.xlu1 %v1681_v12, %s6118_s28  ;;  %1682 = vrot.lane.b32.xlu0 %v5447_v13, %s6118_s28  ;;  %s6130_s28 = smov 120  }
 0x2d3   : > { %1690 = vrot.lane.b32.xlu1 %v1681_v12, %s6119_s29  ;;  %1688 = vrot.lane.b32.xlu0 %v5447_v13, %s6119_s29  ;;  %v4817_v12 = vld [vmem:[%s6120_s7 + $0x24] ss:$8 sps:$4 sm:$0xff]   ;;  %s4298_s29 = sshll.u32 %s6133_s30, 4 }
 0x331   : > { %v1643_v14 = vpop.permute.xlu1 %1642  ;;  %v1641_v15 = vpop.permute.xlu0 %1640 }
 0x332   : > { %v1644_v18 = vsel %vm921_vm3, %v1641_v15, %v1643_v14  ;;  %v4820_v14 = vld [vmem:[%s6120_s7 + $0x34] ss:$8 sps:$4 sm:$0xff]   ;;  %v4818_v15 = vld [vmem:[%s6120_s7 + $0x30] ss:$8 sps:$4 sm:$0xff]  }
 0x333   : > { %2158 = vmatprep.mubr.bf16.mxu1 %v1644_v18  ;;  %v4826_v18 = vld [vmem:[%s6120_s7 + $0x54] ss:$8 sps:$4 sm:$0xff]  }
 0x334   : > { %4170 = vmatmul.mubr.msk.bf16.vlgmr.msra.gmra.mrb[4].mxu1 %vm5179_vm4, %v4169_v17  ;;  %v4821_v17 = vld [vmem:[%s6120_s7 + $0x40] ss:$8 sps:$4 sm:$0xff]   ;;  %vm2954_vm4 = vcmask 130048  }
 0x335   : > { %4441 = vmatpush3.bf16.msra.mxu1 %v4770_v16  ;;  %v1649_v21 = vpop.permute.xlu1 %1648  ;;  %v1647_v22 = vpop.permute.xlu0 %1646  ;;  %v4823_v16 = vld [vmem:[%s6120_s7 + $0x44] ss:$8 sps:$4 sm:$0xff]  }
 0x336   : > { %v1650_v25 = vsel %vm928_vm5, %v1647_v22, %v1649_v21  ;;  %4442 = vmatprep.subr.bf16.mxu1 %v4772_v19  ;;  %v4824_v19 = vld [vmem:[%s6120_s7 + $0x50] ss:$8 sps:$4 sm:$0xff]   ;;  %v4827_v21 = vld [vmem:[%s6120_s7 + $0x60] ss:$8 sps:$4 sm:$0xff]  }
 0x337   : > { %2199 = vmatmul.mubr.bf16.vlgmr.msra.gmra.mrb[16].mxu0 %v1650_v25  ;;  %v4830_v22 = vld [vmem:[%s6120_s7 + $0x70] ss:$8 sps:$4 sm:$0xff]  }
 0x338   : > { %4463 = vmatpush3.bf16.msra.mxu0 %v4773_v20  ;;  %v4829_v20 = vld [vmem:[%s6120_s7 + $0x64] ss:$8 sps:$4 sm:$0xff]  }
 0x339   : > { %4443 = vmatpush3.bf16.msra.mxu1 %v4774_v23  ;;  %v1676_v27 = vpop.permute.xlu1 %1675  ;;  %v1674_v28 = vpop.permute.xlu0 %1673  ;;  %4464 = vmatprep.subr.bf16.mxu0 %v4775_v24  ;;  %v4832_v23 = vld [vmem:[%s6120_s7 + $0x74] ss:$8 sps:$4 sm:$0xff]   ;;  %v4932_v24 = vmov 0  }
 0x33a   : > { %4444 = vmatprep.subr.bf16.mxu1 %v4776_v57  ;;  %v1677_v31 = vsel %vm928_vm5, %v1674_v28, %v1676_v27 }
 0x33b   : > { %2238 = vmatprep.mubr.bf16.mxu1 %v1677_v31 }
 0x33c   : > { %4465 = vmatpush3.bf16.msra.mxu0 %v4777_v26 }
 0x33d   : > { %4445 = vmatpush3.bf16.msra.mxu1 %v4778_v29  ;;  %v1670_v34 = vpop.permute.xlu1 %1669  ;;  %v1668_v35 = vpop.permute.xlu0 %1667  ;;  %4466 = vmatprep.subr.bf16.mxu0 %v4779_v30 }
 0x33e   : > { %4446 = vmatprep.subr.bf16.mxu1 %v4780_v32  ;;  %v1671_v61 = vsel %vm921_vm3, %v1668_v35, %v1670_v34 }
 0x340   : > { %4467 = vmatpush3.bf16.msra.mxu0 %v4781_v33 }
 0x341   : > { %4447 = vmatpush3.bf16.msra.mxu1 %v4782_v36  ;;  %v1685_v41 = vpop.permute.xlu1 %1684  ;;  %v1683_v42 = vpop.permute.xlu0 %1682  ;;  %4468 = vmatprep.subr.bf16.mxu0 %v4783_v37 }
 0x342   : > { %4448 = vmatprep.subr.bf16.mxu1 %v4784_v38  ;;  %v1686_v45 = vsel %vm921_vm3, %v1683_v42, %v1685_v41 }
 0x343   : > { %2278 = vmatprep.mubr.bf16.mxu0 %v1686_v45 }
 0x344   : > { %4469 = vmatpush3.bf16.msra.mxu0 %v4785_v40 }
 0x345   : > { %4449 = vmatpush3.bf16.msra.mxu1 %v4786_v43  ;;  %4470 = vmatprep.subr.bf16.mxu0 %v4787_v44  ;;  %v1691_v5 = vpop.permute.xlu1 %1690  ;;  %v1689_v6 = vpop.permute.xlu0 %1688 }
 0x346   : > { %4450 = vmatprep.subr.bf16.mxu1 %v4788_v46  ;;  %v1692_v7 = vsel %vm928_vm5, %v1689_v6, %v1691_v5 }
 0x348   : > { %4471 = vmatpush3.bf16.msra.mxu0 %v4789_v47 }
 0x349   : > { %4451 = vmatpush3.bf16.msra.mxu1 %v4790_v48  ;;  %4472 = vmatprep.subr.bf16.mxu0 %v4791_v49  ;;  %v4171_v48 = vld [vmem:[%s6121_s5] ss:$0 sm:$0xff] }
 0x34a   : > { %4452 = vmatprep.subr.bf16.mxu1 %v4792_v50 }
 0x34c   : > { %4473 = vmatpush3.bf16.msra.mxu0 %v4793_v51 }
 0x34d   : > { %4453 = vmatpush3.bf16.msra.mxu1 %v4794_v52  ;;  %4474 = vmatprep.subr.bf16.mxu0 %v4795_v53  ;;  %v4172_v52 = vld [vmem:[%s6122_s6] ss:$0 sm:$0xff] }
 0x34e   : > { %4454 = vmatprep.subr.bf16.mxu1 %v4796_v54 }
 0x350   : > { %4475 = vmatpush3.bf16.msra.mxu0 %v4797_v55 }
 0x351   : > { %4455 = vmatpush3.bf16.msra.mxu1 %v4798_v56  ;;  %4476 = vmatprep.subr.bf16.mxu0 %v4799_v58  ;;  %v4918_v58 = vld [vmem:[%s5056_s2] sm:$0xf]  ;;  %s4933_s2 = smov 80  }
 0x352   : > { %4588 = vmatprep.subr.bf16.mxu1 %v4930_v39 }
 0x354   : > { %2239 = vmatmul.mubr.bf16.vlgmr.msra.gmra.mrb[8].mxu1 %v1671_v61  ;;  %4477 = vmatpush3.bf16.msra.mxu0 %v4800_v59 }
 0x355   : > { %4589 = vmatpush3.bf16.msra.mxu1 %v4801_v60  ;;  %4604 = vmatprep.mubr.msk.bf16.mxu1 %vm4931_vm6, %v4930_v39  ;;  %vm2947_vm6 = vcmask 392192  }
 0x356   : > { %4590 = vmatprep.subr.bf16.mxu1 %v4930_v39  ;;  %2440 = vmatprep.subr.bf16.mxu0 %v4811_v9 }
 0x357   : > { %2279 = vmatmul.mubr.bf16.vlgmr.msra.gmra.mrb[20].mxu0 %v5447_v13  ;;  %v4815_v13 = vld [vmem:[%s6120_s7 + $0x20] ss:$8 sps:$4 sm:$0xff]  }
 0x358   : > { %2441 = vmatpush1.bf16.msra.mxu0 %v4809_v8  ;;  %2472 = vmatprep.mubr.bf16.mxu0 %v4932_v24 }
 0x359   : > { %4591 = vmatpush3.bf16.msra.mxu1 %v4802_v62  ;;  %2442 = vmatprep.subr.bf16.mxu0 %v4814_v10 }
 0x35a   : > { %4592 = vmatprep.subr.bf16.mxu1 %v4930_v39 }
 0x35c   : > { %2443 = vmatpush1.bf16.msra.mxu0 %v4812_v11 }
 0x35d   : > { %4593 = vmatpush3.bf16.msra.mxu1 %v4803_v63  ;;  %2444 = vmatprep.subr.bf16.mxu0 %v4817_v12  ;;  %v2481_v63 = vlaneseq }
 0x35e   : > { %4594 = vmatprep.subr.bf16.mxu1 %v4930_v39 }
 0x360   : > { %2445 = vmatpush1.bf16.msra.mxu0 %v4815_v13 }
 0x361   : > { %4595 = vmatpush3.bf16.msra.mxu1 %v4804_v0  ;;  %2446 = vmatprep.subr.bf16.mxu0 %v4820_v14  ;;  %v2485_v0 = vand.u32 127, %v2481_v63 }
 0x362   : > { %4596 = vmatprep.subr.bf16.mxu1 %v4930_v39 }
 0x364   : > { %2447 = vmatpush1.bf16.msra.mxu0 %v4818_v15 }
 0x365   : > { %4597 = vmatpush3.bf16.msra.mxu1 %v4805_v1  ;;  %2448 = vmatprep.subr.bf16.mxu0 %v4823_v16  ;;  %v2486_v1 = vmul.u32 3, %v2485_v0 }
 0x366   : > { %4598 = vmatprep.subr.bf16.mxu1 %v4930_v39 }
 0x367   : > { %v2671_v6 = vadd.s32 2, %v2486_v1 }
 0x368   : > { %2449 = vmatpush1.bf16.msra.mxu0 %v4821_v17 }
 0x369   : > { %4599 = vmatpush3.bf16.msra.mxu1 %v4806_v2  ;;  %2450 = vmatprep.subr.bf16.mxu0 %v4826_v18  ;;  %v2482_v2 = vshrl.u32 %v2481_v63, 7 }
 0x36a   : > { %4600 = vmatprep.subr.bf16.mxu1 %v4930_v39 }
 0x36b   : > { %vm2487_vm10 = vcmp.eq.s32.totalorder %v2482_v2, %v2486_v1  ;;  %vm2672_vm12 = vcmp.eq.s32.totalorder %v2482_v2, %v2671_v6 }
 0x36c   : > { %2451 = vmatpush1.bf16.msra.mxu0 %v4824_v19  ;;  %v4189_v13 = vsel %vm2487_vm10, 1.0, %v4930_v39  ;;  %v4199_v18 = vsel %vm2672_vm12, 1.0, %v4930_v39 }
 0x36d   : > { %4601 = vmatpush3.bf16.msra.mxu1 %v4807_v3  ;;  %2452 = vmatprep.subr.bf16.mxu0 %v4829_v20  ;;  %v2493_v3 = vadd.s32 1, %v2486_v1  ;;  %v4204_v20 = vld [vmem:[%s6123_s8] ss:$0 sm:$0xff]  ;;  %s599_s8 = scalar_lea.vmem %s6079_s19, %s4298_s29 }
 0x36e   : > { %4602 = vmatprep.subr.bf16.mxu1 %v4930_v39 }
 0x36f   : > { %vm2494_vm7 = vcmp.eq.s32.totalorder %v2482_v2, %v2493_v3 }
 0x370   : > { %2453 = vmatpush1.bf16.msra.mxu0 %v4827_v21  ;;  %v4191_v5 = vsel %vm2494_vm7, 1.0, %v4930_v39  ;;  %vm2960_vm7 = vcmask 916480  }
 0x371   : > { %4603 = vmatpush3.bf16.msra.mxu1 %v4808_v4  ;;  %2454 = vmatprep.subr.bf16.mxu0 %v4832_v23  ;;  %v2483_v4 = vadd.s32 8, %v2482_v2 }
 0x373   : > { %vm2495_vm9 = vcmp.eq.s32.totalorder %v2483_v4, %v2493_v3  ;;  %vm2488_vm11 = vcmp.eq.s32.totalorder %v2483_v4, %v2486_v1  ;;  %vm2673_vm13 = vcmp.eq.s32.totalorder %v2483_v4, %v2671_v6 }
 0x374   : > { %4605 = vmatmul.mubr.bf16.vlgmr.msra.gmra.mrb[12].mxu1 %v1692_v7  ;;  %2455 = vmatpush1.bf16.msra.mxu0 %v4830_v22  ;;  %v4192_v12 = vsel %vm2495_vm9, 1.0, %v4930_v39  ;;  %v4190_v17 = vsel %vm2488_vm11, 1.0, %v4930_v39  ;;  %v4200_v19 = vsel %vm2673_vm13, 1.0, %v4930_v39  ;;  %v4205_v22 = vld [vmem:[%s6069_s9] ss:$0 sm:$0xff]  ;;  %vm2966_vm9 = vcmask 654336  }
 0x375   : > { %3176 = vmatprep.subr.bf16.mxu0 %v4932_v24  ;;  %4610 = vmatprep.mubr.msk.f32.mxu1 %vm2503_vm8, %v4191_v5  ;;  %v4859_v5 = vld [vmem:[%s6070_s10 + $0xd0] sm:$0xff]  }
 0x407   : > { %v4412_v25 = vpop.f32.mrb[4].mxu1 }
 0x408   : > { %v4413_v57 = vpop.f32.mrb[5].mxu1 }
 0x409   : > { %v4414_v26 = vadd.f32 %v4413_v57, %v4412_v25  ;;  %v4415_v27 = vpop.f32.mrb[6].mxu1 }
 0x40a   : > { %v4416_v28 = vpop.f32.mrb[7].mxu1  ;;  %v4434_v29 = vpop.f32.mrb[16].mxu0 }
 0x40b   : > { %v4435_v30 = vpop.f32.mrb[17].mxu0  ;;  %v4833_v28 = vld [vmem:[%s6070_s10 + $0x80] sm:$0xff]  }
 0x40c   : > { %v4436_v31 = vadd.f32 %v4435_v30, %v4434_v29  ;;  %v4437_v32 = vpop.f32.mrb[18].mxu0  ;;  %v4835_v29 = vld [vmem:[%s6070_s10 + $0x40] sm:$0xff]  }
 0x40d   : > { %v4438_v33 = vpop.f32.mrb[19].mxu0  ;;  %v4837_v30 = vld [vmem:[%s6070_s10] sm:$0xff]   ;;  %v4834_v32 = vld [vmem:[%s6070_s10 + $0x88] sm:$0xff]  }
 0x40e   : > { %v2201_v34 = vadd.f32 %v4436_v31, %v4414_v26  ;;  %v4838_v31 = vld [vmem:[%s6070_s10 + $0x48] sm:$0xff]  }
 0x40f   : > { %v4840_v33 = vld [vmem:[%s6070_s10 + $0x8] sm:$0xff]  }
 0x427   : > { %v4456_v35 = vpop.f32.mrb[8].mxu1 }
 0x428   : > { %v4457_v36 = vpop.f32.mrb[9].mxu1 }
 0x429   : > { %v4458_v37 = vadd.f32 %v4457_v36, %v4456_v35  ;;  %v4459_v38 = vpop.f32.mrb[10].mxu1  ;;  %v4836_v35 = vld [vmem:[%s6070_s10 + $0x90] sm:$0xff]  }
 0x42a   : > { %v4460_v40 = vpop.f32.mrb[11].mxu1  ;;  %v4478_v41 = vpop.f32.mrb[20].mxu0  ;;  %v4843_v36 = vld [vmem:[%s6070_s10 + $0x10] sm:$0xff]   ;;  %v4839_v38 = vld [vmem:[%s6070_s10 + $0x98] sm:$0xff]  }
 0x42b   : > { %v2241_v42 = vadd.f32 %v4458_v37, %v2201_v34  ;;  %v4479_v43 = vpop.f32.mrb[21].mxu0  ;;  %v4841_v34 = vld [vmem:[%s6070_s10 + $0x50] sm:$0xff]   ;;  %v4844_v37 = vld [vmem:[%s6070_s10 + $0x58] sm:$0xff]  }
 0x42c   : > { %v4480_v44 = vadd.f32 %v4479_v43, %v4478_v41  ;;  %v4481_v45 = vpop.f32.mrb[22].mxu0  ;;  %v4846_v40 = vld [vmem:[%s6070_s10 + $0x18] sm:$0xff]   ;;  %v4847_v41 = vld [vmem:[%s6070_s10 + $0x60] sm:$0xff]  }
 0x42d   : > { %v4482_v46 = vpop.f32.mrb[23].mxu0  ;;  %v4849_v43 = vld [vmem:[%s6070_s10 + $0x20] sm:$0xff]   ;;  %v4848_v45 = vld [vmem:[%s6070_s10 + $0xb0] sm:$0xff]  }
 0x42e   : > { %v2281_v47 = vadd.f32 %v4480_v44, %v2241_v42  ;;  %v4842_v42 = vld [vmem:[%s6070_s10 + $0xa0] sm:$0xff]   ;;  %v4845_v44 = vld [vmem:[%s6070_s10 + $0xa8] sm:$0xff]  }
 0x42f   : > { %v4850_v46 = vld [vmem:[%s6070_s10 + $0x68] sm:$0xff]  }
 0x447   : > { %v2320_v49 = vpop.f32.mrb[12].mxu1 }
 0x448   : > { %v2321_v50 = vadd.f32 %v2320_v49, %v2281_v47  ;;  %v4606_v51 = vpop.f32.mrb[13].mxu1  ;;  %v4851_v47 = vld [vmem:[%s6070_s10 + $0xb8] sm:$0xff]   ;;  %v4853_v49 = vld [vmem:[%s6070_s10 + $0x70] sm:$0xff]  }
 0x449   : > { %v2323_v53 = vpop.f32.mrb[14].mxu1 }
 0x44a   : > { %v2332_v54 = vmul.f32 %v4171_v48, %v2321_v50  ;;  %v4607_v55 = vpop.f32.mrb[15].mxu1  ;;  %v4852_v48 = vld [vmem:[%s6070_s10 + $0x28] sm:$0xff]   ;;  %v4854_v50 = vld [vmem:[%s6070_s10 + $0xc0] sm:$0xff]  }
 0x44c   : > { %v2339_v56 = vadd.f32 %v4172_v52, %v2332_v54  ;;  %v4855_v52 = vld [vmem:[%s6070_s10 + $0x30] sm:$0xff]  }
 0x44e   : > { %v2340_v59 = vadd.f32 %v4918_v58, %v2339_v56 }
 0x450   : > { %v2341_v60 = vmax.f32 %v2340_v59, 0.0 }
 0x452   : > { %v2342_v61 = vadd.f32 %v4918_v58, %v2341_v60  ;;  %v4856_v60 = vld [vmem:[%s6070_s10 + $0x78] sm:$0xff]  }
 0x454   : > { %v2343_v62 = vpack.c.bf16 %v2342_v61, %v2342_v61  ;;  %v4857_v61 = vld [vmem:[%s6070_s10 + $0xc8] sm:$0xff]  }
 0x456   : > { %2473 = vmatmul.mubr.bf16.vlgmr.msra.gmra.mrb[24].mxu0 %v2343_v62  ;;  %v4858_v62 = vld [vmem:[%s6070_s10 + $0x38] sm:$0xff]  }
 0x457   : > { %3177 = vmatpush1.bf16.msra.mxu0 %v4833_v28 }
 0x458   : > { %3178 = vmatprep.subr.bf16.mxu0 %v4932_v24 }
 0x45b   : > { %3179 = vmatpush1.bf16.msra.mxu0 %v4834_v32  ;;  %v4234_v32 = vld [vmem:[%s6072_s12] ss:$0 sm:$0xff] }
 0x45c   : > { %3180 = vmatprep.subr.bf16.mxu0 %v4932_v24 }
 0x45f   : > { %3181 = vmatpush1.bf16.msra.mxu0 %v4836_v35 }
 0x460   : > { %3182 = vmatprep.subr.bf16.mxu0 %v4932_v24 }
 0x463   : > { %3183 = vmatpush1.bf16.msra.mxu0 %v4839_v38 }
 0x464   : > { %3184 = vmatprep.subr.bf16.mxu0 %v4932_v24 }
 0x467   : > { %3185 = vmatpush1.bf16.msra.mxu0 %v4842_v42 }
 0x468   : > { %3186 = vmatprep.subr.bf16.mxu0 %v4932_v24 }
 0x46b   : > { %3187 = vmatpush1.bf16.msra.mxu0 %v4845_v44 }
 0x46c   : > { %3188 = vmatprep.subr.bf16.mxu0 %v4932_v24 }
 0x46f   : > { %3189 = vmatpush1.bf16.msra.mxu0 %v4848_v45 }
 0x470   : > { %3190 = vmatprep.subr.bf16.mxu0 %v4932_v24 }
 0x473   : > { %3191 = vmatpush1.bf16.msra.mxu0 %v4851_v47 }
 0x474   : > { %3192 = vmatprep.subr.bf16.mxu0 %v4932_v24 }
 0x477   : > { %3193 = vmatpush1.bf16.msra.mxu0 %v4854_v50  ;;  %v4862_v50 = vld [vmem:[%s6071_s11 + $0x40] sm:$0xff]  }
 0x478   : > { %3194 = vmatprep.subr.bf16.mxu0 %v4932_v24 }
 0x47b   : > { %3195 = vmatpush1.bf16.msra.mxu0 %v4857_v61  ;;  %v4873_v61 = vld [vmem:[%s6071_s11 + $0x18] sm:$0xff]  }
 0x47c   : > { %3196 = vmatprep.subr.bf16.mxu0 %v4932_v24 }
 0x47f   : > { %3197 = vmatpush1.bf16.msra.mxu0 %v4859_v5  ;;  %v4879_v5 = vld [vmem:[%s6071_s11 + $0x28] sm:$0xff]  }
 0x480   : > { %3505 = vmatprep.subr.bf16.mxu0 %v4932_v24 }
 0x529   : > { %v2474_v7 = vpop.f32.mrb[24].mxu0 }
 0x52a   : > { %2679 = vrot.lane.b32.xlu1 %v2474_v7, %s6091_s23  ;;  %2501 = vrot.lane.b32.xlu0 %v2474_v7, %s4933_s2  ;;  %v2476_v8 = vpop.f32.mrb[25].mxu0  ;;  %s6099_s2 = smov 88  }
 0x52b   : > { %v2478_v9 = vpop.f32.mrb[26].mxu0 }
 0x52c   : > { %v2479_v10 = vpop.f32.mrb[27].mxu0 }
 0x52e   : > { %2681 = vrot.lane.b32.xlu0 %v2476_v8, %s6091_s23 }
 0x59c   : > { %v2502_v11 = vpop.permute.xlu0 %2501  ;;  %v2680_v14 = vpop.permute.xlu1 %2679 }
 0x59d   : > { %4608 = vmatprep.subr.msk.mxu1 %vm2510_vm14, %v2502_v11 }
 0x59e   : > { %4609 = vmatpush3.msk.msra.mxu1 %vm2510_vm14, %v2502_v11 }
 0x59f   : > { %4611 = vmatmul.mubr.msk.f32.vlgmr.msra.gmra.mrb[16].mxu1 %vm2503_vm8, %v4192_v12  ;;  %4613 = vmatprep.subr.msk.mxu1 %vm2510_vm14, %v2474_v7 }
 0x5a0   : > { %4614 = vmatpush3.msk.msra.mxu1 %vm2510_vm14, %v2474_v7  ;;  %v2682_v15 = vpop.permute.xlu0 %2681  ;;  %4615 = vmatprep.mubr.msk.f32.mxu1 %vm2503_vm8, %v4189_v13 }
 0x5a1   : > { %v2683_v16 = vsel %vm898_vm0, %v2680_v14, %v2682_v15 }
 0x5a2   : > { %4618 = vmatprep.subr.msk.mxu1 %vm2510_vm14, %v2683_v16 }
 0x5a7   : > { %4616 = vmatmul.mubr.msk.f32.vlgmr.msra.gmra.mrb[16].mxu1 %vm2503_vm8, %v4190_v17 }
 0x5a8   : > { %4619 = vmatpush3.msk.msra.mxu1 %vm2510_vm14, %v2683_v16  ;;  %4620 = vmatprep.mubr.msk.f32.mxu1 %vm2503_vm8, %v4199_v18 }
 0x5a9   : > { %4502 = vmatprep.subr.bf16.mxu1 %v4835_v29 }
 0x5af   : > { %4621 = vmatmul.mubr.msk.f32.vlgmr.msra.gmra.mrb[16].mxu1 %vm2503_vm8, %v4200_v19 }
 0x5b0   : > { %4503 = vmatpush3.bf16.msra.mxu1 %v4837_v30 }
 0x5b1   : > { %4504 = vmatprep.subr.bf16.mxu1 %v4838_v31 }
 0x5b4   : > { %4505 = vmatpush3.bf16.msra.mxu1 %v4840_v33 }
 0x5b5   : > { %4506 = vmatprep.subr.bf16.mxu1 %v4841_v34 }
 0x5b8   : > { %4507 = vmatpush3.bf16.msra.mxu1 %v4843_v36 }
 0x5b9   : > { %4508 = vmatprep.subr.bf16.mxu1 %v4844_v37  ;;  %v4235_v37 = vld [vmem:[%s6073_s13] ss:$0 sm:$0xff] }
 0x5bc   : > { %4509 = vmatpush3.bf16.msra.mxu1 %v4846_v40 }
 0x5bd   : > { %4510 = vmatprep.subr.bf16.mxu1 %v4847_v41 }
 0x5c0   : > { %4511 = vmatpush3.bf16.msra.mxu1 %v4849_v43 }
 0x5c1   : > { %4512 = vmatprep.subr.bf16.mxu1 %v4850_v46 }
 0x5c4   : > { %4513 = vmatpush3.bf16.msra.mxu1 %v4852_v48 }
 0x5c5   : > { %4514 = vmatprep.subr.bf16.mxu1 %v4853_v49  ;;  %v4860_v49 = vld [vmem:[%s6071_s11 + $0x80] sm:$0xff]  }
 0x5c8   : > { %4515 = vmatpush3.bf16.msra.mxu1 %v4855_v52  ;;  %v4865_v52 = vld [vmem:[%s6071_s11 + $0x48] sm:$0xff]  }
 0x5c9   : > { %4516 = vmatprep.subr.bf16.mxu1 %v4856_v60  ;;  %v4866_v60 = vld [vmem:[%s6071_s11 + $0x98] sm:$0xff]  }
 0x5cc   : > { %4517 = vmatpush3.bf16.msra.mxu1 %v4858_v62  ;;  %v4874_v62 = vld [vmem:[%s6071_s11 + $0x60] sm:$0xff]  }
 0x5cd   : > { %4524 = vmatprep.subr.bf16.mxu1 %v4862_v50 }
 0x682   : > { %v4622_v21 = vpop.f32.mrb[16].mxu1 }
 0x683   : > { %v2777_v23 = vmul.f32 %v4622_v21, %v4204_v20  ;;  %v2758_v25 = vpop.f32.mrb[17].mxu1 }
 0x684   : > { %v2776_v57 = vmul.f32 %v4204_v20, %v2758_v25 }
 0x685   : > { %v5677_v26 = vadd.f32 %v4205_v22, %v2777_v23 }
 0x686   : > { %v5679_v27 = vadd.f32 %v4205_v22, %v2776_v57 }
 0x688   : > { %v4650_v39 = vpack.i.bf16 %v5677_v26, %v5679_v27 }
 0x68a   : > { %4651 = vrot.lane.b32.xlu1 %v4650_v39, %s4934_s3 }
 0x6fc   : > { %v4652_v51 = vpop.permute.xlu1 %4651 }
 0x6fd   : > { %v4654_v53 = vunpack.i.h.bf16 %v4652_v51  ;;  %v4653_v54 = vunpack.i.l.bf16 %v4652_v51  ;;  %v4864_v51 = vld [vmem:[%s6071_s11] sm:$0xff]  }
 0x6ff   : > { %v2908_v55 = vsel %vm2503_vm8, 0.0, %v4654_v53  ;;  %v2907_v56 = vsel %vm2503_vm8, 0.0, %v4653_v54  ;;  %v4861_v53 = vld [vmem:[%s6071_s11 + $0x88] sm:$0xff]  }
 0x700   : > { %v2911_v58 = vsel %vm2909_vm15, %v2908_v55, 0.0  ;;  %v2910_v59 = vsel %vm2909_vm15, %v2907_v56, 0.0  ;;  %v4867_v54 = vld [vmem:[%s6071_s11 + $0x8] sm:$0xff]   ;;  %v4868_v55 = vld [vmem:[%s6071_s11 + $0x50] sm:$0xff]  }
 0x701   : > { %v2915_v63 = vrot.slane %v2911_v58, 7  ;;  %v2914_v0 = vrot.slane %v2910_v59, 7  ;;  %v4863_v56 = vld [vmem:[%s6071_s11 + $0x90] sm:$0xff]   ;;  %v4871_v59 = vld [vmem:[%s6071_s11 + $0x58] sm:$0xff]  }
 0x702   : > { %v4870_v58 = vld [vmem:[%s6071_s11 + $0x10] sm:$0xff]  }
 0x703   : > { %v2916_v1 = vsel %vm907_vm1, %v2914_v0, %v2915_v63  ;;  %v2919_v2 = vsel %vm907_vm1, 0.0, %v2914_v0  ;;  %v4869_v63 = vld [vmem:[%s6071_s11 + $0xa0] sm:$0xff]  }
 0x704   : > { %v2920_v3 = vsel %vm910_vm2, %v2916_v1, 0.0  ;;  %v4876_v0 = vld [vmem:[%s6071_s11 + $0x20] sm:$0xff]   ;;  %v4872_v1 = vld [vmem:[%s6071_s11 + $0xa8] sm:$0xff]  }
 0x705   : > { %v2921_v4 = vpack.c.bf16 %v2920_v3, %v2919_v2  ;;  %v4875_v2 = vld [vmem:[%s6071_s11 + $0xb0] sm:$0xff]   ;;  %v4877_v3 = vld [vmem:[%s6071_s11 + $0x68] sm:$0xff]  }
 0x707   : > { %2923 = vrot.lane.b32.xlu1 %v2921_v4, %s6101_s1  ;;  %2925 = vrot.lane.b32.xlu0 %v2921_v4, %s6099_s2  ;;  %v2930_v6 = vshll.u32 %v2921_v4, 16  ;;  %v2928_v7 = vshrl.u32 %v2921_v4, 16  ;;  %v2940_v10 = vrot.slane %v2921_v4, 1  ;;  %s6126_s2 = smov 16  }
 0x709   : > { %v2932_v8 = vrot.slane %v2930_v6, 1  ;;  %v4880_v6 = vld [vmem:[%s6071_s11 + $0x70] sm:$0xff]  }
 0x70b   : > { %v2933_v9 = vor.u32 %v2932_v8, %v2928_v7  ;;  %v4881_v7 = vld [vmem:[%s6071_s11 + $0xc0] sm:$0xff]  }
 0x70d   : > { %2936 = vrot.lane.b32.xlu0 %v2933_v9, %s6097_s26  ;;  %2934 = vrot.lane.b32.xlu1 %v2933_v9, %s6095_s21  ;;  %s6124_s21 = smov 88   ;;  %s6127_s26 = smov 104  }
 0x711   : > { %2938 = vrot.lane.b32.xlu0 %v2933_v9, %s6093_s24  ;;  %2941 = vrot.lane.b32.xlu1 %v2940_v10, %s6091_s23  ;;  %v4882_v9 = vld [vmem:[%s6071_s11 + $0x30] sm:$0xff]   ;;  %s6125_s24 = smov 60  }
 0x715   : > { %2943 = vrot.lane.b32.xlu0 %v2940_v10, %s6089_s25  ;;  %2945 = vrot.lane.b32.xlu1 %v2940_v10, %s6087_s27  ;;  %s6128_s27 = smov 32   ;;  %s6131_s25 = smov 44  }
 0x779   : > { %v2924_v11 = vpop.permute.xlu1 %2923  ;;  %v2926_v12 = vpop.permute.xlu0 %2925 }
 0x77a   : > { %v2949_v16 = vsel %vm2947_vm6, %v2921_v4, %v2924_v11  ;;  %v4878_v4 = vld [vmem:[%s6071_s11 + $0xb8] sm:$0xff]  }
 0x77b   : > { %v2952_v21 = vsel %vm921_vm3, %v2949_v16, %v2926_v12  ;;  %v4883_v16 = vld [vmem:[%s6071_s11 + $0x78] sm:$0xff]  }
 0x77f   : > { %v2937_v13 = vpop.permute.xlu0 %2936  ;;  %v2935_v14 = vpop.permute.xlu1 %2934 }
 0x780   : > { %v2956_v15 = vsel %vm2954_vm4, %v2926_v12, %v2935_v14 }
 0x781   : > { %v2959_v19 = vsel %vm928_vm5, %v2956_v15, %v2937_v13 }
 0x783   : > { %v2939_v17 = vpop.permute.xlu0 %2938  ;;  %v2942_v18 = vpop.permute.xlu1 %2941 }
 0x784   : > { %v2962_v20 = vsel %vm2960_vm7, %v2959_v19, %v2939_v17  ;;  %v2965_v22 = vsel %vm898_vm0, %v2939_v17, %v2942_v18  ;;  %v4884_v17 = vld [vmem:[%s6071_s11 + $0xc8] sm:$0xff]   ;;  %v4885_v18 = vld [vmem:[%s6071_s11 + $0x38] sm:$0xff]  }
 0x785   : > { %3167 = vmatprep.mubr.bf16.mxu1 %v2962_v20 }
 0x786   : > { %3168 = vmatmul.mubr.bf16.vlgmr.msra.gmra.mrb[20].mxu1 %v2952_v21 }
 0x787   : > { %v2944_v23 = vpop.permute.xlu0 %2943  ;;  %v2946_v25 = vpop.permute.xlu1 %2945  ;;  %4525 = vmatpush3.bf16.msra.mxu1 %v4864_v51 }
 0x788   : > { %v2968_v57 = vsel %vm2966_vm9, %v2965_v22, %v2944_v23  ;;  %4233 = vmatprep.mubr.msk.bf16.mxu0 %vm2947_vm6, %v2946_v25  ;;  %4526 = vmatprep.subr.bf16.mxu1 %v4865_v52 }
 0x789   : > { %3209 = vmatmul.mubr.bf16.vlgmr.msra.gmra.mrb[28].mxu0 %v2968_v57  ;;  %v4886_v57 = vld [vmem:[%s6071_s11 + $0xd0] sm:$0xff]  }
 0x78a   : > { %3506 = vmatpush1.bf16.msra.mxu0 %v4860_v49 }
 0x78b   : > { %3507 = vmatprep.subr.bf16.mxu0 %v4932_v24  ;;  %4527 = vmatpush3.bf16.msra.mxu1 %v4867_v54 }
 0x78c   : > { %4528 = vmatprep.subr.bf16.mxu1 %v4868_v55 }
 0x78e   : > { %3508 = vmatpush1.bf16.msra.mxu0 %v4861_v53  ;;  %v4264_v53 = vld [vmem:[%s6074_s14] ss:$0 sm:$0xff] }
 0x78f   : > { %3509 = vmatprep.subr.bf16.mxu0 %v4932_v24  ;;  %4529 = vmatpush3.bf16.msra.mxu1 %v4870_v58 }
 0x790   : > { %4530 = vmatprep.subr.bf16.mxu1 %v4871_v59  ;;  %v4265_v59 = vld [vmem:[%s6075_s15] ss:$0 sm:$0xff] }
 0x792   : > { %3510 = vmatpush1.bf16.msra.mxu0 %v4863_v56 }
 0x793   : > { %3511 = vmatprep.subr.bf16.mxu0 %v4932_v24  ;;  %4531 = vmatpush3.bf16.msra.mxu1 %v4873_v61 }
 0x794   : > { %4532 = vmatprep.subr.bf16.mxu1 %v4874_v62 }
 0x796   : > { %3512 = vmatpush1.bf16.msra.mxu0 %v4866_v60 }
 0x797   : > { %3513 = vmatprep.subr.bf16.mxu0 %v4932_v24  ;;  %4533 = vmatpush3.bf16.msra.mxu1 %v4876_v0 }
 0x798   : > { %4534 = vmatprep.subr.bf16.mxu1 %v4877_v3 }
 0x79a   : > { %3514 = vmatpush1.bf16.msra.mxu0 %v4869_v63 }
 0x79b   : > { %3515 = vmatprep.subr.bf16.mxu0 %v4932_v24  ;;  %4535 = vmatpush3.bf16.msra.mxu1 %v4879_v5 }
 0x79c   : > { %4536 = vmatprep.subr.bf16.mxu1 %v4880_v6 }
 0x79e   : > { %3516 = vmatpush1.bf16.msra.mxu0 %v4872_v1 }
 0x79f   : > { %3517 = vmatprep.subr.bf16.mxu0 %v4932_v24  ;;  %4537 = vmatpush3.bf16.msra.mxu1 %v4882_v9 }
 0x7a0   : > { %4538 = vmatprep.subr.bf16.mxu1 %v4883_v16  ;;  %v4895_v16 = vld [vmem:[%s6076_s16 + $0x60] sm:$0xff]  }
 0x7a2   : > { %3518 = vmatpush1.bf16.msra.mxu0 %v4875_v2 }
 0x7a3   : > { %3519 = vmatprep.subr.bf16.mxu0 %v4932_v24  ;;  %4539 = vmatpush3.bf16.msra.mxu1 %v4885_v18  ;;  %v4897_v18 = vld [vmem:[%s6076_s16 + $0x68] sm:$0xff]  }
 0x7a6   : > { %3520 = vmatpush1.bf16.msra.mxu0 %v4878_v4 }
 0x7a7   : > { %3521 = vmatprep.subr.bf16.mxu0 %v4932_v24 }
 0x7aa   : > { %3522 = vmatpush1.bf16.msra.mxu0 %v4881_v7 }
 0x7ab   : > { %3523 = vmatprep.subr.bf16.mxu0 %v4932_v24 }
 0x7ae   : > { %3524 = vmatpush1.bf16.msra.mxu0 %v4884_v17  ;;  %v4896_v17 = vld [vmem:[%s6076_s16 + $0x20] sm:$0xff]  }
 0x7af   : > { %3525 = vmatprep.subr.bf16.mxu0 %v4932_v24 }
 0x7b2   : > { %3526 = vmatpush1.bf16.msra.mxu0 %v4886_v57 }
 0x859   : > { %v4518_v39 = vpop.f32.mrb[20].mxu1 }
 0x85a   : > { %v4519_v28 = vpop.f32.mrb[21].mxu1 }
 0x85b   : > { %v4520_v29 = vadd.f32 %v4519_v28, %v4518_v39  ;;  %v4521_v30 = vpop.f32.mrb[22].mxu1 }
 0x85c   : > { %v4522_v31 = vpop.f32.mrb[23].mxu1  ;;  %v3210_v33 = vpop.f32.mrb[28].mxu0 }
 0x85d   : > { %v4523_v34 = vadd.f32 %v4522_v31, %v4521_v30  ;;  %v3211_v35 = vadd.f32 %v4520_v29, %v3210_v33  ;;  %v3212_v36 = vpop.f32.mrb[29].mxu0 }
 0x85e   : > { %v3213_v38 = vpop.f32.mrb[30].mxu0 }
 0x85f   : > { %v3223_v40 = vmul.f32 %v4234_v32, %v3211_v35  ;;  %v3214_v41 = vadd.f32 %v4523_v34, %v3213_v38  ;;  %v3215_v42 = vpop.f32.mrb[31].mxu0 }
 0x861   : > { %v3231_v43 = vadd.f32 %v4235_v37, %v3223_v40  ;;  %v3224_v44 = vmul.f32 %v4234_v32, %v3214_v41 }
 0x863   : > { %v3232_v45 = vadd.f32 %v4235_v37, %v3224_v44  ;;  %v3233_v46 = vmax.f32 %v3231_v43, 0.0 }
 0x865   : > { %v3234_v47 = vmax.f32 %v3232_v45, 0.0 }
 0x867   : > { %v4655_v48 = vpack.i.bf16 %v3234_v47, %v3233_v46 }
 0x869   : > { %4656 = vrot.lane.b32.xlu0 %v4655_v48, %s4934_s3 }
 0x8db   : > { %v4657_v8 = vpop.permute.xlu0 %4656 }
 0x8dc   : > { %v4659_v10 = vunpack.i.h.bf16 %v4657_v8  ;;  %v4658_v11 = vunpack.i.l.bf16 %v4657_v8 }
 0x8de   : > { %v3244_v12 = vsel %vm2503_vm8, 0.0, %v4659_v10  ;;  %v3243_v13 = vsel %vm2503_vm8, 0.0, %v4658_v11  ;;  %v4887_v10 = vld [vmem:[%s6076_s16 + $0x40] sm:$0xff]  }
 0x8df   : > { %v3246_v14 = vsel %vm2909_vm15, %v3244_v12, 0.0  ;;  %v3245_v15 = vsel %vm2909_vm15, %v3243_v13, 0.0  ;;  %v4888_v11 = vld [vmem:[%s6076_s16] sm:$0xff]   ;;  %v4889_v12 = vld [vmem:[%s6076_s16 + $0x48] sm:$0xff]   ;;  %4546 = vmatprep.subr.bf16.mxu1 %v4887_v10  ;;  %v4892_v13 = vld [vmem:[%s6076_s16 + $0x10] sm:$0xff]  }
 0x8e0   : > { %v3250_v19 = vrot.slane %v3246_v14, 7  ;;  %v3249_v20 = vrot.slane %v3245_v15, 7  ;;  %v4893_v14 = vld [vmem:[%s6076_s16 + $0x58] sm:$0xff]  }
 0x8e1   : > { %v4894_v15 = vld [vmem:[%s6076_s16 + $0x18] sm:$0xff]  }
 0x8e2   : > { %v3251_v21 = vsel %vm907_vm1, %v3249_v20, %v3250_v19  ;;  %v3254_v22 = vsel %vm907_vm1, 0.0, %v3249_v20  ;;  %v4898_v19 = vld [vmem:[%s6076_s16 + $0x28] sm:$0xff]   ;;  %v4899_v20 = vld [vmem:[%s6076_s16 + $0x70] sm:$0xff]  }
 0x8e3   : > { %v3255_v23 = vsel %vm910_vm2, %v3251_v21, 0.0  ;;  %v4900_v21 = vld [vmem:[%s6076_s16 + $0x30] sm:$0xff]  }
 0x8e4   : > { %v3256_v25 = vpack.c.bf16 %v3255_v23, %v3254_v22 }
 0x8e6   : > { %3258 = vrot.lane.b32.xlu0 %v3256_v25, %s6101_s1  ;;  %3260 = vrot.lane.b32.xlu1 %v3256_v25, %s6124_s21  ;;  %v3265_v39 = vshll.u32 %v3256_v25, 16  ;;  %v3263_v28 = vshrl.u32 %v3256_v25, 16  ;;  %v3275_v31 = vrot.slane %v3256_v25, 1 }
 0x8e8   : > { %v3267_v29 = vrot.slane %v3265_v39, 1 }
 0x8ea   : > { %v3268_v30 = vor.u32 %v3267_v29, %v3263_v28 }
 0x8ec   : > { %3271 = vrot.lane.b32.xlu1 %v3268_v30, %s6125_s24  ;;  %3269 = vrot.lane.b32.xlu0 %v3268_v30, %s6126_s2 }
 0x8f0   : > { %3273 = vrot.lane.b32.xlu1 %v3268_v30, %s6127_s26  ;;  %3276 = vrot.lane.b32.xlu0 %v3275_v31, %s6128_s27  ;;  %v4901_v30 = vld [vmem:[%s6076_s16 + $0x78] sm:$0xff]  }
 0x8f4   : > { %3278 = vrot.lane.b32.xlu1 %v3275_v31, %s6129_s20  ;;  %3280 = vrot.lane.b32.xlu0 %v3275_v31, %s6130_s28  ;;  %v4902_v31 = vld [vmem:[%s6076_s16 + $0x38] sm:$0xff]  }
 0x958   : > { %v3259_v32 = vpop.permute.xlu0 %3258  ;;  %v3261_v33 = vpop.permute.xlu1 %3260 }
 0x959   : > { %v3283_v37 = vsel %vm2947_vm6, %v3256_v25, %v3259_v32 }
 0x95a   : > { %v3285_v43 = vsel %vm921_vm3, %v3283_v37, %v3261_v33 }
 0x95e   : > { %v3272_v34 = vpop.permute.xlu1 %3271  ;;  %v3270_v35 = vpop.permute.xlu0 %3269 }
 0x95f   : > { %v3288_v36 = vsel %vm2954_vm4, %v3261_v33, %v3270_v35 }
 0x960   : > { %v3290_v41 = vsel %vm928_vm5, %v3288_v36, %v3272_v34 }
 0x962   : > { %v3274_v38 = vpop.permute.xlu1 %3273  ;;  %v3277_v40 = vpop.permute.xlu0 %3276 }
 0x963   : > { %v3292_v42 = vsel %vm2960_vm7, %v3290_v41, %v3274_v38  ;;  %v3295_v44 = vsel %vm898_vm0, %v3274_v38, %v3277_v40 }
 0x964   : > { %3496 = vmatprep.mubr.bf16.mxu1 %v3292_v42 }
 0x965   : > { %3497 = vmatmul.mubr.bf16.vlgmr.msra.gmra.mrb[24].mxu1 %v3285_v43 }
 0x966   : > { %v3279_v45 = vpop.permute.xlu1 %3278  ;;  %v3281_v46 = vpop.permute.xlu0 %3280  ;;  %4547 = vmatpush3.bf16.msra.mxu1 %v4888_v11 }
 0x967   : > { %v3297_v47 = vsel %vm2966_vm9, %v3295_v44, %v3279_v45  ;;  %4263 = vmatprep.mubr.msk.bf16.mxu0 %vm2947_vm6, %v3281_v46  ;;  %4548 = vmatprep.subr.bf16.mxu1 %v4889_v12 }
 0x968   : > { %3538 = vmatmul.mubr.bf16.vlgmr.msra.gmra.mrb[32].mxu0 %v3297_v47 }
 0xa38   : > { %v4540_v48 = vpop.f32.mrb[24].mxu1 }
 0xa39   : > { %v4541_v49 = vpop.f32.mrb[25].mxu1 }
 0xa3a   : > { %v4542_v50 = vadd.f32 %v4541_v49, %v4540_v48  ;;  %v4543_v51 = vpop.f32.mrb[26].mxu1 }
 0xa3b   : > { %v4544_v52 = vpop.f32.mrb[27].mxu1  ;;  %v3539_v54 = vpop.f32.mrb[32].mxu0 }
 0xa3c   : > { %v4545_v55 = vadd.f32 %v4544_v52, %v4543_v51  ;;  %v3540_v56 = vadd.f32 %v4542_v50, %v3539_v54  ;;  %v3541_v58 = vpop.f32.mrb[33].mxu0  ;;  %v4903_v51 = vld [vmem:[%s6076_s16 + $0x80] sm:$0xff]  }
 0xa3d   : > { %v3542_v60 = vpop.f32.mrb[34].mxu0 }
 0xa3e   : > { %v3552_v61 = vmul.f32 %v4264_v53, %v3540_v56  ;;  %v3543_v62 = vadd.f32 %v4545_v55, %v3542_v60  ;;  %v3544_v63 = vpop.f32.mrb[35].mxu0  ;;  %v4904_v56 = vld [vmem:[%s6076_s16 + $0x88] sm:$0xff]   ;;  %v4906_v60 = vld [vmem:[%s6076_s16 + $0x98] sm:$0xff]  }
 0xa3f   : > { %v4909_v63 = vld [vmem:[%s6076_s16 + $0xb0] sm:$0xff]  }
 0xa40   : > { %v3560_v0 = vadd.f32 %v4265_v59, %v3552_v61  ;;  %v3553_v1 = vmul.f32 %v4264_v53, %v3543_v62  ;;  %v4907_v61 = vld [vmem:[%s6076_s16 + $0xa0] sm:$0xff]   ;;  %v4908_v62 = vld [vmem:[%s6076_s16 + $0xa8] sm:$0xff]  }
 0xa42   : > { %v3562_v2 = vadd.f32 %v3560_v0, %v5679_v27  ;;  %v3561_v3 = vadd.f32 %v4265_v59, %v3553_v1  ;;  %v4905_v59 = vld [vmem:[%s6076_s16 + $0x90] sm:$0xff]   ;;  %v4910_v0 = vld [vmem:[%s6076_s16 + $0xb8] sm:$0xff]   ;;  %v4911_v1 = vld [vmem:[%s6076_s16 + $0xc0] sm:$0xff]  }
 0xa44   : > { %v3564_v4 = vmax.f32 %v3562_v2, 0.0  ;;  %v3563_v5 = vadd.f32 %v3561_v3, %v5677_v26  ;;  %v4912_v2 = vld [vmem:[%s6076_s16 + $0xc8] sm:$0xff]   ;;  %v4913_v3 = vld [vmem:[%s6076_s16 + $0xd0] sm:$0xff]  }
 0xa46   : > { %v3565_v6 = vmax.f32 %v3563_v5, 0.0  ;;  %v3566_v7 = vadd.f32 %v3564_v4, %v5679_v27  ;;  %v4891_v27 = vld [vmem:[%s6076_s16 + $0x50] sm:$0xff]  }
 0xa48   : > { %v3567_v8 = vadd.f32 %v3565_v6, %v5677_v26  ;;  %v4890_v26 = vld [vmem:[%s6076_s16 + $0x8] sm:$0xff]  }
 0xa49   : > { %4549 = vmatpush3.bf16.msra.mxu1 %v4890_v26 }
 0xa4a   : > { %v4660_v9 = vpack.i.bf16 %v3567_v8, %v3566_v7  ;;  %4550 = vmatprep.subr.bf16.mxu1 %v4891_v27  ;;  %v4294_v27 = vld [vmem:[%s6077_s17] ss:$0 sm:$0xff] }
 0xa4c   : > { %4661 = vrot.lane.b32.xlu1 %v4660_v9, %s4934_s3 }
 0xa4d   : > { %4551 = vmatpush3.bf16.msra.mxu1 %v4892_v13 }
 0xa4e   : > { %4552 = vmatprep.subr.bf16.mxu1 %v4893_v14  ;;  %v4295_v14 = vld [vmem:[%s6078_s18] ss:$0 sm:$0xff] }
 0xa51   : > { %4553 = vmatpush3.bf16.msra.mxu1 %v4894_v15 }
 0xa52   : > { %4554 = vmatprep.subr.bf16.mxu1 %v4895_v16 }
 0xa55   : > { %4555 = vmatpush3.bf16.msra.mxu1 %v4896_v17 }
 0xa56   : > { %4556 = vmatprep.subr.bf16.mxu1 %v4897_v18 }
 0xa59   : > { %4557 = vmatpush3.bf16.msra.mxu1 %v4898_v19 }
 0xa5a   : > { %4558 = vmatprep.subr.bf16.mxu1 %v4899_v20 }
 0xa5d   : > { %4559 = vmatpush3.bf16.msra.mxu1 %v4900_v21 }
 0xa5e   : > { %4560 = vmatprep.subr.bf16.mxu1 %v4901_v30 }
 0xa61   : > { %4561 = vmatpush3.bf16.msra.mxu1 %v4902_v31 }
 0xa62   : > { %3892 = vmatprep.subr.bf16.mxu1 %v4932_v24 }
 0xabe   : > { %v4662_v22 = vpop.permute.xlu1 %4661 }
 0xabf   : > { %v4664_v23 = vunpack.i.h.bf16 %v4662_v22  ;;  %v4663_v25 = vunpack.i.l.bf16 %v4662_v22 }
 0xac1   : > { %v3577_v57 = vsel %vm2503_vm8, 0.0, %v4664_v23  ;;  %v3576_v39 = vsel %vm2503_vm8, 0.0, %v4663_v25 }
 0xac2   : > { %v3579_v28 = vsel %vm2909_vm15, %v3577_v57, 0.0  ;;  %v3578_v29 = vsel %vm2909_vm15, %v3576_v39, 0.0 }
 0xac3   : > { %v3583_v32 = vrot.slane %v3579_v28, 7  ;;  %v3582_v33 = vrot.slane %v3578_v29, 7 }
 0xac5   : > { %v3584_v34 = vsel %vm907_vm1, %v3582_v33, %v3583_v32  ;;  %v3587_v35 = vsel %vm907_vm1, 0.0, %v3582_v33 }
 0xac6   : > { %v3588_v36 = vsel %vm910_vm2, %v3584_v34, 0.0 }
 0xac7   : > { %v3589_v37 = vpack.c.bf16 %v3588_v36, %v3587_v35 }
 0xac9   : > { %3593 = vrot.lane.b32.xlu0 %v3589_v37, %s6124_s21  ;;  %v3598_v38 = vshll.u32 %v3589_v37, 16  ;;  %v3596_v40 = vshrl.u32 %v3589_v37, 16  ;;  %v3608_v43 = vrot.slane %v3589_v37, 1 }
 0xacb   : > { %v3600_v41 = vrot.slane %v3598_v38, 1 }
 0xacd   : > { %v3601_v42 = vor.u32 %v3600_v41, %v3596_v40 }
 0xacf   : > { %3604 = vrot.lane.b32.xlu0 %v3601_v42, %s6125_s24  ;;  %3602 = vrot.lane.b32.xlu1 %v3601_v42, %s6126_s2 }
 0xad3   : > { %3606 = vrot.lane.b32.xlu0 %v3601_v42, %s6127_s26  ;;  %3591 = vrot.lane.b32.xlu1 %v3589_v37, %s6131_s25 }
 0xad7   : > { %3611 = vrot.lane.b32.xlu0 %v3608_v43, %s6129_s20  ;;  %3609 = vrot.lane.b32.xlu1 %v3608_v43, %s6128_s27 }
 0xadb   : > { %3613 = vrot.lane.b32.xlu1 %v3608_v43, %s6130_s28 }
 0xb3b   : > { %v3594_v44 = vpop.permute.xlu0 %3593 }
 0xb41   : > { %v3605_v45 = vpop.permute.xlu0 %3604  ;;  %v3603_v46 = vpop.permute.xlu1 %3602 }
 0xb42   : > { %v3621_v47 = vsel %vm2954_vm4, %v3594_v44, %v3603_v46 }
 0xb43   : > { %v3623_v50 = vsel %vm928_vm5, %v3621_v47, %v3605_v45 }
 0xb45   : > { %v3607_v48 = vpop.permute.xlu0 %3606  ;;  %v3592_v49 = vpop.permute.xlu1 %3591 }
 0xb46   : > { %v3616_v52 = vsel %vm2947_vm6, %v3589_v37, %v3592_v49  ;;  %v3625_v53 = vsel %vm2960_vm7, %v3623_v50, %v3607_v48 }
 0xb47   : > { %3883 = vmatprep.mubr.bf16.mxu1 %v3625_v53  ;;  %v3618_v54 = vsel %vm921_vm3, %v3616_v52, %v3594_v44 }
 0xb48   : > { %3884 = vmatmul.mubr.bf16.vlgmr.msra.gmra.mrb[28].mxu1 %v3618_v54 }
 0xb49   : > { %3893 = vmatpush1.bf16.msra.mxu1 %v4903_v51  ;;  %v3610_v55 = vpop.permute.xlu1 %3609  ;;  %v3612_v4 = vpop.permute.xlu0 %3611 }
 0xb4a   : > { %3894 = vmatprep.subr.bf16.mxu1 %v4932_v24  ;;  %v3628_v5 = vsel %vm898_vm0, %v3607_v48, %v3610_v55  ;;  %vm3954_vm0 = vcmask 388096  }
 0xb4b   : > { %v3630_v6 = vsel %vm2966_vm9, %v3628_v5, %v3612_v4 }
 0xb4d   : > { %3895 = vmatpush1.bf16.msra.mxu1 %v4904_v56  ;;  %v3614_v58 = vpop.permute.xlu1 %3613 }
 0xb4e   : > { %4293 = vmatprep.mubr.msk.bf16.mxu1 %vm2947_vm6, %v3614_v58  ;;  %3896 = vmatprep.subr.bf16.mxu1 %v4932_v24 }
 0xb51   : > { %3897 = vmatpush1.bf16.msra.mxu1 %v4905_v59 }
 0xb52   : > { %3898 = vmatprep.subr.bf16.mxu1 %v4932_v24 }
 0xb55   : > { %3899 = vmatpush1.bf16.msra.mxu1 %v4906_v60 }
 0xb56   : > { %3900 = vmatprep.subr.bf16.mxu1 %v4932_v24 }
 0xb59   : > { %3901 = vmatpush1.bf16.msra.mxu1 %v4907_v61 }
 0xb5a   : > { %3902 = vmatprep.subr.bf16.mxu1 %v4932_v24 }
 0xb5d   : > { %3903 = vmatpush1.bf16.msra.mxu1 %v4908_v62 }
 0xb5e   : > { %3904 = vmatprep.subr.bf16.mxu1 %v4932_v24 }
 0xb61   : > { %3905 = vmatpush1.bf16.msra.mxu1 %v4909_v63 }
 0xb62   : > { %3906 = vmatprep.subr.bf16.mxu1 %v4932_v24 }
 0xb65   : > { %3907 = vmatpush1.bf16.msra.mxu1 %v4910_v0 }
 0xb66   : > { %3908 = vmatprep.subr.bf16.mxu1 %v4932_v24 }
 0xb69   : > { %3909 = vmatpush1.bf16.msra.mxu1 %v4911_v1 }
 0xb6a   : > { %3910 = vmatprep.subr.bf16.mxu1 %v4932_v24 }
 0xb6d   : > { %3911 = vmatpush1.bf16.msra.mxu1 %v4912_v2 }
 0xb6e   : > { %3912 = vmatprep.subr.bf16.mxu1 %v4932_v24 }
 0xb71   : > { %3913 = vmatpush1.bf16.msra.mxu1 %v4913_v3 }
 0xb74   : > { %3925 = vmatmul.mubr.bf16.vlgmr.msra.gmra.mrb[32].mxu1 %v3630_v6 }
 0xc1b   : > { %v4562_v7 = vpop.f32.mrb[28].mxu1 }
 0xc1c   : > { %v4563_v8 = vpop.f32.mrb[29].mxu1 }
 0xc1d   : > { %v4564_v9 = vadd.f32 %v4563_v8, %v4562_v7  ;;  %v4565_v10 = vpop.f32.mrb[30].mxu1 }
 0xc1e   : > { %v4566_v11 = vpop.f32.mrb[31].mxu1 }
 0xc1f   : > { %v4567_v12 = vadd.f32 %v4566_v11, %v4565_v10 }
 0xc47   : > { %v3926_v26 = vpop.f32.mrb[32].mxu1 }
 0xc48   : > { %v3927_v24 = vadd.f32 %v4564_v9, %v3926_v26  ;;  %v3928_v13 = vpop.f32.mrb[33].mxu1 }
 0xc49   : > { %v3929_v15 = vpop.f32.mrb[34].mxu1 }
 0xc4a   : > { %v3940_v16 = vmul.f32 %v4294_v27, %v3927_v24  ;;  %v3930_v17 = vadd.f32 %v4567_v12, %v3929_v15  ;;  %v3931_v18 = vpop.f32.mrb[35].mxu1 }
 0xc4c   : > { %v3949_v19 = vadd.f32 %v4295_v14, %v3940_v16  ;;  %v3941_v20 = vmul.f32 %v4294_v27, %v3930_v17 }
 0xc4e   : > { %4914 = vtanh.f32 %v3949_v19  ;;  %v3950_v21 = vadd.f32 %v4295_v14, %v3941_v20 }
 0xc50   : > { %4916 = vtanh.f32 %v3950_v21 }
 0xc58   : > { %v4915_v22 = vpop.eup %4914 }
 0xc59   : > { %3953 = vst.msk [vmem:[%s599_s8] sm:$0xff] %vm2947_vm6, %v4915_v22 }
 0xc5a   : > { %v4917_v23 = vpop.eup %4916 }
 0xc5b   : > { %3955 = vst.msk [vmem:[%s599_s8 + $0x8] sm:$0xf] %vm3954_vm0, %v4917_v23 }
 0xc5c PF: > { %s29_s0 = sadd.s32 1, %s4925_s0  }
 0xc5d   : > { %p26_p4 = scmp.ge.s32.totalorder %s29_s0, 4  }
 0xc5f   :  { %28 = sbr.rel (!%p26_p4) target bundleno = 10 (0xa), region = 126 }

</bundles_post_ra>
